<compile_context>
chip_gen: v7x
topology: tpu7x:2x2x1
jax: 0.10.0
libtpu: 0.0.40
codegen_flags: <defaults>
</compile_context>

<pallas_src>
import jax
import jax.numpy as jnp
from jax import lax
from jax.experimental import pallas as pl
from jax.experimental.pallas import tpu as pltpu


# ------------------------------ small kernels -------------------------------

def _linear_relu_kernel(x_ref, w_ref, b_ref, o_ref):
    y = jnp.dot(x_ref[...], w_ref[...], preferred_element_type=jnp.float32) + b_ref[...]
    o_ref[...] = jnp.maximum(y, 0.0).astype(o_ref.dtype)


def pallas_linear_relu(x, w_t, b):
    m, _ = x.shape
    n = w_t.shape[1]
    return pl.pallas_call(
        _linear_relu_kernel,
        out_shape=jax.ShapeDtypeStruct((m, n), jnp.float32),
    )(x, w_t, b.reshape(1, n))


def _highway_kernel(x_ref, wh_ref, bh_ref, wg_ref, bg_ref, o_ref):
    x = x_ref[...]
    h = jnp.maximum(
        jnp.dot(x, wh_ref[...], preferred_element_type=jnp.float32) + bh_ref[...], 0.0)
    g = jax.nn.sigmoid(
        jnp.dot(x, wg_ref[...], preferred_element_type=jnp.float32) + bg_ref[...])
    o_ref[...] = (g * h + (1.0 - g) * x).astype(o_ref.dtype)


def pallas_highway(x, wh_t, bh, wg_t, bg):
    m, dd = x.shape
    return pl.pallas_call(
        _highway_kernel,
        out_shape=jax.ShapeDtypeStruct((m, dd), jnp.float32),
    )(x, wh_t, bh.reshape(1, dd), wg_t, bg.reshape(1, dd))


# ------------------------- fused bidirectional LSTM --------------------------
# grid=(2,) over directions; program_id(0)==0 -> forward, ==1 -> backward.
# PyTorch gate order i, f, g, o.  PyTorch's b_ih + b_hh must be summed into the
# single bias `b` when porting real checkpoint weights.

def _lstm_recurrence(x_ref, wih_ref, whh_ref, b_ref, gx_ref, emit):
    rev = pl.program_id(0)                   # 0 = forward, 1 = backward (time-reversed)
    T, N, In = x_ref.shape
    H = whh_ref.shape[0]

    # Hoisted input projection + bias: one big matmul instead of T tiny ones.
    gx_ref[...] = (
        jnp.dot(x_ref[...].reshape(T * N, In), wih_ref[...],
                preferred_element_type=jnp.float32) + b_ref[...]
    ).reshape(T, N, 4 * H)

    # h / c live in vregs; the short static time loop is fully unrolled.
    h = jnp.zeros((N, H), jnp.float32)
    c = jnp.zeros((N, H), jnp.float32)
    for t in range(T):
        t_eff = t + rev * (T - 1 - 2 * t)    # t (fwd) or T-1-t (bwd); scalar-unit math
        gates = gx_ref[t_eff] + jnp.dot(h, whh_ref[...],
                                        preferred_element_type=jnp.float32)
        i = jax.nn.sigmoid(gates[:, 0 * H:1 * H])
        f = jax.nn.sigmoid(gates[:, 1 * H:2 * H])
        g = jnp.tanh(gates[:, 2 * H:3 * H])
        o = jax.nn.sigmoid(gates[:, 3 * H:4 * H])
        c = f * c + i * g
        h = o * jnp.tanh(c)
        emit(t_eff, h)
    return h


def _bilstm_seq_kernel(x_ref, wih_ref, whh_ref, b_ref, y_ref, gx_ref):
    def emit(t_eff, h):
        y_ref[t_eff] = h.astype(y_ref.dtype)
    _lstm_recurrence(x_ref, wih_ref, whh_ref, b_ref, gx_ref, emit)


def _bilstm_last_kernel(x_ref, wih_ref, whh_ref, b_ref, hT_ref, gx_ref):
    h = _lstm_recurrence(x_ref, wih_ref, whh_ref, b_ref, gx_ref, lambda t, h: None)
    hT_ref[...] = h.astype(hT_ref.dtype)


def _pad_batch(x, mult=8):
    """Pad the LSTM batch axis (axis 1) up to a sublane multiple so the
    in-kernel (T,N,In)->(T*N,In) reshape stays tile-aligned."""
    n = x.shape[1]
    pad = (-n) % mult
    if pad:
        x = jnp.pad(x, ((0, 0), (0, pad), (0, 0)))
    return x, n


def _bilstm_specs(T, N, In, H):
    return [
        pl.BlockSpec((T, N, In), lambda d: (0, 0, 0)),          # x shared by both dirs
        pl.BlockSpec((None, In, 4 * H), lambda d: (d, 0, 0)),   # per-direction W_ih
        pl.BlockSpec((None, H, 4 * H), lambda d: (d, 0, 0)),    # per-direction W_hh
        pl.BlockSpec((None, 1, 4 * H), lambda d: (d, 0, 0)),    # per-direction bias
    ]


def pallas_bilstm_seq(x, w_ih, w_hh, b):
    """x: (T, N, In) time-major.  Returns full sequence output (T, N, 2H)."""
    x, n = _pad_batch(x)
    T, N, In = x.shape
    H = w_hh.shape[1]
    y = pl.pallas_call(
        _bilstm_seq_kernel,
        grid=(2,),
        in_specs=_bilstm_specs(T, N, In, H),
        out_specs=pl.BlockSpec((None, T, N, H), lambda d: (d, 0, 0, 0)),
        out_shape=jax.ShapeDtypeStruct((2, T, N, H), jnp.float32),
        scratch_shapes=[pltpu.VMEM((T, N, 4 * H), jnp.float32)],
        compiler_params=pltpu.CompilerParams(dimension_semantics=("parallel",)),
    )(x, w_ih, w_hh, b)
    return jnp.concatenate([y[0], y[1]], axis=-1)[:, :n, :]     # (T, n, 2H)


def pallas_bilstm_last(x, w_ih, w_hh, b):
    """x: (T, N, In) time-major.  Returns only h_n: (2 directions, N, H)."""
    x, n = _pad_batch(x)
    T, N, In = x.shape
    H = w_hh.shape[1]
    hT = pl.pallas_call(
        _bilstm_last_kernel,
        grid=(2,),
        in_specs=_bilstm_specs(T, N, In, H),
        out_specs=pl.BlockSpec((None, N, H), lambda d: (d, 0, 0)),
        out_shape=jax.ShapeDtypeStruct((2, N, H), jnp.float32),
        scratch_shapes=[pltpu.VMEM((T, N, 4 * H), jnp.float32)],
        compiler_params=pltpu.CompilerParams(dimension_semantics=("parallel",)),
    )(x, w_ih, w_hh, b)
    return hT[:, :n, :]                                          # (2, n, H)


# ------------------------------- attention -----------------------------------

def _attn_kernel(q1_ref, q2_ref, w_ref, c2q_ref, q2c_ref):
    # S[i,j] = q1[i]·w1 + q2[j]·w2 + (q1[i]*w3)·q2[j]   (folded Linear(6d,1,bias=False))
    q1 = q1_ref[...]                                             # (L, 2d)
    q2 = q2_ref[...]                                             # (L, 2d)
    w1 = w_ref[0:1, :]
    w2 = w_ref[1:2, :]
    w3 = w_ref[2:3, :]
    s1 = jnp.sum(q1 * w1, axis=-1, keepdims=True)                # (L, 1), VPU + XLU
    a = q1 * w3 + w2                                             # fold w2 term into the matmul
    s12 = lax.dot_general(a, q2, (((1,), (1,)), ((), ())),       # (L, L), no q2.T materialized
                          preferred_element_type=jnp.float32)
    S = s1 + s12
    S = S - jnp.max(S, axis=-1, keepdims=True)
    P = jnp.exp(S)
    P = P / jnp.sum(P, axis=-1, keepdims=True)
    # Reference uses the SAME row-softmax P for both c2q and q2c.
    c2q_ref[...] = jnp.dot(P, q2, preferred_element_type=jnp.float32).astype(c2q_ref.dtype)
    q2c_ref[...] = jnp.dot(P, q1, preferred_element_type=jnp.float32).astype(q2c_ref.dtype)


def pallas_attention(q1, q2, w3x2d):
    B, L, D2 = q1.shape
    q_spec = lambda: pl.BlockSpec((None, L, D2), lambda b: (b, 0, 0))
    w_spec = pl.BlockSpec((3, D2), lambda b: (0, 0))
    return pl.pallas_call(
        _attn_kernel,
        grid=(B,),
        in_specs=[q_spec(), q_spec(), w_spec],
        out_specs=(q_spec(), q_spec()),
        out_shape=(jax.ShapeDtypeStruct((B, L, D2), jnp.float32),
                   jax.ShapeDtypeStruct((B, L, D2), jnp.float32)),
        compiler_params=pltpu.CompilerParams(dimension_semantics=("parallel",)),
    )(q1, q2, w3x2d)


# ------------------------------- model glue ----------------------------------

def char_embed(params, chars):
    """chars: (NB, L, W) int32 -> (NB, L, E). Lookup+sum then Linear+ReLU (Pallas)."""
    NB, L, W = chars.shape
    ce = jnp.sum(jnp.take(params["char_emb"], chars, axis=0), axis=2)   # (NB, L, c_embd)
    c_embd = ce.shape[-1]
    E = params["char_proj_w"].shape[1]
    proj = pallas_linear_relu(ce.reshape(NB * L, c_embd),
                              params["char_proj_w"], params["char_proj_b"])
    return proj.reshape(NB, L, E)


def forward(params, inputs):
    word1, word2, char1, char2 = inputs
    L, B = word1.shape
    E = params["word_emb"].shape[1]
    d = 2 * E

    # ---- embeddings: both sentences batched; rows [0:B]=s1, [B:2B]=s2 ----
    words = jnp.concatenate([word1, word2], axis=1)                      # (L, 2B)
    we = jnp.transpose(jnp.take(params["word_emb"], words, axis=0), (1, 0, 2))  # (2B, L, E)
    chars = jnp.concatenate([char1, char2], axis=0)                      # (2B, L, W)
    ce = char_embed(params, chars)                                       # (2B, L, E)
    emb = jnp.concatenate([we, ce], axis=-1)                             # (2B, L, d)

    # ---- highway: single call on all 2*B*L rows ----
    emb = pallas_highway(emb.reshape(2 * B * L, d),
                         params["hw_wh"], params["hw_bh"],
                         params["hw_wg"], params["hw_bg"]).reshape(2 * B, L, d)

    # ---- ctx_embd_layer: nn.LSTM(batch_first=False) fed the (B, L, d) tensor,
    # so the recurrence runs over axis 0 (length B) with batch L — reproduced
    # faithfully; both sentences are stacked along the LSTM batch axis. ----
    x_ctx = jnp.concatenate([emb[:B], emb[B:]], axis=1)                  # (B, 2L, d)
    q = pallas_bilstm_seq(x_ctx, params["ctx"]["w_ih"],
                          params["ctx"]["w_hh"], params["ctx"]["b"])     # (B, 2L, 2d)
    q1, q2 = q[:, :L, :], q[:, L:, :]                                    # (B, L, 2d)

    # ---- BiDAF-style attention ----
    c2q, q2c = pallas_attention(q1, q2, params["attn_w"])

    G1 = jnp.concatenate([q1, c2q, q1 * c2q, q1 * q2c], axis=-1)         # (B, L, 8d)
    G2 = jnp.concatenate([q2, q2c, q2 * q2c, q2 * c2q], axis=-1)

    # ---- modeling_layer: batch_first=True -> time axis L; only h_n is used,
    # so run the last-hidden-only kernel; both sentences batched along N. ----
    x_mod = jnp.concatenate([jnp.transpose(G1, (1, 0, 2)),
                             jnp.transpose(G2, (1, 0, 2))], axis=1)      # (L, 2B, 8d)
    hT = pallas_bilstm_last(x_mod, params["model"]["w_ih"],
                            params["model"]["w_hh"], params["model"]["b"])  # (2, 2B, d)

    # combine_directions + permute(1,2,0).view(B, -1) -> (B, 2d)
    h1 = jnp.concatenate([hT[0, :B], hT[1, :B]], axis=-1)
    h2 = jnp.concatenate([hT[0, B:], hT[1, B:]], axis=-1)

    # exponent_neg_manhattan_distance: tiny (B, 2d) reduce, done in plain XLA
    # to avoid a lane-width-1 Pallas output.
    return jnp.exp(-jnp.sum(jnp.abs(h1 - h2), axis=-1))                  # (B,)


def init_params(key, vocab_w, vocab_c, E, c_embd):
    d = 2 * E
    ks = iter(jax.random.split(key, 32))
    nrm = lambda k, shp, s=0.1: (s * jax.random.normal(k, shp)).astype(jnp.float32)

    def bilstm(in_dim, H):
        # direction-stacked weights: index 0 = forward, 1 = backward.
        # NOTE: PyTorch has b_ih and b_hh; sum them into `b` when porting weights.
        return dict(
            w_ih=nrm(next(ks), (2, in_dim, 4 * H)),
            w_hh=nrm(next(ks), (2, H, 4 * H)),
            b=jnp.zeros((2, 1, 4 * H), jnp.float32),     # biases init to 0 (init_weights)
        )

    return dict(
        word_emb=nrm(next(ks), (vocab_w, E), 1.0),
        char_emb=nrm(next(ks), (vocab_c, c_embd), 1.0),
        char_proj_w=nrm(next(ks), (c_embd, E)),
        char_proj_b=jnp.zeros((E,), jnp.float32),
        hw_wh=nrm(next(ks), (d, d)),
        hw_bh=jnp.zeros((d,), jnp.float32),
        hw_wg=nrm(next(ks), (d, d)),
        hw_bg=jnp.zeros((d,), jnp.float32),
        # nn.Linear(6d, 1, bias=False) weight, split into (w1, w2, w3) rows
        attn_w=nrm(next(ks), (6 * d,)).reshape(3, 2 * d),
        ctx=bilstm(d, d),
        model=bilstm(8 * d, d),
    )


if __name__ == "__main__":
    B, L, W = 2, 8, 6          # batch, sequence length, chars per word
    E = 64                      # args.w_embd_size  (d = 128)
    c_embd = 16
    vocab_w, vocab_c = 100, 40

    key = jax.random.PRNGKey(0)
    kp, k1, k2, k3, k4 = jax.random.split(key, 5)
    params = init_params(kp, vocab_w, vocab_c, E, c_embd)

    word1 = jax.random.randint(k1, (L, B), 0, vocab_w, dtype=jnp.int32)
    word2 = jax.random.randint(k2, (L, B), 0, vocab_w, dtype=jnp.int32)
    char1 = jax.random.randint(k3, (B, L, W), 0, vocab_c, dtype=jnp.int32)
    char2 = jax.random.randint(k4, (B, L, W), 0, vocab_c, dtype=jnp.int32)

    fwd = jax.jit(lambda p, a, b, c, d2: forward(p, (a, b, c, d2)))
    scores = fwd(params, word1, word2, char1, char2)
    jax.block_until_ready(scores)
    assert scores.shape == (B,) and scores.dtype == jnp.float32
    assert bool(jnp.all(jnp.isfinite(scores)))
    print("KERNEL_OK")
</pallas_src>

<mosaic_0001>
module attributes {stable_mosaic.version = 11 : i64} {
  func.func @_linear_relu_kernel(%arg0: memref<32x16xf32, #tpu.memory_space<vmem>>, %arg1: memref<16x64xf32, #tpu.memory_space<vmem>>, %arg2: memref<1x64xf32, #tpu.memory_space<vmem>>, %arg3: memref<32x64xf32, #tpu.memory_space<vmem>>) attributes {dimension_semantics = [], scalar_prefetch = 0 : i64, scratch_operands = 0 : i64, tpu.core_type = #tpu.core_type<tc>} {
    %c0 = arith.constant 0 : index
    %c0_0 = arith.constant 0 : index
    %0 = vector.load %arg0[%c0, %c0_0] : memref<32x16xf32, #tpu.memory_space<vmem>>, vector<32x16xf32>
    %c0_1 = arith.constant 0 : index
    %c0_2 = arith.constant 0 : index
    %1 = vector.load %arg1[%c0_1, %c0_2] : memref<16x64xf32, #tpu.memory_space<vmem>>, vector<16x64xf32>
    %cst = arith.constant dense<0.000000e+00> : vector<32x64xf32>
    %2 = tpu.matmul %0, %1, %cst {dimension_numbers = #tpu.dot_dimension_numbers<[1], [0], [0], [1], [0, 0, 1, 1], [], []>} : vector<32x16xf32>, vector<16x64xf32>, vector<32x64xf32> -> vector<32x64xf32>
    %c0_3 = arith.constant 0 : index
    %c0_4 = arith.constant 0 : index
    %3 = vector.load %arg2[%c0_3, %c0_4] : memref<1x64xf32, #tpu.memory_space<vmem>>, vector<1x64xf32>
    %4 = vector.broadcast %3 : vector<1x64xf32> to vector<32x64xf32>
    %5 = arith.addf %2, %4 : vector<32x64xf32>
    %cst_5 = arith.constant 0.000000e+00 : f32
    %6 = vector.broadcast %cst_5 : f32 to vector<32x64xf32>
    %7 = arith.maximumf %5, %6 : vector<32x64xf32>
    %c0_6 = arith.constant 0 : index
    %c0_7 = arith.constant 0 : index
    %8 = vector.load %arg3[%c0_6, %c0_7] : memref<32x64xf32, #tpu.memory_space<vmem>>, vector<32x64xf32>
    tpu.vector_store %arg3[%c0_6, %c0_7], %7 {strides = array<i32>} : memref<32x64xf32, #tpu.memory_space<vmem>>, vector<32x64xf32>,
    return
  }
}

module attributes {stable_mosaic.version = 11 : i64} {
  func.func @_highway_kernel(%arg0: memref<32x128xf32, #tpu.memory_space<vmem>>, %arg1: memref<128x128xf32, #tpu.memory_space<vmem>>, %arg2: memref<1x128xf32, #tpu.memory_space<vmem>>, %arg3: memref<128x128xf32, #tpu.memory_space<vmem>>, %arg4: memref<1x128xf32, #tpu.memory_space<vmem>>, %arg5: memref<32x128xf32, #tpu.memory_space<vmem>>) attributes {dimension_semantics = [], scalar_prefetch = 0 : i64, scratch_operands = 0 : i64, tpu.core_type = #tpu.core_type<tc>} {
    %c0 = arith.constant 0 : index
    %c0_0 = arith.constant 0 : index
    %0 = vector.load %arg0[%c0, %c0_0] : memref<32x128xf32, #tpu.memory_space<vmem>>, vector<32x128xf32>
    %c0_1 = arith.constant 0 : index
    %c0_2 = arith.constant 0 : index
    %1 = vector.load %arg1[%c0_1, %c0_2] : memref<128x128xf32, #tpu.memory_space<vmem>>, vector<128x128xf32>
    %cst = arith.constant dense<0.000000e+00> : vector<32x128xf32>
    %2 = tpu.matmul %0, %1, %cst {dimension_numbers = #tpu.dot_dimension_numbers<[1], [0], [0], [1], [0, 0, 1, 1], [], []>} : vector<32x128xf32>, vector<128x128xf32>, vector<32x128xf32> -> vector<32x128xf32>
    %c0_3 = arith.constant 0 : index
    %c0_4 = arith.constant 0 : index
    %3 = vector.load %arg2[%c0_3, %c0_4] : memref<1x128xf32, #tpu.memory_space<vmem>>, vector<1x128xf32>
    %4 = vector.broadcast %3 : vector<1x128xf32> to vector<32x128xf32>
    %5 = arith.addf %2, %4 : vector<32x128xf32>
    %cst_5 = arith.constant 0.000000e+00 : f32
    %6 = vector.broadcast %cst_5 : f32 to vector<32x128xf32>
    %7 = arith.maximumf %5, %6 : vector<32x128xf32>
    %c0_6 = arith.constant 0 : index
    %c0_7 = arith.constant 0 : index
    %8 = vector.load %arg3[%c0_6, %c0_7] : memref<128x128xf32, #tpu.memory_space<vmem>>, vector<128x128xf32>
    %cst_8 = arith.constant dense<0.000000e+00> : vector<32x128xf32>
    %9 = tpu.matmul %0, %8, %cst_8 {dimension_numbers = #tpu.dot_dimension_numbers<[1], [0], [0], [1], [0, 0, 1, 1], [], []>} : vector<32x128xf32>, vector<128x128xf32>, vector<32x128xf32> -> vector<32x128xf32>
    %c0_9 = arith.constant 0 : index
    %c0_10 = arith.constant 0 : index
    %10 = vector.load %arg4[%c0_9, %c0_10] : memref<1x128xf32, #tpu.memory_space<vmem>>, vector<1x128xf32>
    %11 = vector.broadcast %10 : vector<1x128xf32> to vector<32x128xf32>
    %12 = arith.addf %9, %11 : vector<32x128xf32>
    %13 = arith.negf %12 : vector<32x128xf32>
    %14 = math.exp %13 : vector<32x128xf32>
    %cst_11 = arith.constant 1.000000e+00 : f32
    %15 = vector.broadcast %cst_11 : f32 to vector<32x128xf32>
    %16 = arith.addf %15, %14 : vector<32x128xf32>
    %17 = arith.divf %15, %16 : vector<32x128xf32>
    %18 = arith.mulf %17, %7 : vector<32x128xf32>
    %cst_12 = arith.constant 1.000000e+00 : f32
    %19 = vector.broadcast %cst_12 : f32 to vector<32x128xf32>
    %20 = arith.subf %19, %17 : vector<32x128xf32>
    %21 = arith.mulf %20, %0 : vector<32x128xf32>
    %22 = arith.addf %18, %21 : vector<32x128xf32>
    %c0_13 = arith.constant 0 : index
    %c0_14 = arith.constant 0 : index
    %23 = vector.load %arg5[%c0_13, %c0_14] : memref<32x128xf32, #tpu.memory_space<vmem>>, vector<32x128xf32>
    tpu.vector_store %arg5[%c0_13, %c0_14], %22 {strides = array<i32>} : memref<32x128xf32, #tpu.memory_space<vmem>>, vector<32x128xf32>,
    return
  }
}

module attributes {stable_mosaic.version = 11 : i64} {
  func.func @_bilstm_seq_kernel(%arg0: i32, %arg1: memref<2x16x128xf32, #tpu.memory_space<vmem>>, %arg2: memref<1x128x512xf32, #tpu.memory_space<vmem>>, %arg3: memref<1x128x512xf32, #tpu.memory_space<vmem>>, %arg4: memref<1x1x512xf32, #tpu.memory_space<vmem>>, %arg5: memref<1x2x16x128xf32, #tpu.memory_space<vmem>>, %arg6: memref<2x16x512xf32, #tpu.memory_space<vmem>>) attributes {dimension_semantics = [#tpu.dimension_semantics<parallel>], iteration_bounds = array<i64: 2>, scalar_prefetch = 0 : i64, scratch_operands = 1 : i64, tpu.core_type = #tpu.core_type<tc>, window_params = [{pipeline_mode = #tpu.pipeline_mode<synchronous>, transform_indices = @transform_0, window_bounds = array<i64: 2, 16, 128>}, {transform_indices = @transform_1, window_bounds = array<i64: 1, 128, 512>}, {transform_indices = @transform_2, window_bounds = array<i64: 1, 128, 512>}, {transform_indices = @transform_3, window_bounds = array<i64: 1, 1, 512>}, {transform_indices = @transform_4, window_bounds = array<i64: 1, 2, 16, 128>}]} {
    %c0 = arith.constant 0 : index
    %c0_0 = arith.constant 0 : index
    %c0_1 = arith.constant 0 : index
    %0 = vector.load %arg1[%c0, %c0_0, %c0_1] : memref<2x16x128xf32, #tpu.memory_space<vmem>>, vector<2x16x128xf32>
    %1 = vector.shape_cast %0 : vector<2x16x128xf32> to vector<32x128xf32>
    %c0_2 = arith.constant 0 : index
    %c0_3 = arith.constant 0 : index
    %c0_4 = arith.constant 0 : index
    %2 = vector.load %arg2[%c0_2, %c0_3, %c0_4] : memref<1x128x512xf32, #tpu.memory_space<vmem>>, vector<1x128x512xf32>
    %3 = vector.shape_cast %2 : vector<1x128x512xf32> to vector<128x512xf32>
    %cst = arith.constant dense<0.000000e+00> : vector<32x512xf32>
    %4 = tpu.matmul %1, %3, %cst {dimension_numbers = #tpu.dot_dimension_numbers<[1], [0], [0], [1], [0, 0, 1, 1], [], []>} : vector<32x128xf32>, vector<128x512xf32>, vector<32x512xf32> -> vector<32x512xf32>
    %c0_5 = arith.constant 0 : index
    %c0_6 = arith.constant 0 : index
    %c0_7 = arith.constant 0 : index
    %5 = vector.load %arg4[%c0_5, %c0_6, %c0_7] : memref<1x1x512xf32, #tpu.memory_space<vmem>>, vector<1x1x512xf32>
    %6 = vector.shape_cast %5 : vector<1x1x512xf32> to vector<1x512xf32>
    %7 = vector.broadcast %6 : vector<1x512xf32> to vector<32x512xf32>
    %8 = arith.addf %4, %7 : vector<32x512xf32>
    %9 = vector.shape_cast %8 : vector<32x512xf32> to vector<2x16x512xf32>
    %c0_8 = arith.constant 0 : index
    %c0_9 = arith.constant 0 : index
    %c0_10 = arith.constant 0 : index
    %10 = vector.load %arg6[%c0_8, %c0_9, %c0_10] : memref<2x16x512xf32, #tpu.memory_space<vmem>>, vector<2x16x512xf32>
    tpu.vector_store %arg6[%c0_8, %c0_9, %c0_10], %9 {strides = array<i32>} : memref<2x16x512xf32, #tpu.memory_space<vmem>>, vector<2x16x512xf32>,
    %cst_11 = arith.constant 0.000000e+00 : f32
    %11 = vector.broadcast %cst_11 : f32 to vector<16x128xf32>
    %cst_12 = arith.constant 0.000000e+00 : f32
    %12 = vector.broadcast %cst_12 : f32 to vector<16x128xf32>
    %c1_i32 = arith.constant 1 : i32
    %13 = arith.muli %arg0, %c1_i32 : i32
    %c0_i32 = arith.constant 0 : i32
    %14 = arith.addi %c0_i32, %13 : i32
    %15 = arith.index_cast %14 : i32 to index
    %c0_13 = arith.constant 0 : index
    %c0_14 = arith.constant 0 : index
    %16 = vector.load %arg6[%15, %c0_13, %c0_14] : memref<2x16x512xf32, #tpu.memory_space<vmem>>, vector<1x16x512xf32>
    %17 = vector.shape_cast %16 : vector<1x16x512xf32> to vector<16x512xf32>
    %c0_15 = arith.constant 0 : index
    %c0_16 = arith.constant 0 : index
    %c0_17 = arith.constant 0 : index
    %18 = vector.load %arg3[%c0_15, %c0_16, %c0_17] : memref<1x128x512xf32, #tpu.memory_space<vmem>>, vector<1x128x512xf32>
    %19 = vector.shape_cast %18 : vector<1x128x512xf32> to vector<128x512xf32>
    %cst_18 = arith.constant dense<0.000000e+00> : vector<16x512xf32>
    %20 = tpu.matmul %11, %19, %cst_18 {dimension_numbers = #tpu.dot_dimension_numbers<[1], [0], [0], [1], [0, 0, 1, 1], [], []>} : vector<16x128xf32>, vector<128x512xf32>, vector<16x512xf32> -> vector<16x512xf32>
    %21 = arith.addf %17, %20 : vector<16x512xf32>
    %22 = vector.extract_strided_slice %21 {offsets = [0, 0], sizes = [16, 128], strides = [1, 1]} : vector<16x512xf32> to vector<16x128xf32>
    %23 = arith.negf %22 : vector<16x128xf32>
    %24 = math.exp %23 : vector<16x128xf32>
    %cst_19 = arith.constant 1.000000e+00 : f32
    %25 = vector.broadcast %cst_19 : f32 to vector<16x128xf32>
    %26 = arith.addf %25, %24 : vector<16x128xf32>
    %27 = arith.divf %25, %26 : vector<16x128xf32>
    %28 = vector.extract_strided_slice %21 {offsets = [0, 128], sizes = [16, 128], strides = [1, 1]} : vector<16x512xf32> to vector<16x128xf32>
    %29 = arith.negf %28 : vector<16x128xf32>
    %30 = math.exp %29 : vector<16x128xf32>
    %cst_20 = arith.constant 1.000000e+00 : f32
    %31 = vector.broadcast %cst_20 : f32 to vector<16x128xf32>
    %32 = arith.addf %31, %30 : vector<16x128xf32>
    %33 = arith.divf %31, %32 : vector<16x128xf32>
    %34 = vector.extract_strided_slice %21 {offsets = [0, 256], sizes = [16, 128], strides = [1, 1]} : vector<16x512xf32> to vector<16x128xf32>
    %35 = math.tanh %34 : vector<16x128xf32>
    %36 = vector.extract_strided_slice %21 {offsets = [0, 384], sizes = [16, 128], strides = [1, 1]} : vector<16x512xf32> to vector<16x128xf32>
    %37 = arith.negf %36 : vector<16x128xf32>
    %38 = math.exp %37 : vector<16x128xf32>
    %cst_21 = arith.constant 1.000000e+00 : f32
    %39 = vector.broadcast %cst_21 : f32 to vector<16x128xf32>
    %40 = arith.addf %39, %38 : vector<16x128xf32>
    %41 = arith.divf %39, %40 : vector<16x128xf32>
    %42 = arith.mulf %33, %12 : vector<16x128xf32>
    %43 = arith.mulf %27, %35 : vector<16x128xf32>
    %44 = arith.addf %42, %43 : vector<16x128xf32>
    %45 = math.tanh %44 : vector<16x128xf32>
    %46 = arith.mulf %41, %45 : vector<16x128xf32>
    %c0_22 = arith.constant 0 : index
    %47 = arith.index_cast %14 : i32 to index
    %c0_23 = arith.constant 0 : index
    %c0_24 = arith.constant 0 : index
    %48 = vector.load %arg5[%c0_22, %47, %c0_23, %c0_24] : memref<1x2x16x128xf32, #tpu.memory_space<vmem>>, vector<1x1x16x128xf32>
    %49 = vector.shape_cast %48 : vector<1x1x16x128xf32> to vector<16x128xf32>
    %50 = vector.shape_cast %46 : vector<16x128xf32> to vector<1x1x16x128xf32>
    tpu.vector_store %arg5[%c0_22, %47, %c0_23, %c0_24], %50 {strides = array<i32>} : memref<1x2x16x128xf32, #tpu.memory_space<vmem>>, vector<1x1x16x128xf32>,
    %c-1_i32 = arith.constant -1 : i32
    %51 = arith.muli %arg0, %c-1_i32 : i32
    %c1_i32_25 = arith.constant 1 : i32
    %52 = arith.addi %c1_i32_25, %51 : i32
    %53 = arith.index_cast %52 : i32 to index
    %c0_26 = arith.constant 0 : index
    %c0_27 = arith.constant 0 : index
    %54 = vector.load %arg6[%53, %c0_26, %c0_27] : memref<2x16x512xf32, #tpu.memory_space<vmem>>, vector<1x16x512xf32>
    %55 = vector.shape_cast %54 : vector<1x16x512xf32> to vector<16x512xf32>
    %c0_28 = arith.constant 0 : index
    %c0_29 = arith.constant 0 : index
    %c0_30 = arith.constant 0 : index
    %56 = vector.load %arg3[%c0_28, %c0_29, %c0_30] : memref<1x128x512xf32, #tpu.memory_space<vmem>>, vector<1x128x512xf32>
    %57 = vector.shape_cast %56 : vector<1x128x512xf32> to vector<128x512xf32>
    %cst_31 = arith.constant dense<0.000000e+00> : vector<16x512xf32>
    %58 = tpu.matmul %46, %57, %cst_31 {dimension_numbers = #tpu.dot_dimension_numbers<[1], [0], [0], [1], [0, 0, 1, 1], [], []>} : vector<16x128xf32>, vector<128x512xf32>, vector<16x512xf32> -> vector<16x512xf32>
    %59 = arith.addf %55, %58 : vector<16x512xf32>
    %60 = vector.extract_strided_slice %59 {offsets = [0, 0], sizes = [16, 128], strides = [1, 1]} : vector<16x512xf32> to vector<16x128xf32>
    %61 = arith.negf %60 : vector<16x128xf32>
    %62 = math.exp %61 : vector<16x128xf32>
    %cst_32 = arith.constant 1.000000e+00 : f32
    %63 = vector.broadcast %cst_32 : f32 to vector<16x128xf32>
    %64 = arith.addf %63, %62 : vector<16x128xf32>
    %65 = arith.divf %63, %64 : vector<16x128xf32>
    %66 = vector.extract_strided_slice %59 {offsets = [0, 128], sizes = [16, 128], strides = [1, 1]} : vector<16x512xf32> to vector<16x128xf32>
    %67 = arith.negf %66 : vector<16x128xf32>
    %68 = math.exp %67 : vector<16x128xf32>
    %cst_33 = arith.constant 1.000000e+00 : f32
    %69 = vector.broadcast %cst_33 : f32 to vector<16x128xf32>
    %70 = arith.addf %69, %68 : vector<16x128xf32>
    %71 = arith.divf %69, %70 : vector<16x128xf32>
    %72 = vector.extract_strided_slice %59 {offsets = [0, 256], sizes = [16, 128], strides = [1, 1]} : vector<16x512xf32> to vector<16x128xf32>
    %73 = math.tanh %72 : vector<16x128xf32>
    %74 = vector.extract_strided_slice %59 {offsets = [0, 384], sizes = [16, 128], strides = [1, 1]} : vector<16x512xf32> to vector<16x128xf32>
    %75 = arith.negf %74 : vector<16x128xf32>
    %76 = math.exp %75 : vector<16x128xf32>
    %cst_34 = arith.constant 1.000000e+00 : f32
    %77 = vector.broadcast %cst_34 : f32 to vector<16x128xf32>
    %78 = arith.addf %77, %76 : vector<16x128xf32>
    %79 = arith.divf %77, %78 : vector<16x128xf32>
    %80 = arith.mulf %71, %44 : vector<16x128xf32>
    %81 = arith.mulf %65, %73 : vector<16x128xf32>
    %82 = arith.addf %80, %81 : vector<16x128xf32>
    %83 = math.tanh %82 : vector<16x128xf32>
    %84 = arith.mulf %79, %83 : vector<16x128xf32>
    %c0_35 = arith.constant 0 : index
    %85 = arith.index_cast %52 : i32 to index
    %c0_36 = arith.constant 0 : index
    %c0_37 = arith.constant 0 : index
    %86 = vector.load %arg5[%c0_35, %85, %c0_36, %c0_37] : memref<1x2x16x128xf32, #tpu.memory_space<vmem>>, vector<1x1x16x128xf32>
    %87 = vector.shape_cast %86 : vector<1x1x16x128xf32> to vector<16x128xf32>
    %88 = vector.shape_cast %84 : vector<16x128xf32> to vector<1x1x16x128xf32>
    tpu.vector_store %arg5[%c0_35, %85, %c0_36, %c0_37], %88 {strides = array<i32>} : memref<1x2x16x128xf32, #tpu.memory_space<vmem>>, vector<1x1x16x128xf32>,
    return
  }
  func.func @transform_0(%arg0: i32) -> (i32, i32, i32) {
    %c0_i32 = arith.constant 0 : i32
    %c0_i32_0 = arith.constant 0 : i32
    %c0_i32_1 = arith.constant 0 : i32
    %c0_i32_2 = arith.constant 0 : i32
    return %c0_i32, %c0_i32_0, %c0_i32_1 : i32, i32, i32
  }
  func.func @transform_1(%arg0: i32) -> (i32, i32, i32) {
    %c0_i32 = arith.constant 0 : i32
    %c0_i32_0 = arith.constant 0 : i32
    %c0_i32_1 = arith.constant 0 : i32
    return %arg0, %c0_i32, %c0_i32_0 : i32, i32, i32
  }
  func.func @transform_2(%arg0: i32) -> (i32, i32, i32) {
    %c0_i32 = arith.constant 0 : i32
    %c0_i32_0 = arith.constant 0 : i32
    %c0_i32_1 = arith.constant 0 : i32
    return %arg0, %c0_i32, %c0_i32_0 : i32, i32, i32
  }
  func.func @transform_3(%arg0: i32) -> (i32, i32, i32) {
    %c0_i32 = arith.constant 0 : i32
    %c0_i32_0 = arith.constant 0 : i32
    %c0_i32_1 = arith.constant 0 : i32
    return %arg0, %c0_i32, %c0_i32_0 : i32, i32, i32
  }
  func.func @transform_4(%arg0: i32) -> (i32, i32, i32, i32) {
    %c0_i32 = arith.constant 0 : i32
    %c0_i32_0 = arith.constant 0 : i32
    %c0_i32_1 = arith.constant 0 : i32
    %c0_i32_2 = arith.constant 0 : i32
    return %arg0, %c0_i32, %c0_i32_0, %c0_i32_1 : i32, i32, i32, i32
  }
}

module attributes {stable_mosaic.version = 11 : i64} {
  func.func @_attn_kernel(%arg0: i32, %arg1: memref<1x8x256xf32, #tpu.memory_space<vmem>>, %arg2: memref<1x8x256xf32, #tpu.memory_space<vmem>>, %arg3: memref<3x256xf32, #tpu.memory_space<vmem>>, %arg4: memref<1x8x256xf32, #tpu.memory_space<vmem>>, %arg5: memref<1x8x256xf32, #tpu.memory_space<vmem>>) attributes {dimension_semantics = [#tpu.dimension_semantics<parallel>], iteration_bounds = array<i64: 2>, scalar_prefetch = 0 : i64, scratch_operands = 0 : i64, tpu.core_type = #tpu.core_type<tc>, window_params = [{transform_indices = @transform_0, window_bounds = array<i64: 1, 8, 256>}, {transform_indices = @transform_1, window_bounds = array<i64: 1, 8, 256>}, {pipeline_mode = #tpu.pipeline_mode<synchronous>, transform_indices = @transform_2, window_bounds = array<i64: 3, 256>}, {transform_indices = @transform_3, window_bounds = array<i64: 1, 8, 256>}, {transform_indices = @transform_4, window_bounds = array<i64: 1, 8, 256>}]} {
    %c0 = arith.constant 0 : index
    %c0_0 = arith.constant 0 : index
    %c0_1 = arith.constant 0 : index
    %0 = vector.load %arg1[%c0, %c0_0, %c0_1] : memref<1x8x256xf32, #tpu.memory_space<vmem>>, vector<1x8x256xf32>
    %1 = vector.shape_cast %0 : vector<1x8x256xf32> to vector<8x256xf32>
    %c0_2 = arith.constant 0 : index
    %c0_3 = arith.constant 0 : index
    %c0_4 = arith.constant 0 : index
    %2 = vector.load %arg2[%c0_2, %c0_3, %c0_4] : memref<1x8x256xf32, #tpu.memory_space<vmem>>, vector<1x8x256xf32>
    %3 = vector.shape_cast %2 : vector<1x8x256xf32> to vector<8x256xf32>
    %c0_5 = arith.constant 0 : index
    %c0_6 = arith.constant 0 : index
    %4 = vector.load %arg3[%c0_5, %c0_6] : memref<3x256xf32, #tpu.memory_space<vmem>>, vector<1x256xf32>
    %c1 = arith.constant 1 : index
    %c0_7 = arith.constant 0 : index
    %5 = vector.load %arg3[%c1, %c0_7] : memref<3x256xf32, #tpu.memory_space<vmem>>, vector<1x256xf32>
    %c2 = arith.constant 2 : index
    %c0_8 = arith.constant 0 : index
    %6 = vector.load %arg3[%c2, %c0_8] : memref<3x256xf32, #tpu.memory_space<vmem>>, vector<1x256xf32>
    %7 = vector.broadcast %4 : vector<1x256xf32> to vector<8x256xf32>
    %8 = arith.mulf %1, %7 : vector<8x256xf32>
    %cst = arith.constant dense<0.000000e+00> : vector<8xf32>
    %9 = vector.multi_reduction <add>, %8, %cst [1] : vector<8x256xf32> to vector<8xf32>
    %10 = vector.shape_cast %9 : vector<8xf32> to vector<8x1xf32>
    %11 = vector.broadcast %6 : vector<1x256xf32> to vector<8x256xf32>
    %12 = arith.mulf %1, %11 : vector<8x256xf32>
    %13 = vector.broadcast %5 : vector<1x256xf32> to vector<8x256xf32>
    %14 = arith.addf %12, %13 : vector<8x256xf32>
    %cst_9 = arith.constant dense<0.000000e+00> : vector<8x8xf32>
    %15 = tpu.matmul %14, %3, %cst_9 {dimension_numbers = #tpu.dot_dimension_numbers<[1], [1], [0], [0], [0, 0, 1, 0], [], []>} : vector<8x256xf32>, vector<8x256xf32>, vector<8x8xf32> -> vector<8x8xf32>
    %16 = vector.broadcast %10 : vector<8x1xf32> to vector<8x8xf32>
    %17 = arith.addf %16, %15 : vector<8x8xf32>
    %cst_10 = arith.constant dense<0xFF800000> : vector<8xf32>
    %18 = vector.multi_reduction <maximumf>, %17, %cst_10 [1] : vector<8x8xf32> to vector<8xf32>
    %19 = vector.shape_cast %18 : vector<8xf32> to vector<8x1xf32>
    %20 = vector.broadcast %19 : vector<8x1xf32> to vector<8x8xf32>
    %21 = arith.subf %17, %20 : vector<8x8xf32>
    %22 = math.exp %21 : vector<8x8xf32>
    %cst_11 = arith.constant dense<0.000000e+00> : vector<8xf32>
    %23 = vector.multi_reduction <add>, %22, %cst_11 [1] : vector<8x8xf32> to vector<8xf32>
    %24 = vector.shape_cast %23 : vector<8xf32> to vector<8x1xf32>
    %25 = vector.broadcast %24 : vector<8x1xf32> to vector<8x8xf32>
    %26 = arith.divf %22, %25 : vector<8x8xf32>
    %cst_12 = arith.constant dense<0.000000e+00> : vector<8x256xf32>
    %27 = tpu.matmul %26, %3, %cst_12 {dimension_numbers = #tpu.dot_dimension_numbers<[1], [0], [0], [1], [0, 0, 1, 1], [], []>} : vector<8x8xf32>, vector<8x256xf32>, vector<8x256xf32> -> vector<8x256xf32>
    %c0_13 = arith.constant 0 : index
    %c0_14 = arith.constant 0 : index
    %c0_15 = arith.constant 0 : index
    %28 = vector.load %arg4[%c0_13, %c0_14, %c0_15] : memref<1x8x256xf32, #tpu.memory_space<vmem>>, vector<1x8x256xf32>
    %29 = vector.shape_cast %28 : vector<1x8x256xf32> to vector<8x256xf32>
    %30 = vector.shape_cast %27 : vector<8x256xf32> to vector<1x8x256xf32>
    tpu.vector_store %arg4[%c0_13, %c0_14, %c0_15], %30 {strides = array<i32>} : memref<1x8x256xf32, #tpu.memory_space<vmem>>, vector<1x8x256xf32>,
    %cst_16 = arith.constant dense<0.000000e+00> : vector<8x256xf32>
    %31 = tpu.matmul %26, %1, %cst_16 {dimension_numbers = #tpu.dot_dimension_numbers<[1], [0], [0], [1], [0, 0, 1, 1], [], []>} : vector<8x8xf32>, vector<8x256xf32>, vector<8x256xf32> -> vector<8x256xf32>
    %c0_17 = arith.constant 0 : index
    %c0_18 = arith.constant 0 : index
    %c0_19 = arith.constant 0 : index
    %32 = vector.load %arg5[%c0_17, %c0_18, %c0_19] : memref<1x8x256xf32, #tpu.memory_space<vmem>>, vector<1x8x256xf32>
    %33 = vector.shape_cast %32 : vector<1x8x256xf32> to vector<8x256xf32>
    %34 = vector.shape_cast %31 : vector<8x256xf32> to vector<1x8x256xf32>
    tpu.vector_store %arg5[%c0_17, %c0_18, %c0_19], %34 {strides = array<i32>} : memref<1x8x256xf32, #tpu.memory_space<vmem>>, vector<1x8x256xf32>,
    return
  }
  func.func @transform_0(%arg0: i32) -> (i32, i32, i32) {
    %c0_i32 = arith.constant 0 : i32
    %c0_i32_0 = arith.constant 0 : i32
    %c0_i32_1 = arith.constant 0 : i32
    return %arg0, %c0_i32, %c0_i32_0 : i32, i32, i32
  }
  func.func @transform_1(%arg0: i32) -> (i32, i32, i32) {
    %c0_i32 = arith.constant 0 : i32
    %c0_i32_0 = arith.constant 0 : i32
    %c0_i32_1 = arith.constant 0 : i32
    return %arg0, %c0_i32, %c0_i32_0 : i32, i32, i32
  }
  func.func @transform_2(%arg0: i32) -> (i32, i32) {
    %c0_i32 = arith.constant 0 : i32
    %c0_i32_0 = arith.constant 0 : i32
    %c0_i32_1 = arith.constant 0 : i32
    return %c0_i32, %c0_i32_0 : i32, i32
  }
  func.func @transform_3(%arg0: i32) -> (i32, i32, i32) {
    %c0_i32 = arith.constant 0 : i32
    %c0_i32_0 = arith.constant 0 : i32
    %c0_i32_1 = arith.constant 0 : i32
    return %arg0, %c0_i32, %c0_i32_0 : i32, i32, i32
  }
  func.func @transform_4(%arg0: i32) -> (i32, i32, i32) {
    %c0_i32 = arith.constant 0 : i32
    %c0_i32_0 = arith.constant 0 : i32
    %c0_i32_1 = arith.constant 0 : i32
    return %arg0, %c0_i32, %c0_i32_0 : i32, i32, i32
  }
}

module attributes {stable_mosaic.version = 11 : i64} {
  func.func @_bilstm_last_kernel(%arg0: i32, %arg1: memref<8x8x1024xf32, #tpu.memory_space<vmem>>, %arg2: memref<1x1024x512xf32, #tpu.memory_space<vmem>>, %arg3: memref<1x128x512xf32, #tpu.memory_space<vmem>>, %arg4: memref<1x1x512xf32, #tpu.memory_space<vmem>>, %arg5: memref<1x8x128xf32, #tpu.memory_space<vmem>>, %arg6: memref<8x8x512xf32, #tpu.memory_space<vmem>>) attributes {dimension_semantics = [#tpu.dimension_semantics<parallel>], iteration_bounds = array<i64: 2>, scalar_prefetch = 0 : i64, scratch_operands = 1 : i64, tpu.core_type = #tpu.core_type<tc>, window_params = [{pipeline_mode = #tpu.pipeline_mode<synchronous>, transform_indices = @transform_0, window_bounds = array<i64: 8, 8, 1024>}, {transform_indices = @transform_1, window_bounds = array<i64: 1, 1024, 512>}, {transform_indices = @transform_2, window_bounds = array<i64: 1, 128, 512>}, {transform_indices = @transform_3, window_bounds = array<i64: 1, 1, 512>}, {transform_indices = @transform_4, window_bounds = array<i64: 1, 8, 128>}]} {
    %c0 = arith.constant 0 : index
    %c0_0 = arith.constant 0 : index
    %c0_1 = arith.constant 0 : index
    %0 = vector.load %arg1[%c0, %c0_0, %c0_1] : memref<8x8x1024xf32, #tpu.memory_space<vmem>>, vector<8x8x1024xf32>
    %1 = vector.shape_cast %0 : vector<8x8x1024xf32> to vector<64x1024xf32>
    %c0_2 = arith.constant 0 : index
    %c0_3 = arith.constant 0 : index
    %c0_4 = arith.constant 0 : index
    %2 = vector.load %arg2[%c0_2, %c0_3, %c0_4] : memref<1x1024x512xf32, #tpu.memory_space<vmem>>, vector<1x1024x512xf32>
    %3 = vector.shape_cast %2 : vector<1x1024x512xf32> to vector<1024x512xf32>
    %cst = arith.constant dense<0.000000e+00> : vector<64x512xf32>
    %4 = tpu.matmul %1, %3, %cst {dimension_numbers = #tpu.dot_dimension_numbers<[1], [0], [0], [1], [0, 0, 1, 1], [], []>} : vector<64x1024xf32>, vector<1024x512xf32>, vector<64x512xf32> -> vector<64x512xf32>
    %c0_5 = arith.constant 0 : index
    %c0_6 = arith.constant 0 : index
    %c0_7 = arith.constant 0 : index
    %5 = vector.load %arg4[%c0_5, %c0_6, %c0_7] : memref<1x1x512xf32, #tpu.memory_space<vmem>>, vector<1x1x512xf32>
    %6 = vector.shape_cast %5 : vector<1x1x512xf32> to vector<1x512xf32>
    %7 = vector.broadcast %6 : vector<1x512xf32> to vector<64x512xf32>
    %8 = arith.addf %4, %7 : vector<64x512xf32>
    %9 = vector.shape_cast %8 : vector<64x512xf32> to vector<8x8x512xf32>
    %c0_8 = arith.constant 0 : index
    %c0_9 = arith.constant 0 : index
    %c0_10 = arith.constant 0 : index
    %10 = vector.load %arg6[%c0_8, %c0_9, %c0_10] : memref<8x8x512xf32, #tpu.memory_space<vmem>>, vector<8x8x512xf32>
    tpu.vector_store %arg6[%c0_8, %c0_9, %c0_10], %9 {strides = array<i32>} : memref<8x8x512xf32, #tpu.memory_space<vmem>>, vector<8x8x512xf32>,
    %cst_11 = arith.constant 0.000000e+00 : f32
    %11 = vector.broadcast %cst_11 : f32 to vector<8x128xf32>
    %cst_12 = arith.constant 0.000000e+00 : f32
    %12 = vector.broadcast %cst_12 : f32 to vector<8x128xf32>
    %c7_i32 = arith.constant 7 : i32
    %13 = arith.muli %arg0, %c7_i32 : i32
    %c0_i32 = arith.constant 0 : i32
    %14 = arith.addi %c0_i32, %13 : i32
    %15 = arith.index_cast %14 : i32 to index
    %c0_13 = arith.constant 0 : index
    %c0_14 = arith.constant 0 : index
    %16 = vector.load %arg6[%15, %c0_13, %c0_14] : memref<8x8x512xf32, #tpu.memory_space<vmem>>, vector<1x8x512xf32>
    %17 = vector.shape_cast %16 : vector<1x8x512xf32> to vector<8x512xf32>
    %c0_15 = arith.constant 0 : index
    %c0_16 = arith.constant 0 : index
    %c0_17 = arith.constant 0 : index
    %18 = vector.load %arg3[%c0_15, %c0_16, %c0_17] : memref<1x128x512xf32, #tpu.memory_space<vmem>>, vector<1x128x512xf32>
    %19 = vector.shape_cast %18 : vector<1x128x512xf32> to vector<128x512xf32>
    %cst_18 = arith.constant dense<0.000000e+00> : vector<8x512xf32>
    %20 = tpu.matmul %11, %19, %cst_18 {dimension_numbers = #tpu.dot_dimension_numbers<[1], [0], [0], [1], [0, 0, 1, 1], [], []>} : vector<8x128xf32>, vector<128x512xf32>, vector<8x512xf32> -> vector<8x512xf32>
    %21 = arith.addf %17, %20 : vector<8x512xf32>
    %22 = vector.extract_strided_slice %21 {offsets = [0, 0], sizes = [8, 128], strides = [1, 1]} : vector<8x512xf32> to vector<8x128xf32>
    %23 = arith.negf %22 : vector<8x128xf32>
    %24 = math.exp %23 : vector<8x128xf32>
    %cst_19 = arith.constant 1.000000e+00 : f32
    %25 = vector.broadcast %cst_19 : f32 to vector<8x128xf32>
    %26 = arith.addf %25, %24 : vector<8x128xf32>
    %27 = arith.divf %25, %26 : vector<8x128xf32>
    %28 = vector.extract_strided_slice %21 {offsets = [0, 128], sizes = [8, 128], strides = [1, 1]} : vector<8x512xf32> to vector<8x128xf32>
    %29 = arith.negf %28 : vector<8x128xf32>
    %30 = math.exp %29 : vector<8x128xf32>
    %cst_20 = arith.constant 1.000000e+00 : f32
    %31 = vector.broadcast %cst_20 : f32 to vector<8x128xf32>
    %32 = arith.addf %31, %30 : vector<8x128xf32>
    %33 = arith.divf %31, %32 : vector<8x128xf32>
    %34 = vector.extract_strided_slice %21 {offsets = [0, 256], sizes = [8, 128], strides = [1, 1]} : vector<8x512xf32> to vector<8x128xf32>
    %35 = math.tanh %34 : vector<8x128xf32>
    %36 = vector.extract_strided_slice %21 {offsets = [0, 384], sizes = [8, 128], strides = [1, 1]} : vector<8x512xf32> to vector<8x128xf32>
    %37 = arith.negf %36 : vector<8x128xf32>
    %38 = math.exp %37 : vector<8x128xf32>
    %cst_21 = arith.constant 1.000000e+00 : f32
    %39 = vector.broadcast %cst_21 : f32 to vector<8x128xf32>
    %40 = arith.addf %39, %38 : vector<8x128xf32>
    %41 = arith.divf %39, %40 : vector<8x128xf32>
    %42 = arith.mulf %33, %12 : vector<8x128xf32>
    %43 = arith.mulf %27, %35 : vector<8x128xf32>
    %44 = arith.addf %42, %43 : vector<8x128xf32>
    %45 = math.tanh %44 : vector<8x128xf32>
    %46 = arith.mulf %41, %45 : vector<8x128xf32>
    %c5_i32 = arith.constant 5 : i32
    %47 = arith.muli %arg0, %c5_i32 : i32
    %c1_i32 = arith.constant 1 : i32
    %48 = arith.addi %c1_i32, %47 : i32
    %49 = arith.index_cast %48 : i32 to index
    %c0_22 = arith.constant 0 : index
    %c0_23 = arith.constant 0 : index
    %50 = vector.load %arg6[%49, %c0_22, %c0_23] : memref<8x8x512xf32, #tpu.memory_space<vmem>>, vector<1x8x512xf32>
    %51 = vector.shape_cast %50 : vector<1x8x512xf32> to vector<8x512xf32>
    %c0_24 = arith.constant 0 : index
    %c0_25 = arith.constant 0 : index
    %c0_26 = arith.constant 0 : index
    %52 = vector.load %arg3[%c0_24, %c0_25, %c0_26] : memref<1x128x512xf32, #tpu.memory_space<vmem>>, vector<1x128x512xf32>
    %53 = vector.shape_cast %52 : vector<1x128x512xf32> to vector<128x512xf32>
    %cst_27 = arith.constant dense<0.000000e+00> : vector<8x512xf32>
    %54 = tpu.matmul %46, %53, %cst_27 {dimension_numbers = #tpu.dot_dimension_numbers<[1], [0], [0], [1], [0, 0, 1, 1], [], []>} : vector<8x128xf32>, vector<128x512xf32>, vector<8x512xf32> -> vector<8x512xf32>
    %55 = arith.addf %51, %54 : vector<8x512xf32>
    %56 = vector.extract_strided_slice %55 {offsets = [0, 0], sizes = [8, 128], strides = [1, 1]} : vector<8x512xf32> to vector<8x128xf32>
    %57 = arith.negf %56 : vector<8x128xf32>
    %58 = math.exp %57 : vector<8x128xf32>
    %cst_28 = arith.constant 1.000000e+00 : f32
    %59 = vector.broadcast %cst_28 : f32 to vector<8x128xf32>
    %60 = arith.addf %59, %58 : vector<8x128xf32>
    %61 = arith.divf %59, %60 : vector<8x128xf32>
    %62 = vector.extract_strided_slice %55 {offsets = [0, 128], sizes = [8, 128], strides = [1, 1]} : vector<8x512xf32> to vector<8x128xf32>
    %63 = arith.negf %62 : vector<8x128xf32>
    %64 = math.exp %63 : vector<8x128xf32>
    %cst_29 = arith.constant 1.000000e+00 : f32
    %65 = vector.broadcast %cst_29 : f32 to vector<8x128xf32>
    %66 = arith.addf %65, %64 : vector<8x128xf32>
    %67 = arith.divf %65, %66 : vector<8x128xf32>
    %68 = vector.extract_strided_slice %55 {offsets = [0, 256], sizes = [8, 128], strides = [1, 1]} : vector<8x512xf32> to vector<8x128xf32>
    %69 = math.tanh %68 : vector<8x128xf32>
    %70 = vector.extract_strided_slice %55 {offsets = [0, 384], sizes = [8, 128], strides = [1, 1]} : vector<8x512xf32> to vector<8x128xf32>
    %71 = arith.negf %70 : vector<8x128xf32>
    %72 = math.exp %71 : vector<8x128xf32>
    %cst_30 = arith.constant 1.000000e+00 : f32
    %73 = vector.broadcast %cst_30 : f32 to vector<8x128xf32>
    %74 = arith.addf %73, %72 : vector<8x128xf32>
    %75 = arith.divf %73, %74 : vector<8x128xf32>
    %76 = arith.mulf %67, %44 : vector<8x128xf32>
    %77 = arith.mulf %61, %69 : vector<8x128xf32>
    %78 = arith.addf %76, %77 : vector<8x128xf32>
    %79 = math.tanh %78 : vector<8x128xf32>
    %80 = arith.mulf %75, %79 : vector<8x128xf32>
    %c3_i32 = arith.constant 3 : i32
    %81 = arith.muli %arg0, %c3_i32 : i32
    %c2_i32 = arith.constant 2 : i32
    %82 = arith.addi %c2_i32, %81 : i32
    %83 = arith.index_cast %82 : i32 to index
    %c0_31 = arith.constant 0 : index
    %c0_32 = arith.constant 0 : index
    %84 = vector.load %arg6[%83, %c0_31, %c0_32] : memref<8x8x512xf32, #tpu.memory_space<vmem>>, vector<1x8x512xf32>
    %85 = vector.shape_cast %84 : vector<1x8x512xf32> to vector<8x512xf32>
    %c0_33 = arith.constant 0 : index
    %c0_34 = arith.constant 0 : index
    %c0_35 = arith.constant 0 : index
    %86 = vector.load %arg3[%c0_33, %c0_34, %c0_35] : memref<1x128x512xf32, #tpu.memory_space<vmem>>, vector<1x128x512xf32>
    %87 = vector.shape_cast %86 : vector<1x128x512xf32> to vector<128x512xf32>
    %cst_36 = arith.constant dense<0.000000e+00> : vector<8x512xf32>
    %88 = tpu.matmul %80, %87, %cst_36 {dimension_numbers = #tpu.dot_dimension_numbers<[1], [0], [0], [1], [0, 0, 1, 1], [], []>} : vector<8x128xf32>, vector<128x512xf32>, vector<8x512xf32> -> vector<8x512xf32>
    %89 = arith.addf %85, %88 : vector<8x512xf32>
    %90 = vector.extract_strided_slice %89 {offsets = [0, 0], sizes = [8, 128], strides = [1, 1]} : vector<8x512xf32> to vector<8x128xf32>
    %91 = arith.negf %90 : vector<8x128xf32>
    %92 = math.exp %91 : vector<8x128xf32>
    %cst_37 = arith.constant 1.000000e+00 : f32
    %93 = vector.broadcast %cst_37 : f32 to vector<8x128xf32>
    %94 = arith.addf %93, %92 : vector<8x128xf32>
    %95 = arith.divf %93, %94 : vector<8x128xf32>
    %96 = vector.extract_strided_slice %89 {offsets = [0, 128], sizes = [8, 128], strides = [1, 1]} : vector<8x512xf32> to vector<8x128xf32>
    %97 = arith.negf %96 : vector<8x128xf32>
    %98 = math.exp %97 : vector<8x128xf32>
    %cst_38 = arith.constant 1.000000e+00 : f32
    %99 = vector.broadcast %cst_38 : f32 to vector<8x128xf32>
    %100 = arith.addf %99, %98 : vector<8x128xf32>
    %101 = arith.divf %99, %100 : vector<8x128xf32>
    %102 = vector.extract_strided_slice %89 {offsets = [0, 256], sizes = [8, 128], strides = [1, 1]} : vector<8x512xf32> to vector<8x128xf32>
    %103 = math.tanh %102 : vector<8x128xf32>
    %104 = vector.extract_strided_slice %89 {offsets = [0, 384], sizes = [8, 128], strides = [1, 1]} : vector<8x512xf32> to vector<8x128xf32>
    %105 = arith.negf %104 : vector<8x128xf32>
    %106 = math.exp %105 : vector<8x128xf32>
    %cst_39 = arith.constant 1.000000e+00 : f32
    %107 = vector.broadcast %cst_39 : f32 to vector<8x128xf32>
    %108 = arith.addf %107, %106 : vector<8x128xf32>
    %109 = arith.divf %107, %108 : vector<8x128xf32>
    %110 = arith.mulf %101, %78 : vector<8x128xf32>
    %111 = arith.mulf %95, %103 : vector<8x128xf32>
    %112 = arith.addf %110, %111 : vector<8x128xf32>
    %113 = math.tanh %112 : vector<8x128xf32>
    %114 = arith.mulf %109, %113 : vector<8x128xf32>
    %c1_i32_40 = arith.constant 1 : i32
    %115 = arith.muli %arg0, %c1_i32_40 : i32
    %c3_i32_41 = arith.constant 3 : i32
    %116 = arith.addi %c3_i32_41, %115 : i32
    %117 = arith.index_cast %116 : i32 to index
    %c0_42 = arith.constant 0 : index
    %c0_43 = arith.constant 0 : index
    %118 = vector.load %arg6[%117, %c0_42, %c0_43] : memref<8x8x512xf32, #tpu.memory_space<vmem>>, vector<1x8x512xf32>
    %119 = vector.shape_cast %118 : vector<1x8x512xf32> to vector<8x512xf32>
    %c0_44 = arith.constant 0 : index
    %c0_45 = arith.constant 0 : index
    %c0_46 = arith.constant 0 : index
    %120 = vector.load %arg3[%c0_44, %c0_45, %c0_46] : memref<1x128x512xf32, #tpu.memory_space<vmem>>, vector<1x128x512xf32>
    %121 = vector.shape_cast %120 : vector<1x128x512xf32> to vector<128x512xf32>
    %cst_47 = arith.constant dense<0.000000e+00> : vector<8x512xf32>
    %122 = tpu.matmul %114, %121, %cst_47 {dimension_numbers = #tpu.dot_dimension_numbers<[1], [0], [0], [1], [0, 0, 1, 1], [], []>} : vector<8x128xf32>, vector<128x512xf32>, vector<8x512xf32> -> vector<8x512xf32>
    %123 = arith.addf %119, %122 : vector<8x512xf32>
    %124 = vector.extract_strided_slice %123 {offsets = [0, 0], sizes = [8, 128], strides = [1, 1]} : vector<8x512xf32> to vector<8x128xf32>
    %125 = arith.negf %124 : vector<8x128xf32>
    %126 = math.exp %125 : vector<8x128xf32>
    %cst_48 = arith.constant 1.000000e+00 : f32
    %127 = vector.broadcast %cst_48 : f32 to vector<8x128xf32>
    %128 = arith.addf %127, %126 : vector<8x128xf32>
    %129 = arith.divf %127, %128 : vector<8x128xf32>
    %130 = vector.extract_strided_slice %123 {offsets = [0, 128], sizes = [8, 128], strides = [1, 1]} : vector<8x512xf32> to vector<8x128xf32>
    %131 = arith.negf %130 : vector<8x128xf32>
    %132 = math.exp %131 : vector<8x128xf32>
    %cst_49 = arith.constant 1.000000e+00 : f32
    %133 = vector.broadcast %cst_49 : f32 to vector<8x128xf32>
    %134 = arith.addf %133, %132 : vector<8x128xf32>
    %135 = arith.divf %133, %134 : vector<8x128xf32>
    %136 = vector.extract_strided_slice %123 {offsets = [0, 256], sizes = [8, 128], strides = [1, 1]} : vector<8x512xf32> to vector<8x128xf32>
    %137 = math.tanh %136 : vector<8x128xf32>
    %138 = vector.extract_strided_slice %123 {offsets = [0, 384], sizes = [8, 128], strides = [1, 1]} : vector<8x512xf32> to vector<8x128xf32>
    %139 = arith.negf %138 : vector<8x128xf32>
    %140 = math.exp %139 : vector<8x128xf32>
    %cst_50 = arith.constant 1.000000e+00 : f32
    %141 = vector.broadcast %cst_50 : f32 to vector<8x128xf32>
    %142 = arith.addf %141, %140 : vector<8x128xf32>
    %143 = arith.divf %141, %142 : vector<8x128xf32>
    %144 = arith.mulf %135, %112 : vector<8x128xf32>
    %145 = arith.mulf %129, %137 : vector<8x128xf32>
    %146 = arith.addf %144, %145 : vector<8x128xf32>
    %147 = math.tanh %146 : vector<8x128xf32>
    %148 = arith.mulf %143, %147 : vector<8x128xf32>
    %c-1_i32 = arith.constant -1 : i32
    %149 = arith.muli %arg0, %c-1_i32 : i32
    %c4_i32 = arith.constant 4 : i32
    %150 = arith.addi %c4_i32, %149 : i32
    %151 = arith.index_cast %150 : i32 to index
    %c0_51 = arith.constant 0 : index
    %c0_52 = arith.constant 0 : index
    %152 = vector.load %arg6[%151, %c0_51, %c0_52] : memref<8x8x512xf32, #tpu.memory_space<vmem>>, vector<1x8x512xf32>
    %153 = vector.shape_cast %152 : vector<1x8x512xf32> to vector<8x512xf32>
    %c0_53 = arith.constant 0 : index
    %c0_54 = arith.constant 0 : index
    %c0_55 = arith.constant 0 : index
    %154 = vector.load %arg3[%c0_53, %c0_54, %c0_55] : memref<1x128x512xf32, #tpu.memory_space<vmem>>, vector<1x128x512xf32>
    %155 = vector.shape_cast %154 : vector<1x128x512xf32> to vector<128x512xf32>
    %cst_56 = arith.constant dense<0.000000e+00> : vector<8x512xf32>
    %156 = tpu.matmul %148, %155, %cst_56 {dimension_numbers = #tpu.dot_dimension_numbers<[1], [0], [0], [1], [0, 0, 1, 1], [], []>} : vector<8x128xf32>, vector<128x512xf32>, vector<8x512xf32> -> vector<8x512xf32>
    %157 = arith.addf %153, %156 : vector<8x512xf32>
    %158 = vector.extract_strided_slice %157 {offsets = [0, 0], sizes = [8, 128], strides = [1, 1]} : vector<8x512xf32> to vector<8x128xf32>
    %159 = arith.negf %158 : vector<8x128xf32>
    %160 = math.exp %159 : vector<8x128xf32>
    %cst_57 = arith.constant 1.000000e+00 : f32
    %161 = vector.broadcast %cst_57 : f32 to vector<8x128xf32>
    %162 = arith.addf %161, %160 : vector<8x128xf32>
    %163 = arith.divf %161, %162 : vector<8x128xf32>
    %164 = vector.extract_strided_slice %157 {offsets = [0, 128], sizes = [8, 128], strides = [1, 1]} : vector<8x512xf32> to vector<8x128xf32>
    %165 = arith.negf %164 : vector<8x128xf32>
    %166 = math.exp %165 : vector<8x128xf32>
    %cst_58 = arith.constant 1.000000e+00 : f32
    %167 = vector.broadcast %cst_58 : f32 to vector<8x128xf32>
    %168 = arith.addf %167, %166 : vector<8x128xf32>
    %169 = arith.divf %167, %168 : vector<8x128xf32>
    %170 = vector.extract_strided_slice %157 {offsets = [0, 256], sizes = [8, 128], strides = [1, 1]} : vector<8x512xf32> to vector<8x128xf32>
    %171 = math.tanh %170 : vector<8x128xf32>
    %172 = vector.extract_strided_slice %157 {offsets = [0, 384], sizes = [8, 128], strides = [1, 1]} : vector<8x512xf32> to vector<8x128xf32>
    %173 = arith.negf %172 : vector<8x128xf32>
    %174 = math.exp %173 : vector<8x128xf32>
    %cst_59 = arith.constant 1.000000e+00 : f32
    %175 = vector.broadcast %cst_59 : f32 to vector<8x128xf32>
    %176 = arith.addf %175, %174 : vector<8x128xf32>
    %177 = arith.divf %175, %176 : vector<8x128xf32>
    %178 = arith.mulf %169, %146 : vector<8x128xf32>
    %179 = arith.mulf %163, %171 : vector<8x128xf32>
    %180 = arith.addf %178, %179 : vector<8x128xf32>
    %181 = math.tanh %180 : vector<8x128xf32>
    %182 = arith.mulf %177, %181 : vector<8x128xf32>
    %c-3_i32 = arith.constant -3 : i32
    %183 = arith.muli %arg0, %c-3_i32 : i32
    %c5_i32_60 = arith.constant 5 : i32
    %184 = arith.addi %c5_i32_60, %183 : i32
    %185 = arith.index_cast %184 : i32 to index
    %c0_61 = arith.constant 0 : index
    %c0_62 = arith.constant 0 : index
    %186 = vector.load %arg6[%185, %c0_61, %c0_62] : memref<8x8x512xf32, #tpu.memory_space<vmem>>, vector<1x8x512xf32>
    %187 = vector.shape_cast %186 : vector<1x8x512xf32> to vector<8x512xf32>
    %c0_63 = arith.constant 0 : index
    %c0_64 = arith.constant 0 : index
    %c0_65 = arith.constant 0 : index
    %188 = vector.load %arg3[%c0_63, %c0_64, %c0_65] : memref<1x128x512xf32, #tpu.memory_space<vmem>>, vector<1x128x512xf32>
    %189 = vector.shape_cast %188 : vector<1x128x512xf32> to vector<128x512xf32>
    %cst_66 = arith.constant dense<0.000000e+00> : vector<8x512xf32>
    %190 = tpu.matmul %182, %189, %cst_66 {dimension_numbers = #tpu.dot_dimension_numbers<[1], [0], [0], [1], [0, 0, 1, 1], [], []>} : vector<8x128xf32>, vector<128x512xf32>, vector<8x512xf32> -> vector<8x512xf32>
    %191 = arith.addf %187, %190 : vector<8x512xf32>
    %192 = vector.extract_strided_slice %191 {offsets = [0, 0], sizes = [8, 128], strides = [1, 1]} : vector<8x512xf32> to vector<8x128xf32>
    %193 = arith.negf %192 : vector<8x128xf32>
    %194 = math.exp %193 : vector<8x128xf32>
    %cst_67 = arith.constant 1.000000e+00 : f32
    %195 = vector.broadcast %cst_67 : f32 to vector<8x128xf32>
    %196 = arith.addf %195, %194 : vector<8x128xf32>
    %197 = arith.divf %195, %196 : vector<8x128xf32>
    %198 = vector.extract_strided_slice %191 {offsets = [0, 128], sizes = [8, 128], strides = [1, 1]} : vector<8x512xf32> to vector<8x128xf32>
    %199 = arith.negf %198 : vector<8x128xf32>
    %200 = math.exp %199 : vector<8x128xf32>
    %cst_68 = arith.constant 1.000000e+00 : f32
    %201 = vector.broadcast %cst_68 : f32 to vector<8x128xf32>
    %202 = arith.addf %201, %200 : vector<8x128xf32>
    %203 = arith.divf %201, %202 : vector<8x128xf32>
    %204 = vector.extract_strided_slice %191 {offsets = [0, 256], sizes = [8, 128], strides = [1, 1]} : vector<8x512xf32> to vector<8x128xf32>
    %205 = math.tanh %204 : vector<8x128xf32>
    %206 = vector.extract_strided_slice %191 {offsets = [0, 384], sizes = [8, 128], strides = [1, 1]} : vector<8x512xf32> to vector<8x128xf32>
    %207 = arith.negf %206 : vector<8x128xf32>
    %208 = math.exp %207 : vector<8x128xf32>
    %cst_69 = arith.constant 1.000000e+00 : f32
    %209 = vector.broadcast %cst_69 : f32 to vector<8x128xf32>
    %210 = arith.addf %209, %208 : vector<8x128xf32>
    %211 = arith.divf %209, %210 : vector<8x128xf32>
    %212 = arith.mulf %203, %180 : vector<8x128xf32>
    %213 = arith.mulf %197, %205 : vector<8x128xf32>
    %214 = arith.addf %212, %213 : vector<8x128xf32>
    %215 = math.tanh %214 : vector<8x128xf32>
    %216 = arith.mulf %211, %215 : vector<8x128xf32>
    %c-5_i32 = arith.constant -5 : i32
    %217 = arith.muli %arg0, %c-5_i32 : i32
    %c6_i32 = arith.constant 6 : i32
    %218 = arith.addi %c6_i32, %217 : i32
    %219 = arith.index_cast %218 : i32 to index
    %c0_70 = arith.constant 0 : index
    %c0_71 = arith.constant 0 : index
    %220 = vector.load %arg6[%219, %c0_70, %c0_71] : memref<8x8x512xf32, #tpu.memory_space<vmem>>, vector<1x8x512xf32>
    %221 = vector.shape_cast %220 : vector<1x8x512xf32> to vector<8x512xf32>
    %c0_72 = arith.constant 0 : index
    %c0_73 = arith.constant 0 : index
    %c0_74 = arith.constant 0 : index
    %222 = vector.load %arg3[%c0_72, %c0_73, %c0_74] : memref<1x128x512xf32, #tpu.memory_space<vmem>>, vector<1x128x512xf32>
    %223 = vector.shape_cast %222 : vector<1x128x512xf32> to vector<128x512xf32>
    %cst_75 = arith.constant dense<0.000000e+00> : vector<8x512xf32>
    %224 = tpu.matmul %216, %223, %cst_75 {dimension_numbers = #tpu.dot_dimension_numbers<[1], [0], [0], [1], [0, 0, 1, 1], [], []>} : vector<8x128xf32>, vector<128x512xf32>, vector<8x512xf32> -> vector<8x512xf32>
    %225 = arith.addf %221, %224 : vector<8x512xf32>
    %226 = vector.extract_strided_slice %225 {offsets = [0, 0], sizes = [8, 128], strides = [1, 1]} : vector<8x512xf32> to vector<8x128xf32>
    %227 = arith.negf %226 : vector<8x128xf32>
    %228 = math.exp %227 : vector<8x128xf32>
    %cst_76 = arith.constant 1.000000e+00 : f32
    %229 = vector.broadcast %cst_76 : f32 to vector<8x128xf32>
    %230 = arith.addf %229, %228 : vector<8x128xf32>
    %231 = arith.divf %229, %230 : vector<8x128xf32>
    %232 = vector.extract_strided_slice %225 {offsets = [0, 128], sizes = [8, 128], strides = [1, 1]} : vector<8x512xf32> to vector<8x128xf32>
    %233 = arith.negf %232 : vector<8x128xf32>
    %234 = math.exp %233 : vector<8x128xf32>
    %cst_77 = arith.constant 1.000000e+00 : f32
    %235 = vector.broadcast %cst_77 : f32 to vector<8x128xf32>
    %236 = arith.addf %235, %234 : vector<8x128xf32>
    %237 = arith.divf %235, %236 : vector<8x128xf32>
    %238 = vector.extract_strided_slice %225 {offsets = [0, 256], sizes = [8, 128], strides = [1, 1]} : vector<8x512xf32> to vector<8x128xf32>
    %239 = math.tanh %238 : vector<8x128xf32>
    %240 = vector.extract_strided_slice %225 {offsets = [0, 384], sizes = [8, 128], strides = [1, 1]} : vector<8x512xf32> to vector<8x128xf32>
    %241 = arith.negf %240 : vector<8x128xf32>
    %242 = math.exp %241 : vector<8x128xf32>
    %cst_78 = arith.constant 1.000000e+00 : f32
    %243 = vector.broadcast %cst_78 : f32 to vector<8x128xf32>
    %244 = arith.addf %243, %242 : vector<8x128xf32>
    %245 = arith.divf %243, %244 : vector<8x128xf32>
    %246 = arith.mulf %237, %214 : vector<8x128xf32>
    %247 = arith.mulf %231, %239 : vector<8x128xf32>
    %248 = arith.addf %246, %247 : vector<8x128xf32>
    %249 = math.tanh %248 : vector<8x128xf32>
    %250 = arith.mulf %245, %249 : vector<8x128xf32>
    %c-7_i32 = arith.constant -7 : i32
    %251 = arith.muli %arg0, %c-7_i32 : i32
    %c7_i32_79 = arith.constant 7 : i32
    %252 = arith.addi %c7_i32_79, %251 : i32
    %253 = arith.index_cast %252 : i32 to index
    %c0_80 = arith.constant 0 : index
    %c0_81 = arith.constant 0 : index
    %254 = vector.load %arg6[%253, %c0_80, %c0_81] : memref<8x8x512xf32, #tpu.memory_space<vmem>>, vector<1x8x512xf32>
    %255 = vector.shape_cast %254 : vector<1x8x512xf32> to vector<8x512xf32>
    %c0_82 = arith.constant 0 : index
    %c0_83 = arith.constant 0 : index
    %c0_84 = arith.constant 0 : index
    %256 = vector.load %arg3[%c0_82, %c0_83, %c0_84] : memref<1x128x512xf32, #tpu.memory_space<vmem>>, vector<1x128x512xf32>
    %257 = vector.shape_cast %256 : vector<1x128x512xf32> to vector<128x512xf32>
    %cst_85 = arith.constant dense<0.000000e+00> : vector<8x512xf32>
    %258 = tpu.matmul %250, %257, %cst_85 {dimension_numbers = #tpu.dot_dimension_numbers<[1], [0], [0], [1], [0, 0, 1, 1], [], []>} : vector<8x128xf32>, vector<128x512xf32>, vector<8x512xf32> -> vector<8x512xf32>
    %259 = arith.addf %255, %258 : vector<8x512xf32>
    %260 = vector.extract_strided_slice %259 {offsets = [0, 0], sizes = [8, 128], strides = [1, 1]} : vector<8x512xf32> to vector<8x128xf32>
    %261 = arith.negf %260 : vector<8x128xf32>
    %262 = math.exp %261 : vector<8x128xf32>
    %cst_86 = arith.constant 1.000000e+00 : f32
    %263 = vector.broadcast %cst_86 : f32 to vector<8x128xf32>
    %264 = arith.addf %263, %262 : vector<8x128xf32>
    %265 = arith.divf %263, %264 : vector<8x128xf32>
    %266 = vector.extract_strided_slice %259 {offsets = [0, 128], sizes = [8, 128], strides = [1, 1]} : vector<8x512xf32> to vector<8x128xf32>
    %267 = arith.negf %266 : vector<8x128xf32>
    %268 = math.exp %267 : vector<8x128xf32>
    %cst_87 = arith.constant 1.000000e+00 : f32
    %269 = vector.broadcast %cst_87 : f32 to vector<8x128xf32>
    %270 = arith.addf %269, %268 : vector<8x128xf32>
    %271 = arith.divf %269, %270 : vector<8x128xf32>
    %272 = vector.extract_strided_slice %259 {offsets = [0, 256], sizes = [8, 128], strides = [1, 1]} : vector<8x512xf32> to vector<8x128xf32>
    %273 = math.tanh %272 : vector<8x128xf32>
    %274 = vector.extract_strided_slice %259 {offsets = [0, 384], sizes = [8, 128], strides = [1, 1]} : vector<8x512xf32> to vector<8x128xf32>
    %275 = arith.negf %274 : vector<8x128xf32>
    %276 = math.exp %275 : vector<8x128xf32>
    %cst_88 = arith.constant 1.000000e+00 : f32
    %277 = vector.broadcast %cst_88 : f32 to vector<8x128xf32>
    %278 = arith.addf %277, %276 : vector<8x128xf32>
    %279 = arith.divf %277, %278 : vector<8x128xf32>
    %280 = arith.mulf %271, %248 : vector<8x128xf32>
    %281 = arith.mulf %265, %273 : vector<8x128xf32>
    %282 = arith.addf %280, %281 : vector<8x128xf32>
    %283 = math.tanh %282 : vector<8x128xf32>
    %284 = arith.mulf %279, %283 : vector<8x128xf32>
    %c0_89 = arith.constant 0 : index
    %c0_90 = arith.constant 0 : index
    %c0_91 = arith.constant 0 : index
    %285 = vector.load %arg5[%c0_89, %c0_90, %c0_91] : memref<1x8x128xf32, #tpu.memory_space<vmem>>, vector<1x8x128xf32>
    %286 = vector.shape_cast %285 : vector<1x8x128xf32> to vector<8x128xf32>
    %287 = vector.shape_cast %284 : vector<8x128xf32> to vector<1x8x128xf32>
    tpu.vector_store %arg5[%c0_89, %c0_90, %c0_91], %287 {strides = array<i32>} : memref<1x8x128xf32, #tpu.memory_space<vmem>>, vector<1x8x128xf32>,
    return
  }
  func.func @transform_0(%arg0: i32) -> (i32, i32, i32) {
    %c0_i32 = arith.constant 0 : i32
    %c0_i32_0 = arith.constant 0 : i32
    %c0_i32_1 = arith.constant 0 : i32
    %c0_i32_2 = arith.constant 0 : i32
    return %c0_i32, %c0_i32_0, %c0_i32_1 : i32, i32, i32
  }
  func.func @transform_1(%arg0: i32) -> (i32, i32, i32) {
    %c0_i32 = arith.constant 0 : i32
    %c0_i32_0 = arith.constant 0 : i32
    %c0_i32_1 = arith.constant 0 : i32
    return %arg0, %c0_i32, %c0_i32_0 : i32, i32, i32
  }
  func.func @transform_2(%arg0: i32) -> (i32, i32, i32) {
    %c0_i32 = arith.constant 0 : i32
    %c0_i32_0 = arith.constant 0 : i32
    %c0_i32_1 = arith.constant 0 : i32
    return %arg0, %c0_i32, %c0_i32_0 : i32, i32, i32
  }
  func.func @transform_3(%arg0: i32) -> (i32, i32, i32) {
    %c0_i32 = arith.constant 0 : i32
    %c0_i32_0 = arith.constant 0 : i32
    %c0_i32_1 = arith.constant 0 : i32
    return %arg0, %c0_i32, %c0_i32_0 : i32, i32, i32
  }
  func.func @transform_4(%arg0: i32) -> (i32, i32, i32) {
    %c0_i32 = arith.constant 0 : i32
    %c0_i32_0 = arith.constant 0 : i32
    %c0_i32_1 = arith.constant 0 : i32
    return %arg0, %c0_i32, %c0_i32_0 : i32, i32, i32
  }
}

</mosaic_0001>

<bundles_post_ra>
// kernel: _lambda_.5
= control target key start
LH: loop header
LB: loop body
LE: loop exit
PB: predicated region body
PF: predicated region fallthrough
CT: control target
= control target key end

     0   :  { %8 = vsyncpa [#allocation3], 0  ;;  %s317_s0 = inlined_call_operand.vmem [shape: f32[32,16], index: 0, kind: input, shape index: {}]   ;;  %s318_s1 = inlined_call_operand.hbm [shape: f32[16,64], index: 1, kind: input, shape index: {}]   ;;  %s319_s2 = inlined_call_operand.hbm [shape: f32[1,64], index: 2, kind: input, shape index: {}]   ;;  %s320_s3 = inlined_call_operand.vmem [shape: f32[32,64], index: 3, kind: output, shape index: {}]  }
   0x1   :  { %9 = vsyncpa [#allocation5], 0  ;;  %s245_s12 = smov [#allocation2]   ;;  %s197_s16 = scalar_lea.hbm %s318_s1, 256 }
   0x2   :  { %s17_s13 = sshll.u32 %s245_s12, 4  ;;  %p198_p0 = scmp.ne.s32.totalorder %s318_s1, %s197_s16  ;;  %s18_s13 = int_to_ptr.vmem [resolvable:$true] %s17_s13 }
   0x3   :  { %p201_p1 = scmp.lt.u32.totalorder %s197_s16, %s318_s1 }
   0x5   :  { %p203_p2 = pnand %p201_p1, %p198_p0 }
   0x7   :  { %206 = shalt.err (!%p203_p2)
}
   0x8   :  { %s207_s21 = scalar_lea.vmem %s18_s13, 256  ;;  %p212_p4 = scmp.lt.s32.totalorder %s18_s13, %s18_s13 }
   0x9   :  { %p208_p3 = scmp.ne.s32.totalorder %s18_s13, %s207_s21  ;;  %p213_p5 = scmp.lt.s32.totalorder %s207_s21, %s207_s21 }
   0xb   :  { %p214_p6 = por %p213_p5, %p212_p4 }
   0xd   :  { %p215_p7 = pnand %p214_p6, %p208_p3 }
   0xf   :  { %218 = shalt.err (!%p215_p7)
}
  0x10   :  { %s246_s22 = smov 128   ;;  %s247_s23 = smov 8  }
  0x11   :  { %23 = dma.hbm_to_vmem [thread:$0]  %s318_s1, 256, %s18_s13, [#allocation3], %s246_s22, %s246_s22, %s247_s23  }
  0x12   :  { %s248_s26 = smov [#allocation4]   ;;  %s219_s30 = scalar_lea.hbm %s319_s2, 16 }
  0x13   :  { %s30_s27 = sshll.u32 %s248_s26, 4  ;;  %p220_p8 = scmp.ne.s32.totalorder %s319_s2, %s219_s30  ;;  %s31_s27 = int_to_ptr.vmem [resolvable:$true] %s30_s27 }
  0x14   :  { %p223_p9 = scmp.lt.u32.totalorder %s219_s30, %s319_s2 }
  0x16   :  { %p225_p10 = pnand %p223_p9, %p220_p8 }
  0x18   :  { %228 = shalt.err (!%p225_p10)
}
  0x19   :  { %s229_s8 = scalar_lea.vmem %s31_s27, 16  ;;  %s233_s1 = scalar_lea.vmem %s31_s27, 32 }
  0x1a   :  { %p230_p11 = scmp.ne.s32.totalorder %s31_s27, %s229_s8  ;;  %p234_p12 = scmp.lt.s32.totalorder %s31_s27, %s31_s27 }
  0x1b   :  { %p235_p13 = scmp.lt.s32.totalorder %s233_s1, %s229_s8 }
  0x1d   :  { %p236_p0 = por %p235_p13, %p234_p12 }
  0x1f   :  { %p237_p1 = pnand %p236_p0, %p230_p11 }
  0x21   :  { %240 = shalt.err (!%p237_p1)
}
  0x22   :  { %33 = dma.hbm_to_vmem [thread:$0]  %s319_s2, 16, %s31_s27, [#allocation5]  }
  0x23   :  { %241 = dma.done.wait [#allocation3], 256  }
  0x24   :  { %242 = vsyncadd [#allocation3], 4294967040 }
  0x25   :  { %243 = dma.done.wait [#allocation5], 16  }
  0x26   :  { %244 = vsyncadd [#allocation5], 4294967280  ;;  %vm53_vm0 = vcmask 130048   ;;  %v44_v0 = vld [vmem:[#allocation2] sm:$0xff]  ;;  %v45_v1 = vld [vmem:[#allocation2 + $0x8] sm:$0xff]  ;;  %vm155_vm1 = vcmask 523264  }
  0x27   :  { %v40_v2 = vld [vmem:[%s317_s0] sm:$0xff]  ;;  %v187_v3 = vpack.c.bf16 %v45_v1, %v44_v0  ;;  %v42_v4 = vld [vmem:[%s317_s0 + $0x10] sm:$0xff]  ;;  %v41_v5 = vld [vmem:[%s317_s0 + $0x8] sm:$0xff] }
  0x28   :  { %181 = vmatprep.mubr.msk.f32.mxu0 %vm53_vm0, %v40_v2  ;;  %184 = vmatprep.mubr.msk.f32.mxu1 %vm53_vm0, %v42_v4  ;;  %v43_v6 = vld [vmem:[%s317_s0 + $0x18] sm:$0xff]  ;;  %v166_v7 = vld [vmem:[#allocation4] ss:$0 sm:$0xff] }
  0x29   :  { %188 = vmatprep.subr.bf16.mxu0 %v187_v3  ;;  %191 = vmatprep.subr.bf16.mxu1 %v187_v3 }
  0x2a   :  { %190 = vmatpush3.bf16.msra.mxu0 %v187_v3  ;;  %192 = vmatpush3.bf16.msra.mxu1 %v187_v3 }
  0x2d   :  { %182 = vmatmul.mubr.msk.f32.vlgmr.msra.gmra.mrb[0].mxu0 %vm53_vm0, %v41_v5  ;;  %185 = vmatmul.mubr.msk.f32.vlgmr.msra.gmra.mrb[0].mxu1 %vm53_vm0, %v43_v6 }
 0x100   :  { %v183_v8 = vpop.f32.mrb[0].mxu0  ;;  %v186_v9 = vpop.f32.mrb[0].mxu1 }
 0x101   :  { %v138_v10 = vadd.f32 %v183_v8, %v166_v7  ;;  %v148_v11 = vadd.f32 %v186_v9, %v166_v7  ;;  %v132_v12 = vpop.f32.mrb[1].mxu0  ;;  %v142_v13 = vpop.f32.mrb[1].mxu1 }
 0x102   :  { %v133_v14 = vadd.f32 %v166_v7, %v132_v12  ;;  %v143_v15 = vadd.f32 %v166_v7, %v142_v13 }
 0x103   :  { %v152_v16 = vmax.f32 %v138_v10, 0.0  ;;  %v154_v17 = vmax.f32 %v148_v11, 0.0 }
 0x104   :  { %v151_v18 = vmax.f32 %v133_v14, 0.0  ;;  %v153_v19 = vmax.f32 %v143_v15, 0.0 }
 0x105   :  { %157 = vst.msk [vmem:[%s320_s3 + $0x8] sm:$0xff] %vm155_vm1, %v152_v16  ;;  %159 = vst.msk [vmem:[%s320_s3 + $0x18] sm:$0xff] %vm155_vm1, %v154_v17 }
 0x106   :  { %156 = vst.msk [vmem:[%s320_s3] sm:$0xff] %vm155_vm1, %v151_v18  ;;  %158 = vst.msk [vmem:[%s320_s3 + $0x10] sm:$0xff] %vm155_vm1, %v153_v19 }
 0x107   :  { %164 = vsyncpa [#allocation3], 1 }
 0x108   :  { %165 = vsyncpa [#allocation5], 1 }

// kernel: _lambda_.6
= control target key start
LH: loop header
LB: loop body
LE: loop exit
PB: predicated region body
PF: predicated region fallthrough
CT: control target
= control target key end

     0   :  { %10 = vsyncpa [#allocation3], 0  ;;  %s778_s0 = inlined_call_operand.vmem [shape: f32[32,128], index: 0, kind: input, shape index: {}]   ;;  %s779_s1 = inlined_call_operand.hbm [shape: f32[128,128], index: 1, kind: input, shape index: {}]   ;;  %s780_s2 = inlined_call_operand.hbm [shape: f32[1,128], index: 2, kind: input, shape index: {}]   ;;  %s781_s3 = inlined_call_operand.hbm [shape: f32[128,128], index: 3, kind: input, shape index: {}]   ;;  %s782_s4 = inlined_call_operand.hbm [shape: f32[1,128], index: 4, kind: input, shape index: {}]   ;;  %s783_s5 = inlined_call_operand.vmem [shape: f32[32,128], index: 5, kind: output, shape index: {}]  }
   0x1   :  { %11 = vsyncpa [#allocation5], 0 }
   0x2   :  { %12 = vsyncpa [#allocation8], 0  ;;  %s648_s18 = smov [#allocation4]   ;;  %s649_s20 = smov [#allocation2]  }
   0x3   :  { %s33_s19 = sshll.u32 %s648_s18, 4  ;;  %s20_s21 = sshll.u32 %s649_s20, 4  ;;  %s34_s19 = int_to_ptr.vmem [resolvable:$true] %s33_s19  ;;  %s684_s21 = int_to_ptr.vmem [resolvable:$true] %s20_s21 }
   0x4   :  { %s554_s24 = scalar_lea.hbm %s780_s2, 16 }
   0x5   :  { %p555_p0 = scmp.ne.s32.totalorder %s780_s2, %s554_s24  ;;  %p558_p1 = scmp.lt.u32.totalorder %s554_s24, %s780_s2 }
   0x7   :  { %p560_p2 = pnand %p558_p1, %p555_p0 }
   0x9   :  { %563 = shalt.err (!%p560_p2)
}
   0xa   :  { %s564_s29 = scalar_lea.vmem %s34_s19, 16  ;;  %s568_s30 = scalar_lea.vmem %s34_s19, 32 }
   0xb   :  { %p565_p3 = scmp.ne.s32.totalorder %s34_s19, %s564_s29  ;;  %p569_p4 = scmp.lt.s32.totalorder %s34_s19, %s34_s19 }
   0xc   :  { %p570_p5 = scmp.lt.s32.totalorder %s568_s30, %s564_s29 }
   0xe   :  { %p571_p6 = por %p570_p5, %p569_p4 }
  0x10   :  { %p572_p7 = pnand %p571_p6, %p565_p3 }
  0x12   :  { %575 = shalt.err (!%p572_p7)
}
  0x13   :  { %36 = dma.hbm_to_vmem [thread:$0]  %s780_s2, 16, %s34_s19, [#allocation5]  }
  0x14   :  { %s576_s10 = scalar_lea.hbm %s779_s1, 2048 }
  0x15   :  { %p577_p8 = scmp.ne.s32.totalorder %s779_s1, %s576_s10  ;;  %p580_p9 = scmp.lt.u32.totalorder %s576_s10, %s779_s1 }
  0x17   :  { %p582_p10 = pnand %p580_p9, %p577_p8 }
  0x19   :  { %585 = shalt.err (!%p582_p10)
}
  0x1a   :  { %s586_s15 = scalar_lea.vmem %s684_s21, 2048  ;;  %p591_p12 = scmp.lt.s32.totalorder %s684_s21, %s684_s21 }
  0x1b   :  { %p587_p11 = scmp.ne.s32.totalorder %s684_s21, %s586_s15  ;;  %p592_p13 = scmp.lt.s32.totalorder %s586_s15, %s586_s15 }
  0x1d   :  { %p593_p0 = por %p592_p13, %p591_p12 }
  0x1f   :  { %p594_p1 = pnand %p593_p0, %p587_p11 }
  0x21   :  { %597 = shalt.err (!%p594_p1)
}
  0x22   :  { %s650_s2 = smov 128   ;;  %s651_s16 = smov 8  }
  0x23   :  { %26 = dma.hbm_to_vmem [thread:$0]  %s779_s1, 2048, %s684_s21, [#allocation3], %s650_s2, %s650_s2, %s651_s16  }
  0x24   :  { %s652_s19 = smov [#allocation6]   ;;  %s653_s22 = smov [#allocation7]  }
  0x25   :  { %s42_s20 = sshll.u32 %s652_s19, 4  ;;  %s55_s23 = sshll.u32 %s653_s22, 4  ;;  %s43_s20 = int_to_ptr.vmem [resolvable:$true] %s42_s20  ;;  %s56_s23 = int_to_ptr.vmem [resolvable:$true] %s55_s23 }
  0x26   :  { %s598_s26 = scalar_lea.hbm %s781_s3, 2048 }
  0x27   :  { %p599_p2 = scmp.ne.s32.totalorder %s781_s3, %s598_s26  ;;  %p602_p3 = scmp.lt.u32.totalorder %s598_s26, %s781_s3 }
  0x29   :  { %p604_p4 = pnand %p602_p3, %p599_p2 }
  0x2b   :  { %607 = shalt.err (!%p604_p4)
}
  0x2c   :  { %s608_s1 = scalar_lea.vmem %s43_s20, 2048  ;;  %p613_p6 = scmp.lt.s32.totalorder %s43_s20, %s43_s20 }
  0x2d   :  { %p609_p5 = scmp.ne.s32.totalorder %s43_s20, %s608_s1  ;;  %p614_p7 = scmp.lt.s32.totalorder %s608_s1, %s608_s1 }
  0x2f   :  { %p615_p8 = por %p614_p7, %p613_p6 }
  0x31   :  { %p616_p9 = pnand %p615_p8, %p609_p5 }
  0x33   :  { %619 = shalt.err (!%p616_p9)
}
  0x34   :  { %48 = dma.hbm_to_vmem [thread:$0]  %s781_s3, 2048, %s43_s20, [#allocation5], %s650_s2, %s650_s2, %s651_s16  }
  0x35   :  { %s620_s9 = scalar_lea.hbm %s782_s4, 16 }
  0x36   :  { %p621_p10 = scmp.ne.s32.totalorder %s782_s4, %s620_s9  ;;  %p624_p11 = scmp.lt.u32.totalorder %s620_s9, %s782_s4 }
  0x38   :  { %p626_p12 = pnand %p624_p11, %p621_p10 }
  0x3a   :  { %629 = shalt.err (!%p626_p12)
}
  0x3b   :  { %s630_s14 = scalar_lea.vmem %s56_s23, 16  ;;  %s634_s15 = scalar_lea.vmem %s56_s23, 32 }
  0x3c   :  { %p631_p13 = scmp.ne.s32.totalorder %s56_s23, %s630_s14  ;;  %p635_p0 = scmp.lt.s32.totalorder %s56_s23, %s56_s23 }
  0x3d   :  { %p636_p1 = scmp.lt.s32.totalorder %s634_s15, %s630_s14 }
  0x3f   :  { %p637_p2 = por %p636_p1, %p635_p0 }
  0x41   :  { %p638_p3 = pnand %p637_p2, %p631_p13 }
  0x43   :  { %641 = shalt.err (!%p638_p3)
}
  0x44   :  { %58 = dma.hbm_to_vmem [thread:$0]  %s782_s4, 16, %s56_s23, [#allocation8]  }
  0x45   :  { %642 = dma.done.wait [#allocation3], 2048  }
  0x46   :  { %643 = vsyncadd [#allocation3], 4294965248 }
  0x47   :  { %644 = dma.done.wait [#allocation5], 2064  }
  0x48   :  { %645 = vsyncadd [#allocation5], 4294965232 }
  0x49   :  { %646 = dma.done.wait [#allocation8], 16  }
  0x4a   :  { %647 = vsyncadd [#allocation8], 4294967280  ;;  %v187_v0 = vld [vmem:[#allocation6] sm:$0xff]  ;;  %v188_v1 = vld [vmem:[#allocation6 + $0x8] sm:$0xff] }
  0x4b   :  { %v189_v2 = vld [vmem:[#allocation6 + $0x10] sm:$0xff]  ;;  %v500_v3 = vpack.c.bf16 %v188_v1, %v187_v0  ;;  %v190_v4 = vld [vmem:[#allocation6 + $0x18] sm:$0xff]  ;;  %v191_v6 = vld [vmem:[#allocation6 + $0x20] sm:$0xff] }
  0x4c   :  { %v504_v5 = vpack.c.bf16 %v190_v4, %v189_v2  ;;  %v192_v7 = vld [vmem:[#allocation6 + $0x28] sm:$0xff]  ;;  %v75_v8 = vld [vmem:[#allocation2] sm:$0xff]  ;;  %v78_v13 = vld [vmem:[#allocation2 + $0x18] sm:$0xff] }
  0x4d   :  { %501 = vmatprep.subr.bf16.mxu1 %v500_v3  ;;  %v76_v9 = vld [vmem:[#allocation2 + $0x8] sm:$0xff]  ;;  %v508_v10 = vpack.c.bf16 %v192_v7, %v191_v6  ;;  %v77_v12 = vld [vmem:[#allocation2 + $0x10] sm:$0xff]  ;;  %v194_v15 = vld [vmem:[#allocation6 + $0x38] sm:$0xff] }
  0x4e   :  { %503 = vmatpush3.bf16.msra.mxu1 %v500_v3  ;;  %v468_v11 = vpack.c.bf16 %v76_v9, %v75_v8  ;;  %v193_v14 = vld [vmem:[#allocation6 + $0x30] sm:$0xff]  ;;  %v472_v16 = vpack.c.bf16 %v78_v13, %v77_v12  ;;  %v742_v17 = vld [vmem:[%s778_s0] sm:$0xff]  ;;  %v80_v19 = vld [vmem:[#allocation2 + $0x28] sm:$0xff] }
  0x4f   :  { %505 = vmatprep.subr.bf16.mxu1 %v504_v5  ;;  %462 = vmatprep.mubr.f32.mxu1 %v742_v17  ;;  %v79_v18 = vld [vmem:[#allocation2 + $0x20] sm:$0xff]  ;;  %v512_v20 = vpack.c.bf16 %v194_v15, %v193_v14  ;;  %v196_v23 = vld [vmem:[#allocation6 + $0x48] sm:$0xff]  ;;  %v82_v25 = vld [vmem:[#allocation2 + $0x38] sm:$0xff] }
  0x50   :  { %469 = vmatprep.subr.bf16.mxu0 %v468_v11  ;;  %v195_v21 = vld [vmem:[#allocation6 + $0x40] sm:$0xff]  ;;  %v476_v22 = vpack.c.bf16 %v80_v19, %v79_v18  ;;  %v81_v24 = vld [vmem:[#allocation2 + $0x30] sm:$0xff]  ;;  %424 = vmatprep.mubr.f32.mxu0 %v742_v17  ;;  %v198_v29 = vld [vmem:[#allocation6 + $0x58] sm:$0xff] }
  0x51   :  { %471 = vmatpush3.bf16.msra.mxu0 %v468_v11  ;;  %v516_v26 = vpack.c.bf16 %v196_v23, %v195_v21  ;;  %v197_v27 = vld [vmem:[#allocation6 + $0x50] sm:$0xff]  ;;  %v480_v28 = vpack.c.bf16 %v82_v25, %v81_v24  ;;  %v83_v30 = vld [vmem:[#allocation2 + $0x40] sm:$0xff]  ;;  %v84_v31 = vld [vmem:[#allocation2 + $0x48] sm:$0xff] }
  0x52   :  { %507 = vmatpush3.bf16.msra.mxu1 %v504_v5  ;;  %473 = vmatprep.subr.bf16.mxu0 %v472_v16  ;;  %v520_v32 = vpack.c.bf16 %v198_v29, %v197_v27  ;;  %v199_v33 = vld [vmem:[#allocation6 + $0x60] sm:$0xff]  ;;  %v484_v34 = vpack.c.bf16 %v84_v31, %v83_v30  ;;  %v200_v35 = vld [vmem:[#allocation6 + $0x68] sm:$0xff]  ;;  %v86_v37 = vld [vmem:[#allocation2 + $0x58] sm:$0xff] }
  0x53   :  { %509 = vmatprep.subr.bf16.mxu1 %v508_v10  ;;  %v85_v36 = vld [vmem:[#allocation2 + $0x50] sm:$0xff]  ;;  %v524_v38 = vpack.c.bf16 %v200_v35, %v199_v33  ;;  %v202_v41 = vld [vmem:[#allocation6 + $0x78] sm:$0xff]  ;;  %v88_v43 = vld [vmem:[#allocation2 + $0x68] sm:$0xff] }
  0x54   :  { %v201_v39 = vld [vmem:[#allocation6 + $0x70] sm:$0xff]  ;;  %v488_v40 = vpack.c.bf16 %v86_v37, %v85_v36  ;;  %v87_v42 = vld [vmem:[#allocation2 + $0x60] sm:$0xff]  ;;  %v72_v49 = vld [vmem:[%s778_s0 + $0x8] sm:$0xff] }
  0x55   :  { %475 = vmatpush3.bf16.msra.mxu0 %v472_v16  ;;  %v528_v44 = vpack.c.bf16 %v202_v41, %v201_v39  ;;  %v492_v45 = vpack.c.bf16 %v88_v43, %v87_v42  ;;  %v89_v46 = vld [vmem:[#allocation2 + $0x70] sm:$0xff]  ;;  %v90_v47 = vld [vmem:[#allocation2 + $0x78] sm:$0xff]  ;;  %v347_v52 = vld [vmem:[#allocation7] ss:$0 sm:$0xff] }
  0x56   :  { %511 = vmatpush3.bf16.msra.mxu1 %v508_v10  ;;  %477 = vmatprep.subr.bf16.mxu0 %v476_v22  ;;  %v496_v48 = vpack.c.bf16 %v90_v47, %v89_v46  ;;  %v752_v50 = vld [vmem:[%s778_s0 + $0x10] sm:$0xff]  ;;  %v758_v51 = vld [vmem:[%s778_s0 + $0x18] sm:$0xff]  ;;  %v346_v9 = vld [vmem:[#allocation4] ss:$0 sm:$0xff] }
  0x57   :  { %513 = vmatprep.subr.bf16.mxu1 %v512_v20 }
  0x59   :  { %479 = vmatpush3.bf16.msra.mxu0 %v476_v22 }
  0x5a   :  { %515 = vmatpush3.bf16.msra.mxu1 %v512_v20  ;;  %481 = vmatprep.subr.bf16.mxu0 %v480_v28 }
  0x5b   :  { %517 = vmatprep.subr.bf16.mxu1 %v516_v26 }
  0x5d   :  { %483 = vmatpush3.bf16.msra.mxu0 %v480_v28 }
  0x5e   :  { %519 = vmatpush3.bf16.msra.mxu1 %v516_v26  ;;  %485 = vmatprep.subr.bf16.mxu0 %v484_v34 }
  0x5f   :  { %521 = vmatprep.subr.bf16.mxu1 %v520_v32 }
  0x61   :  { %487 = vmatpush3.bf16.msra.mxu0 %v484_v34 }
  0x62   :  { %523 = vmatpush3.bf16.msra.mxu1 %v520_v32  ;;  %489 = vmatprep.subr.bf16.mxu0 %v488_v40 }
  0x63   :  { %525 = vmatprep.subr.bf16.mxu1 %v524_v38 }
  0x65   :  { %491 = vmatpush3.bf16.msra.mxu0 %v488_v40 }
  0x66   :  { %527 = vmatpush3.bf16.msra.mxu1 %v524_v38  ;;  %493 = vmatprep.subr.bf16.mxu0 %v492_v45 }
  0x67   :  { %529 = vmatprep.subr.bf16.mxu1 %v528_v44 }
  0x69   :  { %495 = vmatpush3.bf16.msra.mxu0 %v492_v45 }
  0x6a   :  { %531 = vmatpush3.bf16.msra.mxu1 %v528_v44  ;;  %497 = vmatprep.subr.bf16.mxu0 %v496_v48 }
  0x6d   :  { %463 = vmatmul.mubr.f32.vlgmr.msra.gmra.mrb[0].mxu1 %v72_v49  ;;  %499 = vmatpush3.bf16.msra.mxu0 %v496_v48 }
  0x6e   :  { %465 = vmatprep.mubr.f32.mxu1 %v752_v50 }
  0x70   :  { %425 = vmatmul.mubr.f32.vlgmr.msra.gmra.mrb[0].mxu0 %v72_v49 }
  0x71   :  { %466 = vmatmul.mubr.f32.gmra.mrb[2].mxu1 %v758_v51  ;;  %427 = vmatprep.mubr.f32.mxu0 %v752_v50 }
  0x74   :  { %428 = vmatmul.mubr.f32.gmra.mrb[2].mxu0 %v758_v51 }
 0x140   :  { %v464_v53 = vpop.f32.mrb[0].mxu1 }
 0x141   :  { %v282_v54 = vadd.f32 %v464_v53, %v347_v52  ;;  %v276_v55 = vpop.f32.mrb[1].mxu1 }
 0x142   :  { %v277_v56 = vadd.f32 %v347_v52, %v276_v55 }
 0x143   :  { %v349_v57 = vmul.f32 -1.442695, %v282_v54  ;;  %v426_v60 = vpop.f32.mrb[0].mxu0 }
 0x144   :  { %v348_v58 = vmul.f32 -1.442695, %v277_v56  ;;  %v467_v59 = vpop.f32.mrb[2].mxu1  ;;  %v164_v63 = vpop.f32.mrb[1].mxu0  ;;  %v170_v14 = vadd.f32 %v426_v60, %v346_v9 }
 0x145   :  { %538 = vpow2.f32 %v349_v57  ;;  %v292_v61 = vadd.f32 %v467_v59, %v347_v52  ;;  %v286_v62 = vpop.f32.mrb[3].mxu1  ;;  %v165_v15 = vadd.f32 %v346_v9, %v164_v63 }
 0x146   :  { %540 = vpow2.f32 %v348_v58  ;;  %v287_v0 = vadd.f32 %v347_v52, %v286_v62  ;;  %v184_v16 = vmax.f32 %v170_v14, 0.0 }
 0x147   :  { %v351_v1 = vmul.f32 -1.442695, %v292_v61  ;;  %v429_v3 = vpop.f32.mrb[2].mxu0  ;;  %v183_v19 = vmax.f32 %v165_v15, 0.0 }
 0x148   :  { %v350_v2 = vmul.f32 -1.442695, %v287_v0  ;;  %v174_v4 = vpop.f32.mrb[3].mxu0  ;;  %v180_v18 = vadd.f32 %v429_v3, %v346_v9 }
 0x149   :  { %542 = vpow2.f32 %v351_v1  ;;  %v175_v20 = vadd.f32 %v346_v9, %v174_v4 }
 0x14a   :  { %544 = vpow2.f32 %v350_v2  ;;  %v186_v25 = vmax.f32 %v180_v18, 0.0 }
 0x14b   :  { %v185_v28 = vmax.f32 %v175_v20, 0.0 }
 0x14f   :  { %v539_v5 = vpop.eup %538 }
 0x150   :  { %v541_v6 = vpop.eup %540  ;;  %v308_v7 = vadd.f32 1.0, %v539_v5 }
 0x151   :  { %v307_v8 = vadd.f32 1.0, %v541_v6 }
 0x152   :  { %546 = vrcp.f32 %v308_v7 }
 0x153   :  { %v543_v10 = vpop.eup %542  ;;  %548 = vrcp.f32 %v307_v8 }
 0x154   :  { %v545_v11 = vpop.eup %544  ;;  %v310_v12 = vadd.f32 1.0, %v543_v10 }
 0x155   :  { %v309_v13 = vadd.f32 1.0, %v545_v11 }
 0x156   :  { %550 = vrcp.f32 %v310_v12 }
 0x157   :  { %552 = vrcp.f32 %v309_v13 }
 0x15c   :  { %v547_v21 = vpop.eup %546 }
 0x15d   :  { %v549_v22 = vpop.eup %548  ;;  %v320_v23 = vmul.f32 %v547_v21, %v184_v16  ;;  %v324_v24 = vsub.f32 1.0, %v547_v21 }
 0x15e   :  { %v319_v26 = vmul.f32 %v549_v22, %v183_v19  ;;  %v323_v27 = vsub.f32 1.0, %v549_v22 }
 0x15f   :  { %v328_v29 = vmul.f32 %v324_v24, %v72_v49 }
 0x160   :  { %v551_v30 = vpop.eup %550  ;;  %v327_v31 = vmul.f32 %v323_v27, %v742_v17 }
 0x161   :  { %v553_v32 = vpop.eup %552  ;;  %v332_v33 = vadd.f32 %v328_v29, %v320_v23  ;;  %v322_v34 = vmul.f32 %v551_v30, %v186_v25  ;;  %v326_v35 = vsub.f32 1.0, %v551_v30 }
 0x162   :  { %v331_v36 = vadd.f32 %v327_v31, %v319_v26  ;;  %v321_v37 = vmul.f32 %v553_v32, %v185_v28  ;;  %v325_v38 = vsub.f32 1.0, %v553_v32 }
 0x163   :  { %336 = vst [vmem:[%s783_s5 + $0x8] sm:$0xff] %v332_v33  ;;  %v330_v39 = vmul.f32 %v326_v35, %v758_v51 }
 0x164   :  { %335 = vst [vmem:[%s783_s5] sm:$0xff] %v331_v36  ;;  %v329_v40 = vmul.f32 %v325_v38, %v752_v50 }
 0x165   :  { %v334_v17 = vadd.f32 %v330_v39, %v322_v34 }
 0x166   :  { %v333_v41 = vadd.f32 %v329_v40, %v321_v37 }
 0x167   :  { %338 = vst [vmem:[%s783_s5 + $0x18] sm:$0xff] %v334_v17 }
 0x168   :  { %337 = vst [vmem:[%s783_s5 + $0x10] sm:$0xff] %v333_v41 }
 0x169   :  { %343 = vsyncpa [#allocation3], 1 }
 0x16a   :  { %344 = vsyncpa [#allocation5], 1 }
 0x16b   :  { %345 = vsyncpa [#allocation8], 1 }

// kernel: _lambda_.8
= control target key start
LH: loop header
LB: loop body
LE: loop exit
PB: predicated region body
PF: predicated region fallthrough
CT: control target
= control target key end

     0   :  { %10 = vsyncpa [#allocation3], 0  ;;  %s753_s15 = smov 0   ;;  %s825_s0 = inlined_call_operand.vmem [shape: f32[2,8,256], index: 0, kind: input, shape index: {}]   ;;  %s826_s1 = inlined_call_operand.vmem [shape: f32[2,8,256], index: 1, kind: input, shape index: {}]   ;;  %s827_s2 = inlined_call_operand.hbm [shape: f32[3,256], index: 2, kind: input, shape index: {}]   ;;  %s828_s3 = inlined_call_operand.vmem [shape: f32[2,8,256], index: 3, kind: output, shape index: {0}]   ;;  %s829_s4 = inlined_call_operand.vmem [shape: f32[2,8,256], index: 4, kind: output, shape index: {1}]  }
   0x1 LB: > { %s759_s16 = sadd.s32 4294967295, %s724_s15   ;;  %p641_p0 = scmp.ge.s32.totalorder %s724_s15, 1  ;;  %s724_s15 = sphi %s753_s15, %s16_s15  }
   0x2   : > { %p146_p1 = scmp.lt.s32.totalorder %s724_s15, 3  ;;  %p830_p3 = scmp.eq.s32.totalorder %s759_s16, 0 }
   0x3   : > { %s726_s18 = smov [#allocation2]   ;;  %s686_s23 = scalar_lea.hbm %s827_s2, 128 }
   0x4   : > { %p763_p2 = pnand %p641_p0, %p146_p1  ;;  %s159_s19 = sshll.u32 %s726_s18, 4  ;;  %s160_s19 = int_to_ptr.vmem [resolvable:$true] %s159_s19 }
   0x5   : > { %p687_p6 = scmp.ne.s32.totalorder %s827_s2, %s686_s23  ;;  %p693_p10 = scmp.lt.u32.totalorder %s686_s23, %s827_s2 }
   0x6   : > { %s832_s17 = scalar_select %p763_p2, 1, 0 }
   0x7   : > { %p666_p4 = pneg %p763_p2 }
   0x9   : > { %p772_p5 = pnand %p830_p3, %p666_p4 }
   0xb   : > { %p688_p7 = pneg %p772_p5 }
   0xd   : > { %p689_p8 = pnand %p688_p7, %p687_p6 }
   0xf   : > { %p690_p9 = pneg %p689_p8 }
  0x11   : > { %p695_p11 = pnand %p693_p10, %p690_p9 }
  0x13   : > { %698 = shalt.err (!%p695_p11)
}
  0x14   : > { %s699_s28 = scalar_lea.vmem %s160_s19, 128  ;;  %p707_p1 = scmp.lt.s32.totalorder %s160_s19, %s160_s19 }
  0x15   : > { %p700_p12 = scmp.ne.s32.totalorder %s160_s19, %s699_s28  ;;  %p708_p4 = scmp.lt.s32.totalorder %s699_s28, %s699_s28 }
  0x17   : > { %p702_p13 = pnand %p700_p12, %p688_p7  ;;  %p709_p3 = por %p708_p4, %p707_p1 }
  0x19   : > { %p703_p0 = pneg %p702_p13 }
  0x1b   : > { %p710_p2 = pnand %p709_p3, %p703_p0 }
  0x1d   : > { %713 = shalt.err (!%p710_p2)
}
  0x1e   : > { %669 = dma.hbm_to_vmem [thread:$0]  (!%p772_p5), %s827_s2, 128, %s160_s19, [#allocation3]  }
  0x1f   : > { %p834_p6 = scmp.ne.s32.totalorder %s832_s17, 0 }
  0x20   : > { %p835_p8 = scmp.eq.s32.totalorder (!%p834_p6), %s759_s16, 0 }
  0x21   : > { %188 = sbr.rel (%p834_p6) target bundleno = 801 (0x321), region = 32 }
  0x28   : > { %719 = dma.done.wait (%p835_p8), [#allocation3], 128   ;;  %p836_p7 = pmov %p835_p8 }
  0x29   : > { %p224_p9 = scmp.lt.s32.totalorder %s759_s16, 1  ;;  %v254_v0 = vlaneseq  ;;  %v250_v8 = vld [vmem:[#allocation2 + $0x1] ss:$4 sm:$0x3]  ;;  %vm366_vm0 = vcmask 64512   ;;  %v727_v34 = vmov 0.0  }
  0x2a   : > { %721 = vsyncadd (%p836_p7), [#allocation3], 4294967168  ;;  %v252_v9 = vld [vmem:[#allocation2 + $0x2] ss:$4 sm:$0x3]  ;;  %445 = vmatprep.mubr.f32.mxu1 %v727_v34 }
  0x2b   : > { %s838_s16 = smov (!%p224_p9, %s759_s16), 1  ;;  %v255_v1 = vshrl.u32 %v254_v0, 7  ;;  %v248_v12 = vld [vmem:[#allocation2] ss:$4 sm:$0x3] }
  0x2c   : > { %s800_s5 = sshll.u32 %s838_s16, 4 }
  0x2d   : > { %s233_s8 = scalar_lea.vmem %s826_s1, %s800_s5  ;;  %s228_s11 = scalar_lea.vmem %s825_s0, %s800_s5  ;;  %v256_v2 = vsub.s32 0, %v255_v1  ;;  %v260_v3 = vsub.s32 1, %v255_v1 }
  0x2e   : > { %v247_v4 = vld [vmem:[%s233_s8 + $0x8] sm:$0xff]  ;;  %v246_v5 = vld [vmem:[%s233_s8] sm:$0xff]  ;;  %s238_s14 = scalar_lea.vmem %s828_s3, %s800_s5  ;;  %s243_s18 = scalar_lea.vmem %s829_s4, %s800_s5 }
  0x2f   : > { %295 = vmatprep.subr.mxu0 %v247_v4  ;;  %v244_v6 = vld [vmem:[%s228_s11] sm:$0xff]  ;;  %v245_v7 = vld [vmem:[%s228_s11 + $0x8] sm:$0xff]  ;;  %381 = vmatprep.subr.mxu1 %v247_v4  ;;  %v286_v10 = vrot.slane %v250_v8, %v256_v2  ;;  %v290_v11 = vrot.slane %v250_v8, %v260_v3  ;;  %v273_v13 = vrot.slane %v252_v9, %v256_v2 }
  0x30   : > { %296 = vmatpush1.xpose.msra.mxu0 %v246_v5  ;;  %382 = vmatpush1.msra.mxu1 %v246_v5  ;;  %v277_v14 = vrot.slane %v252_v9, %v260_v3  ;;  %v257_v15 = vrot.slane %v248_v12, %v256_v2  ;;  %v261_v16 = vrot.slane %v248_v12, %v260_v3 }
  0x31   : > { %454 = vmatprep.subr.mxu1 %v245_v7  ;;  %v280_v18 = vmul.f32 %v273_v13, %v244_v6 }
  0x32   : > { %v281_v17 = vmul.f32 %v277_v14, %v245_v7  ;;  %v264_v19 = vmul.f32 %v257_v15, %v244_v6  ;;  %v265_v20 = vmul.f32 %v261_v16, %v245_v7 }
  0x33   : > { %v293_v22 = vadd.f32 %v286_v10, %v280_v18 }
  0x34   : > { %v294_v21 = vadd.f32 %v290_v11, %v281_v17  ;;  %v266_v23 = vadd.f32 %v265_v20, %v264_v19 }
  0x36   : > { %359 = vmatprep.mubr.f32.mxu0 %v294_v21  ;;  %267 = vadd.xlane.f32.xlu0 %v266_v23 }
  0x37   : > { %360 = vmatmul.mubr.f32.vlgmr.msra.gmra.mrb[0].mxu0 %v293_v22 }
  0xc3   : > { %v268_v24 = vpop.xlane.xlu0 %267 }
 0x10a   : > { %v361_v25 = vpop.f32.mrb[0].mxu0 }
 0x10b   : > { %v365_v26 = vadd.f32 %v361_v25, %v268_v24  ;;  %v363_v27 = vpop.f32.mrb[1].mxu0 }
 0x10d   : > { %v367_v28 = vsel %vm366_vm0, %v365_v26, -inf }
 0x10e   : > { %368 = vmax.xlane.f32.xlu0 %v367_v28 }
 0x19b   : > { %v369_v29 = vpop.xlane.xlu0 %368 }
 0x19c   : > { %v370_v30 = vsub.f32 %v365_v26, %v369_v29 }
 0x19e   : > { %v371_v31 = vmul.f32 1.442695, %v370_v30 }
 0x1a0   : > { %682 = vpow2.f32 %v371_v31 }
 0x1aa   : > { %v683_v32 = vpop.eup %682 }
 0x1ab   : > { %v373_v33 = vsel %vm366_vm0, %v683_v32, 0.0 }
 0x1ac   : > { %374 = vadd.xlane.f32.xlu1 %v373_v33 }
 0x239   : > { %v375_v35 = vpop.xlane.xlu1 %374 }
 0x23a   : > { %684 = vrcp.f32 %v375_v35 }
 0x244   : > { %v685_v36 = vpop.eup %684 }
 0x245   : > { %v377_v37 = vmul.f32 %v685_v36, %v683_v32 }
 0x247   : > { %654 = vmatmul.mubr.msk.f32.vlgmr.msra.gmra.mrb[0].mxu1 %vm366_vm0, %v377_v37 }
 0x248   : > { %455 = vmatpush1.msra.mxu1 %v244_v6  ;;  %518 = vmatprep.mubr.f32.mxu1 %v727_v34 }
 0x24b   : > { %655 = vmatmul.mubr.msk.f32.vlgmr.msra.gmra.mrb[2].mxu1 %vm366_vm0, %v377_v37 }
 0x31a   : > { %v447_v38 = vpop.f32.mrb[0].mxu1 }
 0x31b   : > { %452 = vst [vmem:[%s238_s14] sm:$0xff] %v447_v38  ;;  %v449_v39 = vpop.f32.mrb[1].mxu1 }
 0x31c   : > { %453 = vst [vmem:[%s238_s14 + $0x8] sm:$0xff] %v449_v39 }
 0x31e   : > { %v520_v40 = vpop.f32.mrb[2].mxu1 }
 0x31f   : > { %525 = vst [vmem:[%s243_s18] sm:$0xff] %v520_v40  ;;  %v522_v41 = vpop.f32.mrb[3].mxu1 }
 0x320   : > { %526 = vst [vmem:[%s243_s18 + $0x8] sm:$0xff] %v522_v41 }
 0x321 PF: > { %s16_s15 = sadd.s32 1, %s724_s15  }
 0x322   : > { %p13_p2 = scmp.ge.s32.totalorder %s16_s15, 4  }
 0x324   :  { %15 = sbr.rel (!%p13_p2) target bundleno = 1 (0x1), region = 84 }
 0x32b   :  { %564 = vsyncpa [#allocation3], 1 }
 0x32c   :  { %566 = vsyncpa [#allocation3 + $0x1], 1 }

// kernel: _lambda_.7
= control target key start
LH: loop header
LB: loop body
LE: loop exit
PB: predicated region body
PF: predicated region fallthrough
CT: control target
= control target key end

     0   :  { %s2279_s0 = inlined_call_operand.vmem [shape: f32[2,16,128], index: 0, kind: input, shape index: {}]   ;;  %s2280_s1 = inlined_call_operand.hbm [shape: f32[2,128,512], index: 1, kind: input, shape index: {}]   ;;  %s2281_s2 = inlined_call_operand.hbm [shape: f32[2,128,512], index: 2, kind: input, shape index: {}]   ;;  %s2282_s3 = inlined_call_operand.hbm [shape: f32[2,1,512], index: 3, kind: input, shape index: {}]   ;;  %s2283_s4 = inlined_call_operand.vmem [shape: f32[2,2,16,128], index: 4, kind: output, shape index: {}]  }
   0x1   :  { %2286 = sst [smem:[#allocation11_spill]] %s2280_s1 }
   0x2   :  { %2287 = sst [smem:[#allocation12_spill]] %s2281_s2 }
   0x3   :  { %9 = vsyncpa [#allocation4], 0 }
   0x4   :  { %11 = vsyncpa [#allocation4 + $0x1], 0 }
   0x5   :  { %12 = vsyncpa [#allocation6], 0 }
   0x6   :  { %14 = vsyncpa [#allocation6 + $0x1], 0  ;;  %s1787_s15 = smov 0   ;;  %s1789_s16 = smov 0  }
   0x7   :  { %s1791_s17 = smov 0   ;;  %s1793_s18 = smov 0  }
   0x8 LB: > { %s1806_s19 = sadd.s32 4294967295, %s1754_s18   ;;  %s1809_s20 = sadd.s32 1, %s1754_s18   ;;  %s1754_s18 = sphi %s1793_s18, %s2304_s18   ;;  %s1750_s17 = sphi %s1791_s17, %s2303_s17   ;;  %s1746_s16 = sphi %s1789_s16, %s2302_s16   ;;  %s1742_s15 = sphi %s1787_s15, %s2301_s15  }
   0x9   : > { %s45_s21 = ssub.s32 %s1754_s18, %s1809_s20  ;;  %s48_s22 = sadd.s32 1, %s1750_s17 }
   0xa   : > { %p46_p0 = scmp.eq.s32.totalorder %s45_s21, 0  ;;  %p55_p1 = scmp.ne.s32.totalorder %s1750_s17, %s1746_s16 }
   0xb   : > { %p56_p2 = scmp.eq.s32.totalorder %s1754_s18, 0  ;;  %p61_p3 = scmp.ne.s32.totalorder %s1746_s16, %s1742_s15 }
   0xc   : > { %s1819_s23 = scalar_select %p46_p0, %s1750_s17, %s48_s22  }
   0xd   : > { %p57_p4 = por %p56_p2, %p55_p1  ;;  %p62_p5 = scmp.eq.s32.totalorder %s1806_s19, 0 }
   0xe   : > { %2288 = sst [smem:[#allocation10_spill]] %s1819_s23  ;;  %p1526_p6 = scmp.lt.s32.totalorder %s1754_s18, 2 }
   0xf   : > { %p1823_p7 = por %p62_p5, %p61_p3  ;;  %s1828_s25 = sand.u32 1, %s1750_s17  }
  0x10   : > { %s1277_s26 = sshll.u32 %s1828_s25, 9  ;;  %s1312_s27 = sshll.u32 %s1754_s18, 13 }
  0x11   : > { %s2289_s24 = scalar_select %p1823_p7, 1, 0 }
  0x12   : > { %p1832_p8 = pnand %p1526_p6, %p57_p4  ;;  %s187_s29 = sand.u32 1, %s1754_s18  }
  0x13   : > { %s2291_s2 = sld [smem:[#allocation12_spill]]  ;;  %s191_s7 = scalar_lea.vmem [#allocation5], %s1277_s26 }
  0x14   : > { %s2290_s28 = scalar_select %p1832_p8, 1, 0 }
  0x15   : > { %s198_s8 = sshll.u32 %s191_s7, 4  ;;  %s1850_s9 = scalar_lea.sflag [#allocation6], %s187_s29  ;;  %s1847_s8 = int_to_ptr.vmem [resolvable:$true] %s198_s8 }
  0x16   : > { %p1856_p12 = pneg %p1832_p8 }
  0x19   : > { %s1842_s6 = scalar_lea.hbm %s2291_s2, %s1312_s27  ;;  %s1631_s14 = scalar_lea.hbm %s2291_s2, 16384 }
  0x1a   : > { %s1626_s10 = scalar_lea.hbm %s1842_s6, 8192  ;;  %p1632_p1 = scmp.lt.u32.totalorder %s1842_s6, %s2291_s2 }
  0x1b   : > { %p1627_p11 = scmp.ne.s32.totalorder %s1842_s6, %s1626_s10  ;;  %p1633_p2 = scmp.lt.u32.totalorder %s1631_s14, %s1626_s10 }
  0x1c   : > { %p1635_p4 = scmp.lt.u32.totalorder %s1626_s10, %s1842_s6 }
  0x1d   : > { %p1629_p13 = pnand %p1856_p12, %p1627_p11  ;;  %p1634_p3 = por %p1633_p2, %p1632_p1 }
  0x1f   : > { %p1630_p0 = pneg %p1629_p13  ;;  %p1636_p5 = por %p1635_p4, %p1634_p3 }
  0x21   : > { %p1637_p6 = pnand %p1636_p5, %p1630_p0 }
  0x23   : > { %1640 = shalt.err (!%p1637_p6)
}
  0x24   : > { %s1641_s22 = scalar_lea.vmem %s1847_s8, 8192  ;;  %s1756_s29 = smov [#allocation5]  }
  0x25   : > { %p1642_p11 = scmp.ne.s32.totalorder %s1847_s8, %s1641_s22  ;;  %s1646_s30 = sshll.u32 %s1756_s29, 4  ;;  %s1647_s30 = int_to_ptr.vmem [resolvable:$false] %s1646_s30 }
  0x26   : > { %s1648_s5 = scalar_lea.vmem %s1647_s30, 16384  ;;  %p1649_p10 = scmp.lt.s32.totalorder %s1847_s8, %s1647_s30 }
  0x27   : > { %p1644_p13 = pnand %p1642_p11, %p1856_p12  ;;  %p1650_p7 = scmp.lt.s32.totalorder %s1648_s5, %s1641_s22 }
  0x29   : > { %p1645_p9 = pneg %p1644_p13  ;;  %p1651_p1 = por %p1650_p7, %p1649_p10 }
  0x2b   : > { %p1652_p2 = pnand %p1651_p1, %p1645_p9 }
  0x2d   : > { %1655 = shalt.err (!%p1652_p2)
}
  0x2e   : > { %s1757_s7 = smov 512   ;;  %s1758_s10 = smov 32  }
  0x2f   : > { %1522 = dma.hbm_to_vmem [thread:$0]  (!%p1832_p8), %s1842_s6, 8192, %s1847_s8, %s1850_s9, %s1757_s7, %s1757_s7, %s1758_s10  }
  0x30   : > { %p2293_p7 = scmp.lt.s32.totalorder %s1754_s18, 3  ;;  %p2294_p9 = scmp.ge.s32.totalorder %s1754_s18, 1 }
  0x31   : > { %s2296_s1 = sld [smem:[#allocation11_spill]]  ;;  %s170_s21 = scalar_lea.vmem [#allocation3], %s1277_s26 }
  0x32   : > { %p1887_p10 = pnand %p2294_p9, %p2293_p7  ;;  %s177_s22 = sshll.u32 %s170_s21, 4  ;;  %s1901_s22 = int_to_ptr.vmem [resolvable:$true] %s177_s22 }
  0x33   : > { %s1283_s6 = sshll.u32 %s1828_s25, 2  ;;  %s167_s8 = scalar_lea.sflag [#allocation4], %s1828_s25 }
  0x34   : > { %s2295_s12 = scalar_select %p1887_p10, 1, 0 }
  0x37   : > { %s1896_s15 = scalar_lea.hbm %s2296_s1, %s1312_s27  ;;  %s1661_s27 = scalar_lea.hbm %s2296_s1, 16384 }
  0x38   : > { %s1656_s29 = scalar_lea.hbm %s1896_s15, 8192  ;;  %p1662_p5 = scmp.lt.u32.totalorder %s1896_s15, %s2296_s1 }
  0x39   : > { %p1657_p0 = scmp.ne.s32.totalorder %s1896_s15, %s1656_s29  ;;  %p1663_p6 = scmp.lt.u32.totalorder %s1661_s27, %s1656_s29 }
  0x3a   : > { %p1665_p13 = scmp.lt.u32.totalorder %s1656_s29, %s1896_s15 }
  0x3b   : > { %p1659_p3 = pnand %p1657_p0, %p1856_p12  ;;  %p1664_p11 = por %p1663_p6, %p1662_p5 }
  0x3d   : > { %p1660_p4 = pneg %p1659_p3  ;;  %p1666_p1 = por %p1665_p13, %p1664_p11 }
  0x3f   : > { %p1667_p2 = pnand %p1666_p1, %p1660_p4 }
  0x41   : > { %1670 = shalt.err (!%p1667_p2)
}
  0x42   : > { %s1671_s26 = scalar_lea.vmem %s1901_s22, 8192  ;;  %s1759_s21 = smov [#allocation3]  }
  0x43   : > { %p1672_p7 = scmp.ne.s32.totalorder %s1901_s22, %s1671_s26  ;;  %s1676_s30 = sshll.u32 %s1759_s21, 4  ;;  %s1677_s30 = int_to_ptr.vmem [resolvable:$false] %s1676_s30 }
  0x44   : > { %s1678_s5 = scalar_lea.vmem %s1677_s30, 16384  ;;  %p1679_p3 = scmp.lt.s32.totalorder %s1901_s22, %s1677_s30 }
  0x45   : > { %p1674_p9 = pnand %p1672_p7, %p1856_p12  ;;  %p1680_p10 = scmp.lt.s32.totalorder %s1678_s5, %s1671_s26 }
  0x47   : > { %p1675_p0 = pneg %p1674_p9  ;;  %p1681_p5 = por %p1680_p10, %p1679_p3 }
  0x49   : > { %p1682_p6 = pnand %p1681_p5, %p1675_p0 }
  0x4b   : > { %1685 = shalt.err (!%p1682_p6)
}
  0x4c   : > { %1519 = dma.hbm_to_vmem [thread:$0]  (!%p1832_p8), %s1896_s15, 8192, %s1901_s22, %s167_s8, %s1757_s7, %s1757_s7, %s1758_s10  }
  0x4d   : > { %s1314_s29 = sshll.u32 %s1754_s18, 6  ;;  %s212_s27 = scalar_lea.vmem [#allocation7], %s1283_s6 }
  0x4e   : > { %s220_s13 = sshll.u32 %s212_s27, 4  ;;  %s218_s21 = scalar_lea.hbm %s2282_s3, %s1314_s29  ;;  %s221_s13 = int_to_ptr.vmem [resolvable:$true] %s220_s13 }
  0x4f   : > { %s1686_s30 = scalar_lea.hbm %s218_s21, 64  ;;  %s1691_s2 = scalar_lea.hbm %s2282_s3, 128 }
  0x50   : > { %p1687_p10 = scmp.ne.s32.totalorder %s218_s21, %s1686_s30  ;;  %p1692_p13 = scmp.lt.u32.totalorder %s218_s21, %s2282_s3 }
  0x51   : > { %p1693_p1 = scmp.lt.u32.totalorder %s1691_s2, %s1686_s30  ;;  %p1695_p7 = scmp.lt.u32.totalorder %s1686_s30, %s218_s21 }
  0x52   : > { %p1689_p4 = pnand %p1687_p10, %p1856_p12 }
  0x53   : > { %p1694_p2 = por %p1693_p1, %p1692_p13 }
  0x54   : > { %p1690_p11 = pneg %p1689_p4 }
  0x55   : > { %p1696_p9 = por %p1695_p7, %p1694_p2 }
  0x57   : > { %p1697_p0 = pnand %p1696_p9, %p1690_p11 }
  0x59   : > { %1700 = shalt.err (!%p1697_p0)
}
  0x5a   : > { %s1701_s18 = scalar_lea.vmem %s221_s13, 64  ;;  %s1760_s25 = smov [#allocation7]  }
  0x5b   : > { %p1702_p3 = scmp.ne.s32.totalorder %s221_s13, %s1701_s18  ;;  %s1706_s10 = sshll.u32 %s1760_s25, 4  ;;  %s1707_s10 = int_to_ptr.vmem [resolvable:$false] %s1706_s10 }
  0x5c   : > { %s1708_s1 = scalar_lea.vmem %s1707_s10, 128  ;;  %p1709_p10 = scmp.lt.s32.totalorder %s221_s13, %s1707_s10 }
  0x5d   : > { %p1704_p5 = pnand %p1702_p3, %p1856_p12  ;;  %p1710_p4 = scmp.lt.s32.totalorder %s1708_s1, %s1701_s18 }
  0x5f   : > { %p1705_p6 = pneg %p1704_p5  ;;  %p1711_p8 = por %p1710_p4, %p1709_p10 }
  0x61   : > { %p1712_p1 = pnand %p1711_p8, %p1705_p6 }
  0x63   : > { %1715 = shalt.err (!%p1712_p1)
}
  0x64   : > { %p2297_p13 = scmp.ne.s32.totalorder %s2290_s28, 0  ;;  %p2298_p11 = scmp.ne.s32.totalorder %s2295_s12, 0 }
  0x65   : > { %s1952_s2 = sand.u32 (!%p2298_p11), 1, %s1746_s16   ;;  %p2299_p12 = scmp.ne.s32.totalorder (!%p2298_p11), %s2289_s24, 0 }
  0x66   : > { %1525 = dma.hbm_to_vmem [thread:$0]  (!%p2297_p13), %s218_s21, 64, %s221_s13, %s1850_s9  }
  0x67   : > { %229 = sbr.rel (%p2298_p11) target bundleno = 703 (0x2bf), region = 36  ;;  %s1287_s23 = sshll.u32 (!%p2298_p11), %s1952_s2, 9 }
  0x68   : > { %s232_s11 = scalar_lea.sflag (!%p2298_p11), [#allocation4], %s1952_s2  ;;  %s1956_s15 = scalar_lea.vmem (!%p2298_p11), [#allocation3], %s1287_s23 }
  0x6e   : > { %1733 = dma.done.wait (%p2299_p12), %s232_s11, 8192  }
  0x6f   : > { %1735 = vsyncadd (%p2299_p12), %s232_s11, 4294959104  ;;  %s240_s28 = sand.u32 1, %s1806_s19   ;;  %s1963_s12 = scalar_lea.vmem [#allocation5], %s1287_s23 }
  0x70   : > { %s241_s9 = scalar_lea.sflag [#allocation6], %s240_s28 }
  0x71   : > { %1737 = dma.done.wait (%p2299_p12), %s241_s9, 8256  }
  0x72   : > { %1739 = vsyncadd (%p2299_p12), %s241_s9, 4294959040  ;;  %v1761_v0 = vmov 0.0   ;;  %v298_v1 = vld [vmem:[%s1956_s15 + $0x8] sm:$0xff]  ;;  %v300_v3 = vld [vmem:[%s1956_s15 + $0x18] sm:$0xff]  ;;  %s1289_s26 = sshll.u32 %s1952_s2, 2  ;;  %s1316_s30 = sshll.u32 %s1806_s19, 6 }
  0x73   : > { %447 = vmatprep.mubr.f32.mxu0 %v1761_v0  ;;  %536 = vmatprep.mubr.f32.mxu1 %v1761_v0  ;;  %v302_v2 = vld [vmem:[%s1956_s15 + $0x28] sm:$0xff]  ;;  %v304_v5 = vld [vmem:[%s1956_s15 + $0x38] sm:$0xff]  ;;  %v297_v6 = vld [vmem:[%s1956_s15] sm:$0xff]  ;;  %s253_s21 = scalar_lea.vmem [#allocation7], %s1289_s26  ;;  %s2221_s5 = scalar_lea.vmem [#allocation2], %s1316_s30 }
  0x74   : > { %v1318_v4 = vpack.c.bf16 %v302_v2, %v298_v1  ;;  %v301_v7 = vld [vmem:[%s1956_s15 + $0x20] sm:$0xff]  ;;  %v1350_v8 = vpack.c.bf16 %v304_v5, %v300_v3  ;;  %v299_v10 = vld [vmem:[%s1956_s15 + $0x10] sm:$0xff]  ;;  %v306_v12 = vld [vmem:[%s1956_s15 + $0x48] sm:$0xff]  ;;  %p288_p8 = scmp.lt.s32.totalorder %s1806_s19, 1  ;;  %s1300_s2 = sshll.u32 %s1806_s19, 4 }
  0x75   : > { %v1320_v9 = vpack.c.bf16 %v301_v7, %v297_v6  ;;  %v303_v11 = vld [vmem:[%s1956_s15 + $0x30] sm:$0xff]  ;;  %v310_v14 = vld [vmem:[%s1956_s15 + $0x68] sm:$0xff]  ;;  %v308_v15 = vld [vmem:[%s1956_s15 + $0x58] sm:$0xff]  ;;  %s866_s11 = ssub.s32 1, %s1806_s19 }
  0x76   : > { %1319 = vmatprep.subr.bf16.mxu0 %v1318_v4  ;;  %v1352_v13 = vpack.c.bf16 %v303_v11, %v299_v10  ;;  %v312_v16 = vld [vmem:[%s1956_s15 + $0x78] sm:$0xff]  ;;  %1351 = vmatprep.subr.bf16.mxu1 %v1350_v8  ;;  %v1322_v17 = vpack.c.bf16 %v310_v14, %v306_v12  ;;  %v305_v19 = vld [vmem:[%s1956_s15 + $0x40] sm:$0xff]  ;;  %v307_v21 = vld [vmem:[%s1956_s15 + $0x50] sm:$0xff]  ;;  %s289_s7 = scalar_select %p288_p8, %s1806_s19, 1 }
  0x77   : > { %1321 = vmatpush1.bf16.msra.mxu0 %v1320_v9  ;;  %v1354_v18 = vpack.c.bf16 %v312_v16, %v308_v15  ;;  %v309_v20 = vld [vmem:[%s1956_s15 + $0x60] sm:$0xff]  ;;  %v311_v23 = vld [vmem:[%s1956_s15 + $0x70] sm:$0xff]  ;;  %v314_v24 = vld [vmem:[%s1956_s15 + $0x88] sm:$0xff]  ;;  %s1309_s9 = sshll.u32 %s866_s11, 4 }
  0x78   : > { %1353 = vmatpush1.bf16.msra.mxu1 %v1352_v13  ;;  %v1324_v22 = vpack.c.bf16 %v309_v20, %v305_v19  ;;  %v318_v25 = vld [vmem:[%s1956_s15 + $0xa8] sm:$0xff]  ;;  %1323 = vmatprep.subr.bf16.mxu0 %v1322_v17  ;;  %v1356_v26 = vpack.c.bf16 %v311_v23, %v307_v21  ;;  %v316_v28 = vld [vmem:[%s1956_s15 + $0x98] sm:$0xff]  ;;  %v313_v30 = vld [vmem:[%s1956_s15 + $0x80] sm:$0xff]  ;;  %s1315_s18 = sshll.u32 %s289_s7, 5 }
  0x79   : > { %1355 = vmatprep.subr.bf16.mxu1 %v1354_v18  ;;  %v1326_v27 = vpack.c.bf16 %v318_v25, %v314_v24  ;;  %v320_v29 = vld [vmem:[%s1956_s15 + $0xb8] sm:$0xff]  ;;  %v317_v32 = vld [vmem:[%s1956_s15 + $0xa0] sm:$0xff]  ;;  %v315_v33 = vld [vmem:[%s1956_s15 + $0x90] sm:$0xff]  ;;  %s2242_s1 = scalar_lea.vmem %s2283_s4, %s1315_s18 }
  0x7a   : > { %v1358_v31 = vpack.c.bf16 %v320_v29, %v316_v28  ;;  %v319_v34 = vld [vmem:[%s1956_s15 + $0xb0] sm:$0xff]  ;;  %v1328_v35 = vpack.c.bf16 %v317_v32, %v313_v30  ;;  %v322_v36 = vld [vmem:[%s1956_s15 + $0xc8] sm:$0xff]  ;;  %v324_v38 = vld [vmem:[%s1956_s15 + $0xd8] sm:$0xff]  ;;  %s863_s23 = scalar_lea.vmem %s2242_s1, %s1300_s2 }
  0x7b   : > { %1325 = vmatpush1.bf16.msra.mxu0 %v1324_v22  ;;  %v326_v37 = vld [vmem:[%s1956_s15 + $0xe8] sm:$0xff]  ;;  %v1360_v39 = vpack.c.bf16 %v319_v34, %v315_v33  ;;  %v328_v41 = vld [vmem:[%s1956_s15 + $0xf8] sm:$0xff]  ;;  %v321_v42 = vld [vmem:[%s1956_s15 + $0xc0] sm:$0xff] }
  0x7c   : > { %1357 = vmatpush1.bf16.msra.mxu1 %v1356_v26  ;;  %1327 = vmatprep.subr.bf16.mxu0 %v1326_v27  ;;  %v1330_v40 = vpack.c.bf16 %v326_v37, %v322_v36  ;;  %v325_v43 = vld [vmem:[%s1956_s15 + $0xe0] sm:$0xff]  ;;  %v1362_v44 = vpack.c.bf16 %v328_v41, %v324_v38  ;;  %v323_v45 = vld [vmem:[%s1956_s15 + $0xd0] sm:$0xff]  ;;  %v330_v47 = vld [vmem:[%s1956_s15 + $0x108] sm:$0xff] }
  0x7d   : > { %1359 = vmatprep.subr.bf16.mxu1 %v1358_v31  ;;  %v327_v46 = vld [vmem:[%s1956_s15 + $0xf0] sm:$0xff]  ;;  %v334_v48 = vld [vmem:[%s1956_s15 + $0x128] sm:$0xff]  ;;  %v332_v49 = vld [vmem:[%s1956_s15 + $0x118] sm:$0xff]  ;;  %v1332_v51 = vpack.c.bf16 %v325_v43, %v321_v42 }
  0x7e   : > { %v336_v50 = vld [vmem:[%s1956_s15 + $0x138] sm:$0xff]  ;;  %v1364_v52 = vpack.c.bf16 %v327_v46, %v323_v45  ;;  %v1334_v53 = vpack.c.bf16 %v334_v48, %v330_v47  ;;  %v329_v54 = vld [vmem:[%s1956_s15 + $0x100] sm:$0xff]  ;;  %v331_v56 = vld [vmem:[%s1956_s15 + $0x110] sm:$0xff] }
  0x7f   : > { %1329 = vmatpush1.bf16.msra.mxu0 %v1328_v35  ;;  %v333_v55 = vld [vmem:[%s1956_s15 + $0x120] sm:$0xff]  ;;  %v1366_v57 = vpack.c.bf16 %v336_v50, %v332_v49  ;;  %v335_v58 = vld [vmem:[%s1956_s15 + $0x130] sm:$0xff]  ;;  %v338_v59 = vld [vmem:[%s1956_s15 + $0x148] sm:$0xff] }
  0x80   : > { %1361 = vmatpush1.bf16.msra.mxu1 %v1360_v39  ;;  %1331 = vmatprep.subr.bf16.mxu0 %v1330_v40  ;;  %v342_v60 = vld [vmem:[%s1956_s15 + $0x168] sm:$0xff]  ;;  %v340_v61 = vld [vmem:[%s1956_s15 + $0x158] sm:$0xff]  ;;  %v1336_v63 = vpack.c.bf16 %v333_v55, %v329_v54  ;;  %v1368_v1 = vpack.c.bf16 %v335_v58, %v331_v56  ;;  %v337_v3 = vld [vmem:[%s1956_s15 + $0x140] sm:$0xff] }
  0x81   : > { %1363 = vmatprep.subr.bf16.mxu1 %v1362_v44  ;;  %v344_v62 = vld [vmem:[%s1956_s15 + $0x178] sm:$0xff]  ;;  %v1338_v2 = vpack.c.bf16 %v342_v60, %v338_v59  ;;  %v341_v4 = vld [vmem:[%s1956_s15 + $0x160] sm:$0xff]  ;;  %v339_v5 = vld [vmem:[%s1956_s15 + $0x150] sm:$0xff] }
  0x82   : > { %v1370_v6 = vpack.c.bf16 %v344_v62, %v340_v61  ;;  %v343_v7 = vld [vmem:[%s1956_s15 + $0x170] sm:$0xff]  ;;  %v346_v8 = vld [vmem:[%s1956_s15 + $0x188] sm:$0xff]  ;;  %v348_v10 = vld [vmem:[%s1956_s15 + $0x198] sm:$0xff]  ;;  %v1340_v12 = vpack.c.bf16 %v341_v4, %v337_v3 }
  0x83   : > { %1333 = vmatpush1.bf16.msra.mxu0 %v1332_v51  ;;  %v350_v9 = vld [vmem:[%s1956_s15 + $0x1a8] sm:$0xff]  ;;  %v352_v11 = vld [vmem:[%s1956_s15 + $0x1b8] sm:$0xff]  ;;  %v1372_v13 = vpack.c.bf16 %v343_v7, %v339_v5  ;;  %v345_v15 = vld [vmem:[%s1956_s15 + $0x180] sm:$0xff] }
  0x84   : > { %1365 = vmatpush1.bf16.msra.mxu1 %v1364_v52  ;;  %1335 = vmatprep.subr.bf16.mxu0 %v1334_v53  ;;  %v1342_v14 = vpack.c.bf16 %v350_v9, %v346_v8  ;;  %v349_v16 = vld [vmem:[%s1956_s15 + $0x1a0] sm:$0xff]  ;;  %v347_v17 = vld [vmem:[%s1956_s15 + $0x190] sm:$0xff]  ;;  %v1374_v18 = vpack.c.bf16 %v352_v11, %v348_v10  ;;  %v354_v20 = vld [vmem:[%s1956_s15 + $0x1c8] sm:$0xff] }
  0x85   : > { %1367 = vmatprep.subr.bf16.mxu1 %v1366_v57  ;;  %v351_v19 = vld [vmem:[%s1956_s15 + $0x1b0] sm:$0xff]  ;;  %v358_v21 = vld [vmem:[%s1956_s15 + $0x1e8] sm:$0xff]  ;;  %v356_v22 = vld [vmem:[%s1956_s15 + $0x1d8] sm:$0xff]  ;;  %v1344_v24 = vpack.c.bf16 %v349_v16, %v345_v15 }
  0x86   : > { %v360_v23 = vld [vmem:[%s1956_s15 + $0x1f8] sm:$0xff]  ;;  %v1376_v25 = vpack.c.bf16 %v351_v19, %v347_v17  ;;  %v1346_v26 = vpack.c.bf16 %v358_v21, %v354_v20  ;;  %v353_v27 = vld [vmem:[%s1956_s15 + $0x1c0] sm:$0xff]  ;;  %v355_v29 = vld [vmem:[%s1956_s15 + $0x1d0] sm:$0xff] }
  0x87   : > { %1337 = vmatpush1.bf16.msra.mxu0 %v1336_v63  ;;  %v357_v28 = vld [vmem:[%s1956_s15 + $0x1e0] sm:$0xff]  ;;  %v1378_v30 = vpack.c.bf16 %v360_v23, %v356_v22  ;;  %v359_v31 = vld [vmem:[%s1956_s15 + $0x1f0] sm:$0xff]  ;;  %v589_v32 = vld [vmem:[%s1963_s12 + $0x8] sm:$0xff]  ;;  %s1317_s15 = sshll.u32 %s866_s11, 6 }
  0x88   : > { %1369 = vmatpush1.bf16.msra.mxu1 %v1368_v1  ;;  %1339 = vmatprep.subr.bf16.mxu0 %v1338_v2  ;;  %v593_v33 = vld [vmem:[%s1963_s12 + $0x28] sm:$0xff]  ;;  %v591_v34 = vld [vmem:[%s1963_s12 + $0x18] sm:$0xff]  ;;  %v1348_v36 = vpack.c.bf16 %v357_v28, %v353_v27  ;;  %v1380_v37 = vpack.c.bf16 %v359_v31, %v355_v29  ;;  %v588_v39 = vld [vmem:[%s1963_s12] sm:$0xff]  ;;  %s2251_s28 = scalar_lea.vmem [#allocation2], %s1317_s15 }
  0x89   : > { %1371 = vmatprep.subr.bf16.mxu1 %v1370_v6  ;;  %v595_v35 = vld [vmem:[%s1963_s12 + $0x38] sm:$0xff]  ;;  %v2039_v38 = vpack.c.bf16 %v593_v33, %v589_v32  ;;  %v592_v40 = vld [vmem:[%s1963_s12 + $0x20] sm:$0xff]  ;;  %v590_v42 = vld [vmem:[%s1963_s12 + $0x10] sm:$0xff] }
  0x8a   : > { %v2043_v41 = vpack.c.bf16 %v595_v35, %v591_v34  ;;  %v594_v43 = vld [vmem:[%s1963_s12 + $0x30] sm:$0xff]  ;;  %v597_v44 = vld [vmem:[%s1963_s12 + $0x48] sm:$0xff]  ;;  %v293_v46 = vld [vmem:[%s2279_s0] sm:$0xff]  ;;  %v2052_v47 = vpack.c.bf16 %v592_v40, %v588_v39 }
  0x8b   : > { %1341 = vmatpush1.bf16.msra.mxu0 %v1340_v12  ;;  %v601_v45 = vld [vmem:[%s1963_s12 + $0x68] sm:$0xff]  ;;  %v599_v48 = vld [vmem:[%s1963_s12 + $0x58] sm:$0xff]  ;;  %v2057_v50 = vpack.c.bf16 %v594_v43, %v590_v42  ;;  %v596_v51 = vld [vmem:[%s1963_s12 + $0x40] sm:$0xff] }
  0x8c   : > { %1373 = vmatpush1.bf16.msra.mxu1 %v1372_v13  ;;  %1343 = vmatprep.subr.bf16.mxu0 %v1342_v14  ;;  %v603_v49 = vld [vmem:[%s1963_s12 + $0x78] sm:$0xff]  ;;  %v600_v52 = vld [vmem:[%s1963_s12 + $0x60] sm:$0xff]  ;;  %v2062_v53 = vpack.c.bf16 %v601_v45, %v597_v44  ;;  %v598_v54 = vld [vmem:[%s1963_s12 + $0x50] sm:$0xff] }
  0x8d   : > { %1375 = vmatprep.subr.bf16.mxu1 %v1374_v18  ;;  %v602_v55 = vld [vmem:[%s1963_s12 + $0x70] sm:$0xff]  ;;  %v2066_v56 = vpack.c.bf16 %v603_v49, %v599_v48  ;;  %v605_v57 = vld [vmem:[%s1963_s12 + $0x88] sm:$0xff]  ;;  %v2074_v60 = vpack.c.bf16 %v600_v52, %v596_v51  ;;  %v607_v61 = vld [vmem:[%s1963_s12 + $0x98] sm:$0xff] }
  0x8e   : > { %v609_v58 = vld [vmem:[%s1963_s12 + $0xa8] sm:$0xff]  ;;  %v611_v62 = vld [vmem:[%s1963_s12 + $0xb8] sm:$0xff]  ;;  %v2080_v63 = vpack.c.bf16 %v602_v55, %v598_v54  ;;  %v604_v1 = vld [vmem:[%s1963_s12 + $0x80] sm:$0xff] }
  0x8f   : > { %1345 = vmatpush1.bf16.msra.mxu0 %v1344_v24  ;;  %v294_v59 = vld [vmem:[%s2279_s0 + $0x8] sm:$0xff]  ;;  %v608_v2 = vld [vmem:[%s1963_s12 + $0xa0] sm:$0xff]  ;;  %v2086_v3 = vpack.c.bf16 %v609_v58, %v605_v57  ;;  %v606_v4 = vld [vmem:[%s1963_s12 + $0x90] sm:$0xff]  ;;  %v2091_v6 = vpack.c.bf16 %v611_v62, %v607_v61 }
  0x90   : > { %1377 = vmatpush1.bf16.msra.mxu1 %v1376_v25  ;;  %1347 = vmatprep.subr.bf16.mxu0 %v1346_v26  ;;  %v610_v5 = vld [vmem:[%s1963_s12 + $0xb0] sm:$0xff]  ;;  %v613_v7 = vld [vmem:[%s1963_s12 + $0xc8] sm:$0xff]  ;;  %v2099_v10 = vpack.c.bf16 %v608_v2, %v604_v1  ;;  %v615_v11 = vld [vmem:[%s1963_s12 + $0xd8] sm:$0xff] }
  0x91   : > { %1379 = vmatprep.subr.bf16.mxu1 %v1378_v30  ;;  %v617_v8 = vld [vmem:[%s1963_s12 + $0xe8] sm:$0xff]  ;;  %v295_v9 = vld [vmem:[%s2279_s0 + $0x10] sm:$0xff]  ;;  %v619_v12 = vld [vmem:[%s1963_s12 + $0xf8] sm:$0xff]  ;;  %v2105_v13 = vpack.c.bf16 %v610_v5, %v606_v4 }
  0x92   : > { %v612_v14 = vld [vmem:[%s1963_s12 + $0xc0] sm:$0xff]  ;;  %v614_v16 = vld [vmem:[%s1963_s12 + $0xd0] sm:$0xff]  ;;  %v2112_v17 = vpack.c.bf16 %v617_v8, %v613_v7  ;;  %v621_v19 = vld [vmem:[%s1963_s12 + $0x108] sm:$0xff]  ;;  %v2118_v21 = vpack.c.bf16 %v619_v12, %v615_v11 }
  0x93   : > { %1349 = vmatpush1.bf16.msra.mxu0 %v1348_v36  ;;  %v616_v15 = vld [vmem:[%s1963_s12 + $0xe0] sm:$0xff]  ;;  %v618_v18 = vld [vmem:[%s1963_s12 + $0xf0] sm:$0xff]  ;;  %v625_v20 = vld [vmem:[%s1963_s12 + $0x128] sm:$0xff] }
  0x94   : > { %1381 = vmatpush1.bf16.msra.mxu1 %v1380_v37  ;;  %1383 = vmatprep.subr.bf16.mxu0 %v2039_v38  ;;  %v623_v22 = vld [vmem:[%s1963_s12 + $0x118] sm:$0xff]  ;;  %v2126_v25 = vpack.c.bf16 %v616_v15, %v612_v14  ;;  %v2130_v26 = vpack.c.bf16 %v618_v18, %v614_v16  ;;  %v2132_v27 = vpack.c.bf16 %v625_v20, %v621_v19  ;;  %v620_v28 = vld [vmem:[%s1963_s12 + $0x100] sm:$0xff]  ;;  %v622_v30 = vld [vmem:[%s1963_s12 + $0x110] sm:$0xff] }
  0x95   : > { %1415 = vmatprep.subr.bf16.mxu1 %v2043_v41  ;;  %v627_v23 = vld [vmem:[%s1963_s12 + $0x138] sm:$0xff]  ;;  %v624_v29 = vld [vmem:[%s1963_s12 + $0x120] sm:$0xff]  ;;  %v626_v32 = vld [vmem:[%s1963_s12 + $0x130] sm:$0xff] }
  0x96   : > { %448 = vmatmul.mubr.f32.vlgmr.msra.gmra.mrb[0].mxu0 %v293_v46  ;;  %v296_v24 = vld [vmem:[%s2279_s0 + $0x18] sm:$0xff]  ;;  %v2139_v31 = vpack.c.bf16 %v627_v23, %v623_v22  ;;  %v629_v33 = vld [vmem:[%s1963_s12 + $0x148] sm:$0xff]  ;;  %v2148_v37 = vpack.c.bf16 %v624_v29, %v620_v28  ;;  %v2152_v39 = vpack.c.bf16 %v626_v32, %v622_v30  ;;  %v628_v42 = vld [vmem:[%s1963_s12 + $0x140] sm:$0xff] }
  0x97   : > { %537 = vmatmul.mubr.f32.vlgmr.msra.gmra.mrb[0].mxu1 %v293_v46  ;;  %1385 = vmatpush1.bf16.msra.mxu0 %v2052_v47  ;;  %v633_v34 = vld [vmem:[%s1963_s12 + $0x168] sm:$0xff]  ;;  %v631_v35 = vld [vmem:[%s1963_s12 + $0x158] sm:$0xff]  ;;  %v632_v43 = vld [vmem:[%s1963_s12 + $0x160] sm:$0xff] }
  0x98   : > { %1417 = vmatpush1.bf16.msra.mxu1 %v2057_v50  ;;  %453 = vmatprep.mubr.f32.mxu0 %v1761_v0  ;;  %v635_v36 = vld [vmem:[%s1963_s12 + $0x178] sm:$0xff]  ;;  %v2154_v40 = vpack.c.bf16 %v633_v34, %v629_v33  ;;  %v630_v44 = vld [vmem:[%s1963_s12 + $0x150] sm:$0xff]  ;;  %v637_v48 = vld [vmem:[%s1963_s12 + $0x188] sm:$0xff]  ;;  %v2170_v54 = vpack.c.bf16 %v632_v43, %v628_v42 }
  0x99   : > { %542 = vmatprep.mubr.f32.mxu1 %v1761_v0  ;;  %1387 = vmatprep.subr.bf16.mxu0 %v2062_v53  ;;  %v2160_v45 = vpack.c.bf16 %v635_v36, %v631_v35  ;;  %v634_v46 = vld [vmem:[%s1963_s12 + $0x170] sm:$0xff]  ;;  %v641_v49 = vld [vmem:[%s1963_s12 + $0x1a8] sm:$0xff]  ;;  %v639_v51 = vld [vmem:[%s1963_s12 + $0x198] sm:$0xff] }
  0x9a   : > { %454 = vmatmul.mubr.f32.gmra.mrb[2].mxu0 %v294_v59  ;;  %1419 = vmatprep.subr.bf16.mxu1 %v2066_v56  ;;  %v643_v52 = vld [vmem:[%s1963_s12 + $0x1b8] sm:$0xff]  ;;  %v1436_v55 = vpack.c.bf16 %v634_v46, %v630_v44  ;;  %v1406_v57 = vpack.c.bf16 %v641_v49, %v637_v48  ;;  %v636_v58 = vld [vmem:[%s1963_s12 + $0x180] sm:$0xff]  ;;  %v638_v61 = vld [vmem:[%s1963_s12 + $0x190] sm:$0xff] }
  0x9b   : > { %543 = vmatmul.mubr.f32.gmra.mrb[2].mxu1 %v294_v59  ;;  %1389 = vmatpush1.bf16.msra.mxu0 %v2074_v60  ;;  %v640_v59 = vld [vmem:[%s1963_s12 + $0x1a0] sm:$0xff]  ;;  %v1438_v62 = vpack.c.bf16 %v643_v52, %v639_v51  ;;  %v642_v1 = vld [vmem:[%s1963_s12 + $0x1b0] sm:$0xff]  ;;  %v645_v2 = vld [vmem:[%s1963_s12 + $0x1c8] sm:$0xff] }
  0x9c   : > { %1421 = vmatpush1.bf16.msra.mxu1 %v2080_v63  ;;  %459 = vmatprep.mubr.f32.mxu0 %v1761_v0  ;;  %v649_v4 = vld [vmem:[%s1963_s12 + $0x1e8] sm:$0xff]  ;;  %v647_v5 = vld [vmem:[%s1963_s12 + $0x1d8] sm:$0xff]  ;;  %v1408_v8 = vpack.c.bf16 %v640_v59, %v636_v58  ;;  %v644_v12 = vld [vmem:[%s1963_s12 + $0x1c0] sm:$0xff] }
  0x9d   : > { %548 = vmatprep.mubr.f32.mxu1 %v1761_v0  ;;  %1391 = vmatprep.subr.bf16.mxu0 %v2086_v3  ;;  %v651_v7 = vld [vmem:[%s1963_s12 + $0x1f8] sm:$0xff]  ;;  %v1410_v11 = vpack.c.bf16 %v649_v4, %v645_v2  ;;  %v648_v14 = vld [vmem:[%s1963_s12 + $0x1e0] sm:$0xff]  ;;  %v646_v16 = vld [vmem:[%s1963_s12 + $0x1d0] sm:$0xff] }
  0x9e   : > { %460 = vmatmul.mubr.f32.gmra.mrb[4].mxu0 %v295_v9  ;;  %1423 = vmatprep.subr.bf16.mxu1 %v2091_v6  ;;  %v1442_v15 = vpack.c.bf16 %v651_v7, %v647_v5  ;;  %v650_v18 = vld [vmem:[%s1963_s12 + $0x1f0] sm:$0xff]  ;;  %v1412_v19 = vpack.c.bf16 %v648_v14, %v644_v12  ;;  %s1153_s12 = scalar_lea.vmem %s2242_s1, %s1309_s9 }
  0x9f   : > { %549 = vmatmul.mubr.f32.gmra.mrb[4].mxu1 %v295_v9  ;;  %1393 = vmatpush1.bf16.msra.mxu0 %v2099_v10  ;;  %v1440_v9 = vpack.c.bf16 %v642_v1, %v638_v61  ;;  %v1444_v20 = vpack.c.bf16 %v650_v18, %v646_v16 }
  0xa0   : > { %1425 = vmatpush1.bf16.msra.mxu1 %v2105_v13  ;;  %465 = vmatprep.mubr.f32.mxu0 %v1761_v0 }
  0xa1   : > { %554 = vmatprep.mubr.f32.mxu1 %v1761_v0  ;;  %1395 = vmatprep.subr.bf16.mxu0 %v2112_v17 }
  0xa2   : > { %466 = vmatmul.mubr.f32.gmra.mrb[6].mxu0 %v296_v24  ;;  %1427 = vmatprep.subr.bf16.mxu1 %v2118_v21 }
  0xa3   : > { %555 = vmatmul.mubr.f32.gmra.mrb[6].mxu1 %v296_v24  ;;  %1397 = vmatpush1.bf16.msra.mxu0 %v2126_v25 }
  0xa4   : > { %1429 = vmatpush1.bf16.msra.mxu1 %v2130_v26  ;;  %1399 = vmatprep.subr.bf16.mxu0 %v2132_v27 }
  0xa5   : > { %1431 = vmatprep.subr.bf16.mxu1 %v2139_v31  ;;  %716 = vmatprep.mubr.f32.mxu0 %v1761_v0 }
  0xa6   : > { %793 = vmatprep.mubr.f32.mxu1 %v1761_v0 }
  0xa7   : > { %1401 = vmatpush1.bf16.msra.mxu0 %v2148_v37 }
  0xa8   : > { %1433 = vmatpush1.bf16.msra.mxu1 %v2152_v39  ;;  %1403 = vmatprep.subr.bf16.mxu0 %v2154_v40 }
  0xa9   : > { %1435 = vmatprep.subr.bf16.mxu1 %v2160_v45 }
  0xab   : > { %1405 = vmatpush1.bf16.msra.mxu0 %v2170_v54 }
  0xac   : > { %1437 = vmatpush1.bf16.msra.mxu1 %v1436_v55  ;;  %1407 = vmatprep.subr.bf16.mxu0 %v1406_v57 }
  0xad   : > { %1439 = vmatprep.subr.bf16.mxu1 %v1438_v62 }
  0xaf   : > { %1409 = vmatpush1.bf16.msra.mxu0 %v1408_v8 }
  0xb0   : > { %1441 = vmatpush1.bf16.msra.mxu1 %v1440_v9  ;;  %1411 = vmatprep.subr.bf16.mxu0 %v1410_v11 }
  0xb1   : > { %1443 = vmatprep.subr.bf16.mxu1 %v1442_v15 }
  0xb3   : > { %1413 = vmatpush1.bf16.msra.mxu0 %v1412_v19 }
  0xb4   : > { %1445 = vmatpush1.bf16.msra.mxu1 %v1444_v20  ;;  %1447 = vmatprep.subr.bf16.mxu0 %v2039_v38  ;;  %v363_v38 = vlaneseq }
  0xb5   : > { %1479 = vmatprep.subr.bf16.mxu1 %v2043_v41 }
  0xb6   : > { %717 = vmatmul.mubr.f32.vlgmr.msra.gmra.mrb[8].mxu0 %v1761_v0  ;;  %v364_v41 = vshrl.u32 %v363_v38, 7 }
  0xb7   : > { %794 = vmatmul.mubr.f32.vlgmr.msra.gmra.mrb[8].mxu1 %v1761_v0  ;;  %722 = vmatprep.mubr.f32.mxu0 %v1761_v0 }
  0xb8   : > { %799 = vmatprep.mubr.f32.mxu1 %v1761_v0  ;;  %1449 = vmatpush1.bf16.msra.mxu0 %v2052_v47  ;;  %v365_v47 = vsub.s32 0, %v364_v41 }
  0xb9   : > { %1481 = vmatpush1.bf16.msra.mxu1 %v2057_v50  ;;  %1451 = vmatprep.subr.bf16.mxu0 %v2062_v53  ;;  %v361_v50 = vld [vmem:[%s253_s21] sm:$0xf]  ;;  %v369_v53 = vsub.s32 1, %v364_v41 }
  0xba   : > { %723 = vmatmul.mubr.f32.gmra.mrb[10].mxu0 %v1761_v0  ;;  %1483 = vmatprep.subr.bf16.mxu1 %v2066_v56  ;;  %v373_v56 = vsub.s32 2, %v364_v41 }
  0xbb   : > { %800 = vmatmul.mubr.f32.gmra.mrb[10].mxu1 %v1761_v0  ;;  %1006 = vmatprep.mubr.f32.mxu0 %v1761_v0 }
  0xbc   : > { %1453 = vmatpush1.bf16.msra.mxu0 %v2074_v60  ;;  %1083 = vmatprep.mubr.f32.mxu1 %v1761_v0  ;;  %v377_v60 = vsub.s32 3, %v364_v41 }
  0xbd   : > { %1485 = vmatpush1.bf16.msra.mxu1 %v2080_v63  ;;  %1455 = vmatprep.subr.bf16.mxu0 %v2086_v3  ;;  %v366_v63 = vrot.slane %v361_v50, %v365_v47  ;;  %v370_v3 = vrot.slane %v361_v50, %v369_v53 }
  0xbe   : > { %1487 = vmatprep.subr.bf16.mxu1 %v2091_v6  ;;  %v374_v6 = vrot.slane %v361_v50, %v373_v56 }
  0xc0   : > { %1457 = vmatpush1.bf16.msra.mxu0 %v2099_v10  ;;  %v378_v10 = vrot.slane %v361_v50, %v377_v60 }
  0xc1   : > { %1489 = vmatpush1.bf16.msra.mxu1 %v2105_v13  ;;  %1459 = vmatprep.subr.bf16.mxu0 %v2112_v17 }
  0xc2   : > { %1491 = vmatprep.subr.bf16.mxu1 %v2118_v21 }
  0xc4   : > { %1461 = vmatpush1.bf16.msra.mxu0 %v2126_v25 }
  0xc5   : > { %1493 = vmatpush1.bf16.msra.mxu1 %v2130_v26  ;;  %1463 = vmatprep.subr.bf16.mxu0 %v2132_v27 }
  0xc6   : > { %1495 = vmatprep.subr.bf16.mxu1 %v2139_v31 }
  0xc8   : > { %1465 = vmatpush1.bf16.msra.mxu0 %v2148_v37 }
  0xc9   : > { %1497 = vmatpush1.bf16.msra.mxu1 %v2152_v39  ;;  %1467 = vmatprep.subr.bf16.mxu0 %v2154_v40 }
  0xca   : > { %1499 = vmatprep.subr.bf16.mxu1 %v2160_v45 }
  0xcc   : > { %1469 = vmatpush1.bf16.msra.mxu0 %v2170_v54 }
  0xcd   : > { %1501 = vmatpush1.bf16.msra.mxu1 %v1436_v55  ;;  %1471 = vmatprep.subr.bf16.mxu0 %v1406_v57 }
  0xce   : > { %1503 = vmatprep.subr.bf16.mxu1 %v1438_v62 }
  0xd0   : > { %1473 = vmatpush1.bf16.msra.mxu0 %v1408_v8 }
  0xd1   : > { %1505 = vmatpush1.bf16.msra.mxu1 %v1440_v9  ;;  %1475 = vmatprep.subr.bf16.mxu0 %v1410_v11 }
  0xd2   : > { %1507 = vmatprep.subr.bf16.mxu1 %v1442_v15 }
  0xd4   : > { %1477 = vmatpush1.bf16.msra.mxu0 %v1412_v19 }
  0xd5   : > { %1509 = vmatpush1.bf16.msra.mxu1 %v1444_v20 }
 0x169   : > { %v449_v13 = vpop.f32.mrb[0].mxu0 }
 0x16a   : > { %v450_v17 = vadd.f32 %v449_v13, %v366_v63  ;;  %v451_v21 = vpop.f32.mrb[1].mxu0  ;;  %v538_v22 = vpop.f32.mrb[0].mxu1 }
 0x16b   : > { %v452_v23 = vadd.f32 %v451_v21, %v370_v3  ;;  %v539_v24 = vadd.f32 %v538_v22, %v374_v6  ;;  %v540_v25 = vpop.f32.mrb[1].mxu1 }
 0x16c   : > { %561 = vst [vmem:[#allocation2] sm:$0xff] %v450_v17  ;;  %v541_v26 = vadd.f32 %v540_v25, %v378_v10 }
 0x16d   : > { %562 = vst [vmem:[#allocation2 + $0x8] sm:$0xff] %v452_v23  ;;  %563 = vst [vmem:[#allocation2 + $0x10] sm:$0xff] %v539_v24  ;;  %v455_v27 = vpop.f32.mrb[2].mxu0 }
 0x16e   : > { %564 = vst [vmem:[#allocation2 + $0x18] sm:$0xff] %v541_v26  ;;  %v456_v28 = vadd.f32 %v455_v27, %v366_v63  ;;  %v544_v29 = vpop.f32.mrb[2].mxu1  ;;  %v457_v30 = vpop.f32.mrb[3].mxu0 }
 0x16f   : > { %v545_v31 = vadd.f32 %v544_v29, %v374_v6  ;;  %v458_v32 = vadd.f32 %v457_v30, %v370_v3  ;;  %v546_v33 = vpop.f32.mrb[3].mxu1 }
 0x170   : > { %565 = vst [vmem:[#allocation2 + $0x20] sm:$0xff] %v456_v28  ;;  %v547_v34 = vadd.f32 %v546_v33, %v378_v10 }
 0x171   : > { %567 = vst [vmem:[#allocation2 + $0x30] sm:$0xff] %v545_v31  ;;  %566 = vst [vmem:[#allocation2 + $0x28] sm:$0xff] %v458_v32  ;;  %v461_v35 = vpop.f32.mrb[4].mxu0 }
 0x172   : > { %568 = vst [vmem:[#allocation2 + $0x38] sm:$0xff] %v547_v34  ;;  %v462_v36 = vadd.f32 %v461_v35, %v366_v63  ;;  %v550_v37 = vpop.f32.mrb[4].mxu1  ;;  %v463_v39 = vpop.f32.mrb[5].mxu0 }
 0x173   : > { %v551_v40 = vadd.f32 %v550_v37, %v374_v6  ;;  %v464_v42 = vadd.f32 %v463_v39, %v370_v3  ;;  %v552_v43 = vpop.f32.mrb[5].mxu1 }
 0x174   : > { %569 = vst [vmem:[#allocation2 + $0x40] sm:$0xff] %v462_v36  ;;  %v553_v44 = vadd.f32 %v552_v43, %v378_v10 }
 0x175   : > { %571 = vst [vmem:[#allocation2 + $0x50] sm:$0xff] %v551_v40  ;;  %570 = vst [vmem:[#allocation2 + $0x48] sm:$0xff] %v464_v42  ;;  %v467_v45 = vpop.f32.mrb[6].mxu0 }
 0x176   : > { %572 = vst [vmem:[#allocation2 + $0x58] sm:$0xff] %v553_v44  ;;  %v468_v46 = vadd.f32 %v467_v45, %v366_v63  ;;  %v556_v48 = vpop.f32.mrb[6].mxu1  ;;  %v469_v49 = vpop.f32.mrb[7].mxu0 }
 0x177   : > { %v557_v51 = vadd.f32 %v556_v48, %v374_v6  ;;  %v470_v52 = vadd.f32 %v469_v49, %v370_v3  ;;  %v558_v54 = vpop.f32.mrb[7].mxu1 }
 0x178   : > { %573 = vst [vmem:[#allocation2 + $0x60] sm:$0xff] %v468_v46  ;;  %v559_v55 = vadd.f32 %v558_v54, %v378_v10 }
 0x179   : > { %575 = vst [vmem:[#allocation2 + $0x70] sm:$0xff] %v557_v51  ;;  %574 = vst [vmem:[#allocation2 + $0x68] sm:$0xff] %v470_v52 }
 0x17a   : > { %576 = vst [vmem:[#allocation2 + $0x78] sm:$0xff] %v559_v55 }
 0x181   : > { %v580_v57 = vld [vmem:[%s2221_s5] sm:$0xff]  ;;  %v581_v62 = vld [vmem:[%s2221_s5 + $0x8] sm:$0xff]  ;;  %v583_v19 = vld [vmem:[%s2221_s5 + $0x18] sm:$0xff] }
 0x182   : > { %v584_v8 = vld [vmem:[%s2221_s5 + $0x20] sm:$0xff]  ;;  %v585_v14 = vld [vmem:[%s2221_s5 + $0x28] sm:$0xff]  ;;  %v587_v47 = vld [vmem:[%s2221_s5 + $0x38] sm:$0xff] }
 0x183   : > { %v582_v50 = vld [vmem:[%s2221_s5 + $0x10] sm:$0xff]  ;;  %v870_v52 = vld [vmem:[%s2251_s28] sm:$0xff] }
 0x184   : > { %v586_v10 = vld [vmem:[%s2221_s5 + $0x30] sm:$0xff] }
 0x189   : > { %v718_v58 = vpop.f32.mrb[8].mxu0 }
 0x18a   : > { %v806_v59 = vadd.f32 %v718_v58, %v580_v57  ;;  %v795_v61 = vpop.f32.mrb[8].mxu1  ;;  %v720_v1 = vpop.f32.mrb[9].mxu0  ;;  %v871_v58 = vld [vmem:[%s2251_s28 + $0x8] sm:$0xff] }
 0x18b   : > { %v807_v2 = vadd.f32 %v720_v1, %v581_v62  ;;  %v797_v4 = vpop.f32.mrb[9].mxu1  ;;  %v808_v60 = vadd.f32 %v795_v61, %v582_v50 }
 0x18c   : > { %v1294_v5 = vmul.f32 -1.442695, %v806_v59  ;;  %v809_v38 = vadd.f32 %v797_v4, %v583_v19  ;;  %v877_v19 = vld [vmem:[%s2251_s28 + $0x38] sm:$0xff] }
 0x18d   : > { %v1296_v7 = vmul.f32 -1.442695, %v807_v2  ;;  %v724_v9 = vpop.f32.mrb[10].mxu0  ;;  %v874_v2 = vld [vmem:[%s2251_s28 + $0x20] sm:$0xff] }
 0x18e   : > { %1562 = vpow2.f32 %v1294_v5  ;;  %v810_v11 = vadd.f32 %v724_v9, %v584_v8  ;;  %v801_v12 = vpop.f32.mrb[10].mxu1  ;;  %v726_v15 = vpop.f32.mrb[11].mxu0  ;;  %v1298_v53 = vmul.f32 -1.442695, %v809_v38  ;;  %v875_v8 = vld [vmem:[%s2251_s28 + $0x28] sm:$0xff] }
 0x18f   : > { %1564 = vpow2.f32 %v1296_v7  ;;  %v811_v16 = vadd.f32 %v726_v15, %v585_v14  ;;  %v803_v18 = vpop.f32.mrb[11].mxu1  ;;  %v812_v21 = vadd.f32 %v801_v12, %v586_v10  ;;  %v873_v14 = vld [vmem:[%s2251_s28 + $0x18] sm:$0xff] }
 0x190   : > { %v1295_v20 = vmul.f32 -1.442695, %v810_v11  ;;  %v813_v56 = vadd.f32 %v803_v18, %v587_v47 }
 0x191   : > { %v1297_v41 = vmul.f32 -1.442695, %v811_v16 }
 0x192   : > { %1566 = vpow2.f32 %v1295_v20  ;;  %v1299_v13 = vmul.f32 -1.442695, %v813_v56  ;;  %v872_v20 = vld [vmem:[%s2251_s28 + $0x10] sm:$0xff] }
 0x193   : > { %1568 = vpow2.f32 %v1297_v41 }
 0x194   : > { %1570 = vpow2.f32 %v1298_v53 }
 0x195   : > { %1572 = vtanh.f32 %v808_v60  ;;  %v876_v60 = vld [vmem:[%s2251_s28 + $0x30] sm:$0xff] }
 0x198   : > { %v1563_v63 = vpop.eup %1562 }
 0x199   : > { %v1565_v3 = vpop.eup %1564  ;;  %v820_v6 = vadd.f32 1.0, %v1563_v63 }
 0x19a   : > { %v832_v17 = vadd.f32 1.0, %v1565_v3 }
 0x19b   : > { %1574 = vrcp.f32 %v820_v6 }
 0x19c   : > { %v1567_v22 = vpop.eup %1566  ;;  %1576 = vrcp.f32 %v832_v17 }
 0x19d   : > { %v1569_v23 = vpop.eup %1568  ;;  %v821_v24 = vadd.f32 1.0, %v1567_v22  ;;  %1578 = vpow2.f32 %v1299_v13 }
 0x19e   : > { %1580 = vtanh.f32 %v812_v21  ;;  %v833_v25 = vadd.f32 1.0, %v1569_v23  ;;  %v1571_v26 = vpop.eup %1570 }
 0x19f   : > { %1582 = vrcp.f32 %v821_v24  ;;  %v1573_v27 = vpop.eup %1572  ;;  %v846_v31 = vadd.f32 1.0, %v1571_v26 }
 0x1a0   : > { %1584 = vrcp.f32 %v833_v25 }
 0x1a1   : > { %1586 = vrcp.f32 %v846_v31 }
 0x1a5   : > { %v1575_v28 = vpop.eup %1574 }
 0x1a6   : > { %v1577_v29 = vpop.eup %1576  ;;  %v854_v30 = vmul.f32 %v1575_v28, %v1573_v27 }
 0x1a7   : > { %v1579_v32 = vpop.eup %1578  ;;  %v852_v33 = vmul.f32 0.0, %v1577_v29 }
 0x1a8   : > { %v1581_v34 = vpop.eup %1580  ;;  %v847_v40 = vadd.f32 1.0, %v1579_v32 }
 0x1a9   : > { %v1583_v35 = vpop.eup %1582  ;;  %v2232_v36 = vadd.f32 %v854_v30, %v852_v33 }
 0x1aa   : > { %v1585_v37 = vpop.eup %1584  ;;  %v855_v39 = vmul.f32 %v1583_v35, %v1581_v34 }
 0x1ab   : > { %1588 = vtanh.f32 %v2232_v36  ;;  %v853_v42 = vmul.f32 0.0, %v1585_v37  ;;  %v1587_v44 = vpop.eup %1586 }
 0x1ac   : > { %1590 = vrcp.f32 %v847_v40 }
 0x1ad   : > { %v2236_v43 = vadd.f32 %v855_v39, %v853_v42 }
 0x1af   : > { %1592 = vtanh.f32 %v2236_v43 }
 0x1b5   : > { %v1589_v45 = vpop.eup %1588 }
 0x1b6   : > { %v860_v46 = vmul.f32 %v1589_v45, %v1587_v44  ;;  %v1591_v48 = vpop.eup %1590 }
 0x1b8   : > { %1007 = vmatmul.mubr.f32.vlgmr.msra.gmra.mrb[12].mxu0 %v860_v46  ;;  %1084 = vmatmul.mubr.f32.vlgmr.msra.gmra.mrb[12].mxu1 %v860_v46  ;;  %864 = vst [vmem:[%s863_s23] sm:$0xff] %v860_v46 }
 0x1b9   : > { %v1593_v49 = vpop.eup %1592  ;;  %1012 = vmatprep.mubr.f32.mxu0 %v1761_v0  ;;  %1089 = vmatprep.mubr.f32.mxu1 %v1761_v0 }
 0x1ba   : > { %v861_v51 = vmul.f32 %v1593_v49, %v1591_v48 }
 0x1bc   : > { %865 = vst [vmem:[%s863_s23 + $0x8] sm:$0xff] %v861_v51  ;;  %1013 = vmatmul.mubr.f32.gmra.mrb[14].mxu0 %v861_v51  ;;  %1090 = vmatmul.mubr.f32.gmra.mrb[14].mxu1 %v861_v51 }
 0x28b   : > { %v1008_v54 = vpop.f32.mrb[12].mxu0  ;;  %v1085_v55 = vpop.f32.mrb[12].mxu1 }
 0x28c   : > { %v1096_v57 = vadd.f32 %v1008_v54, %v870_v52  ;;  %v1010_v0 = vpop.f32.mrb[13].mxu0  ;;  %v1087_v59 = vpop.f32.mrb[13].mxu1  ;;  %v1098_v47 = vadd.f32 %v1085_v55, %v872_v20 }
 0x28d   : > { %v1097_v61 = vadd.f32 %v1010_v0, %v871_v58  ;;  %v1099_v16 = vadd.f32 %v1087_v59, %v873_v14 }
 0x28e   : > { %v1303_v62 = vmul.f32 -1.442695, %v1096_v57 }
 0x28f   : > { %v1305_v1 = vmul.f32 -1.442695, %v1097_v61  ;;  %v1014_v4 = vpop.f32.mrb[14].mxu0  ;;  %v1091_v5 = vpop.f32.mrb[14].mxu1  ;;  %v1307_v38 = vmul.f32 -1.442695, %v1099_v16 }
 0x290   : > { %1594 = vpow2.f32 %v1303_v62  ;;  %v1100_v7 = vadd.f32 %v1014_v4, %v874_v2  ;;  %v1016_v9 = vpop.f32.mrb[15].mxu0  ;;  %v1093_v11 = vpop.f32.mrb[15].mxu1  ;;  %v1102_v6 = vadd.f32 %v1091_v5, %v876_v60 }
 0x291   : > { %1596 = vpow2.f32 %v1305_v1  ;;  %v1101_v12 = vadd.f32 %v1016_v9, %v875_v8  ;;  %v1103_v41 = vadd.f32 %v1093_v11, %v877_v19 }
 0x292   : > { %v1304_v15 = vmul.f32 -1.442695, %v1100_v7 }
 0x293   : > { %v1306_v18 = vmul.f32 -1.442695, %v1101_v12  ;;  %v1308_v63 = vmul.f32 -1.442695, %v1103_v41 }
 0x294   : > { %1598 = vpow2.f32 %v1304_v15 }
 0x295   : > { %1600 = vpow2.f32 %v1306_v18 }
 0x296   : > { %1602 = vpow2.f32 %v1307_v38 }
 0x297   : > { %1604 = vtanh.f32 %v1098_v47 }
 0x29a   : > { %v1595_v50 = vpop.eup %1594 }
 0x29b   : > { %v1597_v53 = vpop.eup %1596  ;;  %v1110_v56 = vadd.f32 1.0, %v1595_v50 }
 0x29c   : > { %v1122_v3 = vadd.f32 1.0, %v1597_v53 }
 0x29d   : > { %1606 = vrcp.f32 %v1110_v56 }
 0x29e   : > { %v1599_v10 = vpop.eup %1598  ;;  %1608 = vrcp.f32 %v1122_v3 }
 0x29f   : > { %v1601_v13 = vpop.eup %1600  ;;  %v1111_v17 = vadd.f32 1.0, %v1599_v10  ;;  %1610 = vpow2.f32 %v1308_v63 }
 0x2a0   : > { %1612 = vtanh.f32 %v1102_v6  ;;  %v1123_v21 = vadd.f32 1.0, %v1601_v13  ;;  %v1603_v22 = vpop.eup %1602 }
 0x2a1   : > { %1614 = vrcp.f32 %v1111_v17  ;;  %v1605_v23 = vpop.eup %1604  ;;  %v1136_v27 = vadd.f32 1.0, %v1603_v22 }
 0x2a2   : > { %1616 = vrcp.f32 %v1123_v21 }
 0x2a3   : > { %1618 = vrcp.f32 %v1136_v27 }
 0x2a7   : > { %v1607_v24 = vpop.eup %1606 }
 0x2a8   : > { %v1609_v25 = vpop.eup %1608  ;;  %v1144_v26 = vmul.f32 %v1607_v24, %v1605_v23 }
 0x2a9   : > { %v1611_v28 = vpop.eup %1610  ;;  %v1142_v29 = vmul.f32 %v1609_v25, %v2232_v36 }
 0x2aa   : > { %v1613_v30 = vpop.eup %1612  ;;  %v1137_v35 = vadd.f32 1.0, %v1611_v28 }
 0x2ab   : > { %v1615_v31 = vpop.eup %1614  ;;  %v1146_v32 = vadd.f32 %v1144_v26, %v1142_v29 }
 0x2ac   : > { %v1617_v33 = vpop.eup %1616  ;;  %v1145_v34 = vmul.f32 %v1615_v31, %v1613_v30 }
 0x2ad   : > { %1620 = vtanh.f32 %v1146_v32  ;;  %v1143_v37 = vmul.f32 %v1617_v33, %v2236_v43  ;;  %v1619_v40 = vpop.eup %1618 }
 0x2ae   : > { %1622 = vrcp.f32 %v1137_v35 }
 0x2af   : > { %v1147_v39 = vadd.f32 %v1145_v34, %v1143_v37 }
 0x2b1   : > { %1624 = vtanh.f32 %v1147_v39 }
 0x2b7   : > { %v1621_v42 = vpop.eup %1620 }
 0x2b8   : > { %v1150_v36 = vmul.f32 %v1621_v42, %v1619_v40  ;;  %v1623_v44 = vpop.eup %1622 }
 0x2ba   : > { %1154 = vst [vmem:[%s1153_s12] sm:$0xff] %v1150_v36 }
 0x2bb   : > { %v1625_v45 = vpop.eup %1624 }
 0x2bc   : > { %v1151_v46 = vmul.f32 %v1625_v45, %v1623_v44 }
 0x2be   : > { %1155 = vst [vmem:[%s1153_s12 + $0x8] sm:$0xff] %v1151_v46 }
 0x2bf PF: > { %s2300_s24 = sld [smem:[#allocation10_spill]]  ;;  %p17_p2 = scmp.ge.s32.totalorder %s1809_s20, 4  }
 0x2c0   : > { %s2301_s15 = smov %s1746_s16  ;;  %s2302_s16 = smov %s1750_s17 }
 0x2c1   : > { %s2304_s18 = smov %s1809_s20  ;;  %19 = sbr.rel (!%p17_p2) target bundleno = 8 (0x8), region = 104 }
 0x2c5   : > { %s2303_s17 = smov %s2300_s24 }
 0x2c8   :  { %1177 = vsyncpa [#allocation4], 1 }
 0x2c9   :  { %1179 = vsyncpa [#allocation4 + $0x1], 1 }
 0x2ca   :  { %1180 = vsyncpa [#allocation6], 1 }
 0x2cb   :  { %1182 = vsyncpa [#allocation6 + $0x1], 1 }

// kernel: _lambda_.9
= control target key start
LH: loop header
LB: loop body
LE: loop exit
PB: predicated region body
PF: predicated region fallthrough
CT: control target
= control target key end

     0   :  { %9 = vsyncpa [#allocation4], 0  ;;  %s6191_s0 = inlined_call_operand.vmem [shape: f32[8,8,1024], index: 0, kind: input, shape index: {}]   ;;  %s6192_s1 = inlined_call_operand.vmem [shape: f32[2,1024,512], index: 1, kind: input, shape index: {}]   ;;  %s6193_s2 = inlined_call_operand.hbm [shape: f32[2,128,512], index: 2, kind: input, shape index: {}]   ;;  %s6194_s3 = inlined_call_operand.vmem [shape: f32[2,1,512], index: 3, kind: input, shape index: {}]   ;;  %s6195_s4 = inlined_call_operand.vmem [shape: f32[2,8,128], index: 4, kind: output, shape index: {}]  }
   0x1   :  { %11 = vsyncpa [#allocation4 + $0x1], 0  ;;  %s4890_s15 = smov 0   ;;  %s4892_s16 = smov 0  }
   0x2   :  { %s4894_s17 = smov 0   ;;  %s4896_s18 = smov 0  }
   0x3 LB: > { %s4909_s19 = sadd.s32 4294967295, %s4859_s18   ;;  %s4912_s20 = sadd.s32 1, %s4859_s18   ;;  %s4859_s18 = sphi %s4896_s18, %s6202_s18   ;;  %s4855_s17 = sphi %s4894_s17, %s6201_s17   ;;  %s4851_s16 = sphi %s4892_s16, %s6200_s16   ;;  %s4847_s15 = sphi %s4890_s15, %s6199_s15  }
   0x4   : > { %s68_s21 = ssub.s32 %s4859_s18, %s4912_s20  ;;  %s71_s22 = sadd.s32 1, %s4855_s17 }
   0x5   : > { %p69_p0 = scmp.eq.s32.totalorder %s68_s21, 0  ;;  %p78_p1 = scmp.ne.s32.totalorder %s4855_s17, %s4851_s16 }
   0x6   : > { %p79_p2 = scmp.eq.s32.totalorder %s4859_s18, 0  ;;  %p84_p3 = scmp.ne.s32.totalorder %s4851_s16, %s4847_s15 }
   0x7   : > { %s4922_s23 = scalar_select %p69_p0, %s4855_s17, %s71_s22  }
   0x8   : > { %p80_p4 = por %p79_p2, %p78_p1  ;;  %p85_p5 = scmp.eq.s32.totalorder %s4909_s19, 0 }
   0x9   : > { %p4631_p6 = scmp.lt.s32.totalorder %s4859_s18, 2  ;;  %s171_s25 = sand.u32 1, %s4855_s17  }
   0xa   : > { %p4926_p7 = por %p85_p5, %p84_p3  ;;  %s3400_s26 = sshll.u32 %s171_s25, 9 }
   0xb   : > { %s3469_s27 = sshll.u32 %s4859_s18, 13  ;;  %s175_s5 = scalar_lea.vmem [#allocation3], %s3400_s26 }
   0xc   : > { %s4935_s30 = scalar_lea.hbm %s6193_s2, %s3469_s27  ;;  %s182_s6 = sshll.u32 %s175_s5, 4  ;;  %s4937_s6 = int_to_ptr.vmem [resolvable:$true] %s182_s6 }
   0xd   : > { %p4939_p8 = pnand %p4631_p6, %p80_p4  ;;  %s4944_s8 = scalar_lea.sflag [#allocation4], %s171_s25 }
   0xe   : > { %s4795_s9 = scalar_lea.hbm %s4935_s30, 8192  ;;  %s4800_s12 = scalar_lea.hbm %s6193_s2, 16384 }
   0xf   : > { %p4796_p10 = scmp.ne.s32.totalorder %s4935_s30, %s4795_s9  ;;  %p4797_p11 = pneg %p4939_p8 }
  0x10   : > { %p4801_p0 = scmp.lt.u32.totalorder %s4935_s30, %s6193_s2  ;;  %p4802_p1 = scmp.lt.u32.totalorder %s4800_s12, %s4795_s9 }
  0x11   : > { %p4798_p12 = pnand %p4797_p11, %p4796_p10  ;;  %p4804_p3 = scmp.lt.u32.totalorder %s4795_s9, %s4935_s30 }
  0x12   : > { %p4803_p2 = por %p4802_p1, %p4801_p0 }
  0x13   : > { %p4799_p13 = pneg %p4798_p12 }
  0x14   : > { %p4805_p4 = por %p4804_p3, %p4803_p2 }
  0x16   : > { %p4806_p5 = pnand %p4805_p4, %p4799_p13 }
  0x18   : > { %4809 = shalt.err (!%p4806_p5)
}
  0x19   : > { %s4810_s15 = scalar_lea.vmem %s4937_s6, 8192  ;;  %s4861_s21 = smov [#allocation3]  }
  0x1a   : > { %p4811_p6 = scmp.ne.s32.totalorder %s4937_s6, %s4810_s15  ;;  %s4815_s22 = sshll.u32 %s4861_s21, 4  ;;  %s4816_s22 = int_to_ptr.vmem [resolvable:$false] %s4815_s22 }
  0x1b   : > { %s4817_s25 = scalar_lea.vmem %s4816_s22, 16384  ;;  %p4818_p9 = scmp.lt.s32.totalorder %s4937_s6, %s4816_s22 }
  0x1c   : > { %p4813_p10 = pnand %p4811_p6, %p4797_p11  ;;  %p4819_p0 = scmp.lt.s32.totalorder %s4817_s25, %s4810_s15 }
  0x1e   : > { %p4814_p12 = pneg %p4813_p10  ;;  %p4820_p1 = por %p4819_p0, %p4818_p9 }
  0x20   : > { %p4821_p2 = pnand %p4820_p1, %p4814_p12 }
  0x22   : > { %4824 = shalt.err (!%p4821_p2)
}
  0x23   : > { %s4862_s26 = smov 512   ;;  %s4863_s27 = smov 32  }
  0x24   : > { %4630 = dma.hbm_to_vmem [thread:$0]  (!%p4939_p8), %s4935_s30, 8192, %s4937_s6, %s4944_s8, %s4862_s26, %s4862_s26, %s4863_s27  }
  0x25   : > { %p197_p11 = scmp.lt.s32.totalorder %s4859_s18, 3  ;;  %p6198_p13 = scmp.ge.s32.totalorder %s4859_s18, 1 }
  0x27   : > { %p198_p3 = pnand %p6198_p13, %p197_p11 }
  0x28   : > { %s203_s28 = sand.u32 (!%p198_p3), 1, %s4851_s16  }
  0x29   : > { %201 = sbr.rel (%p198_p3) target bundleno = 2420 (0x974), region = 36  ;;  %s3404_s29 = sshll.u32 (!%p198_p3), %s203_s28, 9 }
  0x2a   : > { %s204_s5 = scalar_lea.sflag (!%p198_p3), [#allocation4], %s203_s28  ;;  %s4976_s9 = scalar_lea.vmem (!%p198_p3), [#allocation3], %s3404_s29 }
  0x30   : > { %4842 = dma.done.wait (%p4926_p7), %s204_s5, 8192  }
  0x31   : > { %4844 = vsyncadd (%p4926_p7), %s204_s5, 4294959104  ;;  %p240_p9 = scmp.lt.s32.totalorder %s4909_s19, 1  ;;  %s3471_s12 = smul.u32 224, %s4909_s19 }
  0x32   : > { %s3414_s14 = smul.u32 160, %s4909_s19  ;;  %s3430_s22 = sshll.u32 %s4909_s19, 5 }
  0x33   : > { %s4984_s30 = scalar_select %p240_p9, %s4909_s19, 1 }
  0x34   : > { %s1790_s13 = scalar_lea.vmem [#allocation2], %s3471_s12  ;;  %s3334_s15 = scalar_lea.vmem [#allocation2], %s3414_s14 }
  0x35   : > { %s3470_s18 = sshll.u32 %s4984_s30, 12  ;;  %s3422_s21 = smul.u32 96, %s4909_s19 }
  0x36   : > { %s4990_s8 = scalar_lea.vmem %s6192_s1, %s3470_s18  ;;  %s3341_s25 = scalar_lea.vmem [#allocation2], %s3430_s22 }
  0x37   : > { %v318_v0 = vld [vmem:[%s4990_s8 + $0x8] sm:$0xff]  ;;  %v320_v2 = vld [vmem:[%s4990_s8 + $0x18] sm:$0xff]  ;;  %v317_v5 = vld [vmem:[%s4990_s8] sm:$0xff]  ;;  %s2565_s26 = ssub.s32 4, %s4909_s19  ;;  %s3443_s29 = smul.u32 4294967200, %s4909_s19 }
  0x38   : > { %v322_v1 = vld [vmem:[%s4990_s8 + $0x28] sm:$0xff]  ;;  %v324_v4 = vld [vmem:[%s4990_s8 + $0x38] sm:$0xff]  ;;  %v321_v6 = vld [vmem:[%s4990_s8 + $0x20] sm:$0xff]  ;;  %s3472_s27 = sshll.u32 %s2565_s26, 5  ;;  %s3451_s18 = smul.u32 4294967136, %s4909_s19 }
  0x39   : > { %v3473_v3 = vpack.c.bf16 %v322_v1, %v318_v0  ;;  %v3729_v7 = vpack.c.bf16 %v324_v4, %v320_v2  ;;  %v3475_v8 = vpack.c.bf16 %v321_v6, %v317_v5  ;;  %v319_v9 = vld [vmem:[%s4990_s8 + $0x10] sm:$0xff]  ;;  %v326_v11 = vld [vmem:[%s4990_s8 + $0x48] sm:$0xff]  ;;  %v328_v14 = vld [vmem:[%s4990_s8 + $0x58] sm:$0xff]  ;;  %s2568_s28 = scalar_lea.vmem [#allocation2], %s3472_s27  ;;  %s3347_s5 = scalar_lea.vmem [#allocation2], %s3443_s29 }
  0x3a   : > { %v323_v10 = vld [vmem:[%s4990_s8 + $0x30] sm:$0xff]  ;;  %v330_v13 = vld [vmem:[%s4990_s8 + $0x68] sm:$0xff]  ;;  %v332_v15 = vld [vmem:[%s4990_s8 + $0x78] sm:$0xff]  ;;  %s3351_s6 = scalar_lea.vmem [#allocation2], %s3451_s18  ;;  %s3459_s7 = smul.u32 4294967072, %s4909_s19 }
  0x3b   : > { %3474 = vmatprep.subr.bf16.mxu0 %v3473_v3  ;;  %v3731_v12 = vpack.c.bf16 %v323_v10, %v319_v9  ;;  %3730 = vmatprep.subr.bf16.mxu1 %v3729_v7  ;;  %v3477_v16 = vpack.c.bf16 %v330_v13, %v326_v11  ;;  %v3733_v17 = vpack.c.bf16 %v332_v15, %v328_v14  ;;  %v325_v18 = vld [vmem:[%s4990_s8 + $0x40] sm:$0xff]  ;;  %v327_v20 = vld [vmem:[%s4990_s8 + $0x50] sm:$0xff]  ;;  %v334_v23 = vld [vmem:[%s4990_s8 + $0x88] sm:$0xff]  ;;  %s3408_s19 = sshll.u32 %s4984_s30, 3 }
  0x3c   : > { %3476 = vmatpush1.bf16.msra.mxu0 %v3475_v8  ;;  %v329_v19 = vld [vmem:[%s4990_s8 + $0x60] sm:$0xff]  ;;  %v331_v22 = vld [vmem:[%s4990_s8 + $0x70] sm:$0xff]  ;;  %v338_v24 = vld [vmem:[%s4990_s8 + $0xa8] sm:$0xff] }
  0x3d   : > { %3732 = vmatpush1.bf16.msra.mxu1 %v3731_v12  ;;  %v3479_v21 = vpack.c.bf16 %v329_v19, %v325_v18  ;;  %3478 = vmatprep.subr.bf16.mxu0 %v3477_v16  ;;  %v3735_v25 = vpack.c.bf16 %v331_v22, %v327_v20  ;;  %v3481_v26 = vpack.c.bf16 %v338_v24, %v334_v23  ;;  %v336_v27 = vld [vmem:[%s4990_s8 + $0x98] sm:$0xff]  ;;  %v333_v29 = vld [vmem:[%s4990_s8 + $0x80] sm:$0xff]  ;;  %v335_v32 = vld [vmem:[%s4990_s8 + $0x90] sm:$0xff] }
  0x3e   : > { %3734 = vmatprep.subr.bf16.mxu1 %v3733_v17  ;;  %v340_v28 = vld [vmem:[%s4990_s8 + $0xb8] sm:$0xff]  ;;  %v337_v31 = vld [vmem:[%s4990_s8 + $0xa0] sm:$0xff]  ;;  %v339_v33 = vld [vmem:[%s4990_s8 + $0xb0] sm:$0xff] }
  0x3f   : > { %v3737_v30 = vpack.c.bf16 %v340_v28, %v336_v27  ;;  %v3483_v34 = vpack.c.bf16 %v337_v31, %v333_v29  ;;  %v342_v35 = vld [vmem:[%s4990_s8 + $0xc8] sm:$0xff]  ;;  %v344_v37 = vld [vmem:[%s4990_s8 + $0xd8] sm:$0xff]  ;;  %v3739_v38 = vpack.c.bf16 %v339_v33, %v335_v32  ;;  %v341_v41 = vld [vmem:[%s4990_s8 + $0xc0] sm:$0xff] }
  0x40   : > { %3480 = vmatpush1.bf16.msra.mxu0 %v3479_v21  ;;  %v346_v36 = vld [vmem:[%s4990_s8 + $0xe8] sm:$0xff]  ;;  %v348_v40 = vld [vmem:[%s4990_s8 + $0xf8] sm:$0xff]  ;;  %v345_v42 = vld [vmem:[%s4990_s8 + $0xe0] sm:$0xff] }
  0x41   : > { %3736 = vmatpush1.bf16.msra.mxu1 %v3735_v25  ;;  %3482 = vmatprep.subr.bf16.mxu0 %v3481_v26  ;;  %v3485_v39 = vpack.c.bf16 %v346_v36, %v342_v35  ;;  %v3741_v43 = vpack.c.bf16 %v348_v40, %v344_v37  ;;  %v343_v44 = vld [vmem:[%s4990_s8 + $0xd0] sm:$0xff]  ;;  %v350_v46 = vld [vmem:[%s4990_s8 + $0x108] sm:$0xff]  ;;  %v352_v48 = vld [vmem:[%s4990_s8 + $0x118] sm:$0xff]  ;;  %v3487_v50 = vpack.c.bf16 %v345_v42, %v341_v41 }
  0x42   : > { %3738 = vmatprep.subr.bf16.mxu1 %v3737_v30  ;;  %v347_v45 = vld [vmem:[%s4990_s8 + $0xf0] sm:$0xff]  ;;  %v354_v47 = vld [vmem:[%s4990_s8 + $0x128] sm:$0xff]  ;;  %v356_v49 = vld [vmem:[%s4990_s8 + $0x138] sm:$0xff] }
  0x43   : > { %v3743_v51 = vpack.c.bf16 %v347_v45, %v343_v44  ;;  %v3489_v52 = vpack.c.bf16 %v354_v47, %v350_v46  ;;  %v349_v53 = vld [vmem:[%s4990_s8 + $0x100] sm:$0xff]  ;;  %v351_v55 = vld [vmem:[%s4990_s8 + $0x110] sm:$0xff]  ;;  %v3745_v56 = vpack.c.bf16 %v356_v49, %v352_v48  ;;  %v358_v58 = vld [vmem:[%s4990_s8 + $0x148] sm:$0xff] }
  0x44   : > { %3484 = vmatpush1.bf16.msra.mxu0 %v3483_v34  ;;  %v353_v54 = vld [vmem:[%s4990_s8 + $0x120] sm:$0xff]  ;;  %v355_v57 = vld [vmem:[%s4990_s8 + $0x130] sm:$0xff]  ;;  %v362_v59 = vld [vmem:[%s4990_s8 + $0x168] sm:$0xff] }
  0x45   : > { %3740 = vmatpush1.bf16.msra.mxu1 %v3739_v38  ;;  %3486 = vmatprep.subr.bf16.mxu0 %v3485_v39  ;;  %v360_v60 = vld [vmem:[%s4990_s8 + $0x158] sm:$0xff]  ;;  %v3491_v62 = vpack.c.bf16 %v353_v54, %v349_v53  ;;  %v3747_v63 = vpack.c.bf16 %v355_v57, %v351_v55  ;;  %v3493_v0 = vpack.c.bf16 %v362_v59, %v358_v58  ;;  %v357_v1 = vld [vmem:[%s4990_s8 + $0x140] sm:$0xff]  ;;  %v359_v3 = vld [vmem:[%s4990_s8 + $0x150] sm:$0xff] }
  0x46   : > { %3742 = vmatprep.subr.bf16.mxu1 %v3741_v43  ;;  %v364_v61 = vld [vmem:[%s4990_s8 + $0x178] sm:$0xff]  ;;  %v361_v2 = vld [vmem:[%s4990_s8 + $0x160] sm:$0xff]  ;;  %v363_v5 = vld [vmem:[%s4990_s8 + $0x170] sm:$0xff] }
  0x47   : > { %v3749_v4 = vpack.c.bf16 %v364_v61, %v360_v60  ;;  %v366_v6 = vld [vmem:[%s4990_s8 + $0x188] sm:$0xff]  ;;  %v368_v8 = vld [vmem:[%s4990_s8 + $0x198] sm:$0xff]  ;;  %v3495_v10 = vpack.c.bf16 %v361_v2, %v357_v1  ;;  %v3751_v11 = vpack.c.bf16 %v363_v5, %v359_v3  ;;  %v365_v13 = vld [vmem:[%s4990_s8 + $0x180] sm:$0xff] }
  0x48   : > { %3488 = vmatpush1.bf16.msra.mxu0 %v3487_v50  ;;  %v370_v7 = vld [vmem:[%s4990_s8 + $0x1a8] sm:$0xff]  ;;  %v372_v9 = vld [vmem:[%s4990_s8 + $0x1b8] sm:$0xff]  ;;  %v369_v14 = vld [vmem:[%s4990_s8 + $0x1a0] sm:$0xff] }
  0x49   : > { %3744 = vmatpush1.bf16.msra.mxu1 %v3743_v51  ;;  %3490 = vmatprep.subr.bf16.mxu0 %v3489_v52  ;;  %v3497_v12 = vpack.c.bf16 %v370_v7, %v366_v6  ;;  %v367_v15 = vld [vmem:[%s4990_s8 + $0x190] sm:$0xff]  ;;  %v3753_v16 = vpack.c.bf16 %v372_v9, %v368_v8  ;;  %v374_v18 = vld [vmem:[%s4990_s8 + $0x1c8] sm:$0xff]  ;;  %v376_v20 = vld [vmem:[%s4990_s8 + $0x1d8] sm:$0xff]  ;;  %v3499_v22 = vpack.c.bf16 %v369_v14, %v365_v13 }
  0x4a   : > { %3746 = vmatprep.subr.bf16.mxu1 %v3745_v56  ;;  %v371_v17 = vld [vmem:[%s4990_s8 + $0x1b0] sm:$0xff]  ;;  %v378_v19 = vld [vmem:[%s4990_s8 + $0x1e8] sm:$0xff]  ;;  %v380_v21 = vld [vmem:[%s4990_s8 + $0x1f8] sm:$0xff] }
  0x4b   : > { %v3755_v23 = vpack.c.bf16 %v371_v17, %v367_v15  ;;  %v3501_v24 = vpack.c.bf16 %v378_v19, %v374_v18  ;;  %v373_v25 = vld [vmem:[%s4990_s8 + $0x1c0] sm:$0xff]  ;;  %v375_v27 = vld [vmem:[%s4990_s8 + $0x1d0] sm:$0xff]  ;;  %v3757_v28 = vpack.c.bf16 %v380_v21, %v376_v20  ;;  %v382_v30 = vld [vmem:[%s4990_s8 + $0x208] sm:$0xff] }
  0x4c   : > { %3492 = vmatpush1.bf16.msra.mxu0 %v3491_v62  ;;  %v377_v26 = vld [vmem:[%s4990_s8 + $0x1e0] sm:$0xff]  ;;  %v379_v29 = vld [vmem:[%s4990_s8 + $0x1f0] sm:$0xff]  ;;  %v386_v31 = vld [vmem:[%s4990_s8 + $0x228] sm:$0xff] }
  0x4d   : > { %3748 = vmatpush1.bf16.msra.mxu1 %v3747_v63  ;;  %3494 = vmatprep.subr.bf16.mxu0 %v3493_v0  ;;  %v384_v32 = vld [vmem:[%s4990_s8 + $0x218] sm:$0xff]  ;;  %v3503_v34 = vpack.c.bf16 %v377_v26, %v373_v25  ;;  %v3759_v35 = vpack.c.bf16 %v379_v29, %v375_v27  ;;  %v3505_v36 = vpack.c.bf16 %v386_v31, %v382_v30  ;;  %v381_v37 = vld [vmem:[%s4990_s8 + $0x200] sm:$0xff]  ;;  %v383_v39 = vld [vmem:[%s4990_s8 + $0x210] sm:$0xff] }
  0x4e   : > { %3750 = vmatprep.subr.bf16.mxu1 %v3749_v4  ;;  %v388_v33 = vld [vmem:[%s4990_s8 + $0x238] sm:$0xff]  ;;  %v385_v38 = vld [vmem:[%s4990_s8 + $0x220] sm:$0xff]  ;;  %v387_v41 = vld [vmem:[%s4990_s8 + $0x230] sm:$0xff] }
  0x4f   : > { %v3761_v40 = vpack.c.bf16 %v388_v33, %v384_v32  ;;  %v390_v42 = vld [vmem:[%s4990_s8 + $0x248] sm:$0xff]  ;;  %v392_v44 = vld [vmem:[%s4990_s8 + $0x258] sm:$0xff]  ;;  %v3507_v46 = vpack.c.bf16 %v385_v38, %v381_v37  ;;  %v3763_v47 = vpack.c.bf16 %v387_v41, %v383_v39  ;;  %v389_v49 = vld [vmem:[%s4990_s8 + $0x240] sm:$0xff] }
  0x50   : > { %3496 = vmatpush1.bf16.msra.mxu0 %v3495_v10  ;;  %v394_v43 = vld [vmem:[%s4990_s8 + $0x268] sm:$0xff]  ;;  %v396_v45 = vld [vmem:[%s4990_s8 + $0x278] sm:$0xff]  ;;  %v393_v50 = vld [vmem:[%s4990_s8 + $0x260] sm:$0xff] }
  0x51   : > { %3752 = vmatpush1.bf16.msra.mxu1 %v3751_v11  ;;  %3498 = vmatprep.subr.bf16.mxu0 %v3497_v12  ;;  %v3509_v48 = vpack.c.bf16 %v394_v43, %v390_v42  ;;  %v391_v51 = vld [vmem:[%s4990_s8 + $0x250] sm:$0xff]  ;;  %v3765_v52 = vpack.c.bf16 %v396_v45, %v392_v44  ;;  %v398_v54 = vld [vmem:[%s4990_s8 + $0x288] sm:$0xff]  ;;  %v400_v56 = vld [vmem:[%s4990_s8 + $0x298] sm:$0xff]  ;;  %v3511_v58 = vpack.c.bf16 %v393_v50, %v389_v49 }
  0x52   : > { %3754 = vmatprep.subr.bf16.mxu1 %v3753_v16  ;;  %v395_v53 = vld [vmem:[%s4990_s8 + $0x270] sm:$0xff]  ;;  %v402_v55 = vld [vmem:[%s4990_s8 + $0x2a8] sm:$0xff]  ;;  %v404_v57 = vld [vmem:[%s4990_s8 + $0x2b8] sm:$0xff] }
  0x53   : > { %v3767_v59 = vpack.c.bf16 %v395_v53, %v391_v51  ;;  %v3513_v60 = vpack.c.bf16 %v402_v55, %v398_v54  ;;  %v397_v61 = vld [vmem:[%s4990_s8 + $0x280] sm:$0xff]  ;;  %v399_v63 = vld [vmem:[%s4990_s8 + $0x290] sm:$0xff]  ;;  %v3769_v0 = vpack.c.bf16 %v404_v57, %v400_v56  ;;  %v406_v2 = vld [vmem:[%s4990_s8 + $0x2c8] sm:$0xff] }
  0x54   : > { %3500 = vmatpush1.bf16.msra.mxu0 %v3499_v22  ;;  %v401_v62 = vld [vmem:[%s4990_s8 + $0x2a0] sm:$0xff]  ;;  %v403_v1 = vld [vmem:[%s4990_s8 + $0x2b0] sm:$0xff]  ;;  %v410_v3 = vld [vmem:[%s4990_s8 + $0x2e8] sm:$0xff] }
  0x55   : > { %3756 = vmatpush1.bf16.msra.mxu1 %v3755_v23  ;;  %3502 = vmatprep.subr.bf16.mxu0 %v3501_v24  ;;  %v408_v4 = vld [vmem:[%s4990_s8 + $0x2d8] sm:$0xff]  ;;  %v3515_v6 = vpack.c.bf16 %v401_v62, %v397_v61  ;;  %v405_v7 = vld [vmem:[%s4990_s8 + $0x2c0] sm:$0xff]  ;;  %v3771_v8 = vpack.c.bf16 %v403_v1, %v399_v63  ;;  %v3517_v9 = vpack.c.bf16 %v410_v3, %v406_v2  ;;  %v407_v11 = vld [vmem:[%s4990_s8 + $0x2d0] sm:$0xff] }
  0x56   : > { %3758 = vmatprep.subr.bf16.mxu1 %v3757_v28  ;;  %v412_v5 = vld [vmem:[%s4990_s8 + $0x2f8] sm:$0xff]  ;;  %v409_v10 = vld [vmem:[%s4990_s8 + $0x2e0] sm:$0xff]  ;;  %v411_v12 = vld [vmem:[%s4990_s8 + $0x2f0] sm:$0xff] }
  0x57   : > { %v3773_v13 = vpack.c.bf16 %v412_v5, %v408_v4  ;;  %v414_v14 = vld [vmem:[%s4990_s8 + $0x308] sm:$0xff]  ;;  %v416_v17 = vld [vmem:[%s4990_s8 + $0x318] sm:$0xff]  ;;  %v3519_v19 = vpack.c.bf16 %v409_v10, %v405_v7  ;;  %v3775_v20 = vpack.c.bf16 %v411_v12, %v407_v11  ;;  %v413_v22 = vld [vmem:[%s4990_s8 + $0x300] sm:$0xff] }
  0x58   : > { %3504 = vmatpush1.bf16.msra.mxu0 %v3503_v34  ;;  %v418_v15 = vld [vmem:[%s4990_s8 + $0x328] sm:$0xff]  ;;  %v420_v18 = vld [vmem:[%s4990_s8 + $0x338] sm:$0xff]  ;;  %v417_v23 = vld [vmem:[%s4990_s8 + $0x320] sm:$0xff] }
  0x59   : > { %3760 = vmatpush1.bf16.msra.mxu1 %v3759_v35  ;;  %3506 = vmatprep.subr.bf16.mxu0 %v3505_v36  ;;  %v254_v16 = vld [vmem:[%s6191_s0 + $0x8] sm:$0xff]  ;;  %v3521_v21 = vpack.c.bf16 %v418_v15, %v414_v14  ;;  %v415_v24 = vld [vmem:[%s4990_s8 + $0x310] sm:$0xff]  ;;  %v3777_v25 = vpack.c.bf16 %v420_v18, %v416_v17  ;;  %v424_v29 = vld [vmem:[%s4990_s8 + $0x358] sm:$0xff]  ;;  %v3523_v31 = vpack.c.bf16 %v417_v23, %v413_v22 }
  0x5a   : > { %3762 = vmatprep.subr.bf16.mxu1 %v3761_v40  ;;  %915 = vmatprep.mubr.f32.mxu0 %v254_v16  ;;  %v419_v26 = vld [vmem:[%s4990_s8 + $0x330] sm:$0xff]  ;;  %v422_v27 = vld [vmem:[%s4990_s8 + $0x348] sm:$0xff]  ;;  %v428_v30 = vld [vmem:[%s4990_s8 + $0x378] sm:$0xff] }
  0x5b   : > { %1367 = vmatprep.mubr.f32.mxu1 %v254_v16  ;;  %v426_v28 = vld [vmem:[%s4990_s8 + $0x368] sm:$0xff]  ;;  %v3779_v32 = vpack.c.bf16 %v419_v26, %v415_v24  ;;  %v421_v34 = vld [vmem:[%s4990_s8 + $0x340] sm:$0xff]  ;;  %v423_v36 = vld [vmem:[%s4990_s8 + $0x350] sm:$0xff]  ;;  %v3781_v37 = vpack.c.bf16 %v428_v30, %v424_v29 }
  0x5c   : > { %3508 = vmatpush1.bf16.msra.mxu0 %v3507_v46  ;;  %v3525_v33 = vpack.c.bf16 %v426_v28, %v422_v27  ;;  %v425_v35 = vld [vmem:[%s4990_s8 + $0x360] sm:$0xff]  ;;  %v427_v38 = vld [vmem:[%s4990_s8 + $0x370] sm:$0xff]  ;;  %v430_v39 = vld [vmem:[%s4990_s8 + $0x388] sm:$0xff] }
  0x5d   : > { %3764 = vmatpush1.bf16.msra.mxu1 %v3763_v47  ;;  %3510 = vmatprep.subr.bf16.mxu0 %v3509_v48  ;;  %v434_v40 = vld [vmem:[%s4990_s8 + $0x3a8] sm:$0xff]  ;;  %v432_v41 = vld [vmem:[%s4990_s8 + $0x398] sm:$0xff]  ;;  %v3527_v43 = vpack.c.bf16 %v425_v35, %v421_v34  ;;  %v3783_v44 = vpack.c.bf16 %v427_v38, %v423_v36  ;;  %v429_v46 = vld [vmem:[%s4990_s8 + $0x380] sm:$0xff] }
  0x5e   : > { %3766 = vmatprep.subr.bf16.mxu1 %v3765_v52  ;;  %v436_v42 = vld [vmem:[%s4990_s8 + $0x3b8] sm:$0xff]  ;;  %v3529_v45 = vpack.c.bf16 %v434_v40, %v430_v39  ;;  %v433_v47 = vld [vmem:[%s4990_s8 + $0x3a0] sm:$0xff]  ;;  %v431_v48 = vld [vmem:[%s4990_s8 + $0x390] sm:$0xff] }
  0x5f   : > { %v3785_v49 = vpack.c.bf16 %v436_v42, %v432_v41  ;;  %v435_v50 = vld [vmem:[%s4990_s8 + $0x3b0] sm:$0xff]  ;;  %v438_v51 = vld [vmem:[%s4990_s8 + $0x3c8] sm:$0xff]  ;;  %v440_v53 = vld [vmem:[%s4990_s8 + $0x3d8] sm:$0xff]  ;;  %v3531_v55 = vpack.c.bf16 %v433_v47, %v429_v46 }
  0x60   : > { %3512 = vmatpush1.bf16.msra.mxu0 %v3511_v58  ;;  %v442_v52 = vld [vmem:[%s4990_s8 + $0x3e8] sm:$0xff]  ;;  %v444_v54 = vld [vmem:[%s4990_s8 + $0x3f8] sm:$0xff]  ;;  %v3787_v56 = vpack.c.bf16 %v435_v50, %v431_v48  ;;  %v437_v58 = vld [vmem:[%s4990_s8 + $0x3c0] sm:$0xff] }
  0x61   : > { %3768 = vmatpush1.bf16.msra.mxu1 %v3767_v59  ;;  %3514 = vmatprep.subr.bf16.mxu0 %v3513_v60  ;;  %v3533_v57 = vpack.c.bf16 %v442_v52, %v438_v51  ;;  %v441_v59 = vld [vmem:[%s4990_s8 + $0x3e0] sm:$0xff]  ;;  %v439_v60 = vld [vmem:[%s4990_s8 + $0x3d0] sm:$0xff]  ;;  %v3789_v61 = vpack.c.bf16 %v444_v54, %v440_v53  ;;  %v446_v63 = vld [vmem:[%s4990_s8 + $0x408] sm:$0xff] }
  0x62   : > { %3770 = vmatprep.subr.bf16.mxu1 %v3769_v0  ;;  %v443_v62 = vld [vmem:[%s4990_s8 + $0x3f0] sm:$0xff]  ;;  %v450_v0 = vld [vmem:[%s4990_s8 + $0x428] sm:$0xff]  ;;  %v448_v1 = vld [vmem:[%s4990_s8 + $0x418] sm:$0xff]  ;;  %v3535_v3 = vpack.c.bf16 %v441_v59, %v437_v58 }
  0x63   : > { %v452_v2 = vld [vmem:[%s4990_s8 + $0x438] sm:$0xff]  ;;  %v3791_v4 = vpack.c.bf16 %v443_v62, %v439_v60  ;;  %v3537_v5 = vpack.c.bf16 %v450_v0, %v446_v63  ;;  %v449_v7 = vld [vmem:[%s4990_s8 + $0x420] sm:$0xff]  ;;  %v451_v10 = vld [vmem:[%s4990_s8 + $0x430] sm:$0xff] }
  0x64   : > { %3516 = vmatpush1.bf16.msra.mxu0 %v3515_v6  ;;  %v445_v6 = vld [vmem:[%s4990_s8 + $0x400] sm:$0xff]  ;;  %v454_v11 = vld [vmem:[%s4990_s8 + $0x448] sm:$0xff]  ;;  %v460_v14 = vld [vmem:[%s4990_s8 + $0x478] sm:$0xff] }
  0x65   : > { %3772 = vmatpush1.bf16.msra.mxu1 %v3771_v8  ;;  %3518 = vmatprep.subr.bf16.mxu0 %v3517_v9  ;;  %v447_v8 = vld [vmem:[%s4990_s8 + $0x410] sm:$0xff]  ;;  %v3793_v9 = vpack.c.bf16 %v452_v2, %v448_v1  ;;  %v458_v12 = vld [vmem:[%s4990_s8 + $0x468] sm:$0xff]  ;;  %v253_v15 = vld [vmem:[%s6191_s0] sm:$0xff]  ;;  %v3539_v16 = vpack.c.bf16 %v449_v7, %v445_v6 }
  0x66   : > { %3774 = vmatprep.subr.bf16.mxu1 %v3773_v13  ;;  %v456_v13 = vld [vmem:[%s4990_s8 + $0x458] sm:$0xff]  ;;  %v3795_v17 = vpack.c.bf16 %v451_v10, %v447_v8  ;;  %v3541_v18 = vpack.c.bf16 %v458_v12, %v454_v11  ;;  %v459_v23 = vld [vmem:[%s4990_s8 + $0x470] sm:$0xff]  ;;  %v462_v24 = vld [vmem:[%s4990_s8 + $0x488] sm:$0xff] }
  0x67   : > { %v3797_v22 = vpack.c.bf16 %v460_v14, %v456_v13  ;;  %v464_v26 = vld [vmem:[%s4990_s8 + $0x498] sm:$0xff]  ;;  %v262_v28 = vld [vmem:[%s6191_s0 + $0x48] sm:$0xff]  ;;  %v461_v30 = vld [vmem:[%s4990_s8 + $0x480] sm:$0xff] }
  0x68   : > { %3520 = vmatpush1.bf16.msra.mxu0 %v3519_v19  ;;  %v453_v19 = vld [vmem:[%s4990_s8 + $0x440] sm:$0xff]  ;;  %v468_v27 = vld [vmem:[%s4990_s8 + $0x4b8] sm:$0xff]  ;;  %v463_v34 = vld [vmem:[%s4990_s8 + $0x490] sm:$0xff] }
  0x69   : > { %3776 = vmatpush1.bf16.msra.mxu1 %v3775_v20  ;;  %3522 = vmatprep.subr.bf16.mxu0 %v3521_v21  ;;  %v457_v20 = vld [vmem:[%s4990_s8 + $0x460] sm:$0xff]  ;;  %v455_v21 = vld [vmem:[%s4990_s8 + $0x450] sm:$0xff]  ;;  %v3801_v36 = vpack.c.bf16 %v468_v27, %v464_v26  ;;  %v470_v38 = vld [vmem:[%s4990_s8 + $0x4c8] sm:$0xff] }
  0x6a   : > { %3778 = vmatprep.subr.bf16.mxu1 %v3777_v25  ;;  %v466_v25 = vld [vmem:[%s4990_s8 + $0x4a8] sm:$0xff]  ;;  %v3543_v29 = vpack.c.bf16 %v457_v20, %v453_v19  ;;  %v261_v35 = vld [vmem:[%s6191_s0 + $0x40] sm:$0xff]  ;;  %v472_v40 = vld [vmem:[%s4990_s8 + $0x4d8] sm:$0xff] }
  0x6b   : > { %v474_v39 = vld [vmem:[%s4990_s8 + $0x4e8] sm:$0xff]  ;;  %v476_v41 = vld [vmem:[%s4990_s8 + $0x4f8] sm:$0xff]  ;;  %v469_v47 = vld [vmem:[%s4990_s8 + $0x4c0] sm:$0xff] }
  0x6c   : > { %3524 = vmatpush1.bf16.msra.mxu0 %v3523_v31  ;;  %v3799_v31 = vpack.c.bf16 %v459_v23, %v455_v21  ;;  %v270_v42 = vld [vmem:[%s6191_s0 + $0x88] sm:$0xff]  ;;  %v3549_v46 = vpack.c.bf16 %v474_v39, %v470_v38  ;;  %v473_v48 = vld [vmem:[%s4990_s8 + $0x4e0] sm:$0xff]  ;;  %v3805_v50 = vpack.c.bf16 %v476_v41, %v472_v40  ;;  %v475_v51 = vld [vmem:[%s4990_s8 + $0x4f0] sm:$0xff] }
  0x6d   : > { %3780 = vmatpush1.bf16.msra.mxu1 %v3779_v32  ;;  %3526 = vmatprep.subr.bf16.mxu0 %v3525_v33  ;;  %v3545_v32 = vpack.c.bf16 %v466_v25, %v462_v24  ;;  %v465_v33 = vld [vmem:[%s4990_s8 + $0x4a0] sm:$0xff]  ;;  %v478_v52 = vld [vmem:[%s4990_s8 + $0x508] sm:$0xff]  ;;  %v480_v54 = vld [vmem:[%s4990_s8 + $0x518] sm:$0xff] }
  0x6e   : > { %3782 = vmatprep.subr.bf16.mxu1 %v3781_v37  ;;  %v467_v37 = vld [vmem:[%s4990_s8 + $0x4b0] sm:$0xff]  ;;  %v482_v53 = vld [vmem:[%s4990_s8 + $0x528] sm:$0xff]  ;;  %v277_v58 = vld [vmem:[%s6191_s0 + $0xc0] sm:$0xff] }
  0x6f   : > { %v3553_v60 = vpack.c.bf16 %v482_v53, %v478_v52  ;;  %v481_v62 = vld [vmem:[%s4990_s8 + $0x520] sm:$0xff]  ;;  %v479_v63 = vld [vmem:[%s4990_s8 + $0x510] sm:$0xff]  ;;  %v486_v2 = vld [vmem:[%s4990_s8 + $0x548] sm:$0xff] }
  0x70   : > { %3528 = vmatpush1.bf16.msra.mxu0 %v3527_v43  ;;  %v3547_v43 = vpack.c.bf16 %v465_v33, %v461_v30  ;;  %v483_v1 = vld [vmem:[%s4990_s8 + $0x530] sm:$0xff]  ;;  %v286_v6 = vld [vmem:[%s6191_s0 + $0x108] sm:$0xff]  ;;  %v285_v8 = vld [vmem:[%s6191_s0 + $0x100] sm:$0xff] }
  0x71   : > { %3784 = vmatpush1.bf16.msra.mxu1 %v3783_v44  ;;  %3530 = vmatprep.subr.bf16.mxu0 %v3529_v45  ;;  %v269_v44 = vld [vmem:[%s6191_s0 + $0x80] sm:$0xff]  ;;  %v3803_v45 = vpack.c.bf16 %v467_v37, %v463_v34  ;;  %v487_v13 = vld [vmem:[%s4990_s8 + $0x550] sm:$0xff]  ;;  %v500_v19 = vld [vmem:[%s4990_s8 + $0x5b8] sm:$0xff] }
  0x72   : > { %3786 = vmatprep.subr.bf16.mxu1 %v3785_v49  ;;  %v471_v49 = vld [vmem:[%s4990_s8 + $0x4d0] sm:$0xff]  ;;  %v485_v11 = vld [vmem:[%s4990_s8 + $0x540] sm:$0xff]  ;;  %v294_v20 = vld [vmem:[%s6191_s0 + $0x148] sm:$0xff] }
  0x73   : > { %v3807_v59 = vpack.c.bf16 %v475_v51, %v471_v49  ;;  %v489_v12 = vld [vmem:[%s4990_s8 + $0x560] sm:$0xff]  ;;  %v495_v27 = vld [vmem:[%s4990_s8 + $0x590] sm:$0xff]  ;;  %v502_v30 = vld [vmem:[%s4990_s8 + $0x5c8] sm:$0xff] }
  0x74   : > { %3532 = vmatpush1.bf16.msra.mxu0 %v3531_v55  ;;  %v484_v55 = vld [vmem:[%s4990_s8 + $0x538] sm:$0xff]  ;;  %v3559_v21 = vpack.c.bf16 %v489_v12, %v485_v11  ;;  %v493_v25 = vld [vmem:[%s4990_s8 + $0x580] sm:$0xff]  ;;  %v302_v34 = vld [vmem:[%s6191_s0 + $0x188] sm:$0xff] }
  0x75   : > { %3788 = vmatpush1.bf16.msra.mxu1 %v3787_v56  ;;  %3534 = vmatprep.subr.bf16.mxu0 %v3533_v57  ;;  %v278_v56 = vld [vmem:[%s6191_s0 + $0xc8] sm:$0xff]  ;;  %v3551_v57 = vpack.c.bf16 %v473_v48, %v469_v47  ;;  %v3809_v0 = vpack.c.bf16 %v484_v55, %v480_v54  ;;  %v497_v26 = vld [vmem:[%s4990_s8 + $0x5a0] sm:$0xff]  ;;  %v508_v33 = vld [vmem:[%s4990_s8 + $0x5f8] sm:$0xff] }
  0x76   : > { %3790 = vmatprep.subr.bf16.mxu1 %v3789_v61  ;;  %v477_v61 = vld [vmem:[%s4990_s8 + $0x500] sm:$0xff]  ;;  %v503_v41 = vld [vmem:[%s4990_s8 + $0x5d0] sm:$0xff]  ;;  %v516_v47 = vld [vmem:[%s4990_s8 + $0x638] sm:$0xff] }
  0x77   : > { %v3555_v7 = vpack.c.bf16 %v481_v62, %v477_v61  ;;  %v501_v39 = vld [vmem:[%s4990_s8 + $0x5c0] sm:$0xff]  ;;  %v310_v48 = vld [vmem:[%s6191_s0 + $0x1c8] sm:$0xff]  ;;  %v511_v55 = vld [vmem:[%s4990_s8 + $0x610] sm:$0xff] }
  0x78   : > { %3536 = vmatpush1.bf16.msra.mxu0 %v3535_v3  ;;  %v490_v3 = vld [vmem:[%s4990_s8 + $0x568] sm:$0xff]  ;;  %v505_v40 = vld [vmem:[%s4990_s8 + $0x5e0] sm:$0xff]  ;;  %v524_v61 = vld [vmem:[%s4990_s8 + $0x678] sm:$0xff] }
  0x79   : > { %3792 = vmatpush1.bf16.msra.mxu1 %v3791_v4  ;;  %3538 = vmatprep.subr.bf16.mxu0 %v3537_v5  ;;  %v488_v4 = vld [vmem:[%s4990_s8 + $0x558] sm:$0xff]  ;;  %v3557_v10 = vpack.c.bf16 %v490_v3, %v486_v2  ;;  %v3567_v49 = vpack.c.bf16 %v505_v40, %v501_v39  ;;  %v509_v53 = vld [vmem:[%s4990_s8 + $0x600] sm:$0xff]  ;;  %v543_v40 = vld [vmem:[%s4990_s8 + $0x710] sm:$0xff] }
  0x7a   : > { %3794 = vmatprep.subr.bf16.mxu1 %v3793_v9  ;;  %v492_v5 = vld [vmem:[%s4990_s8 + $0x578] sm:$0xff]  ;;  %v3811_v9 = vpack.c.bf16 %v483_v1, %v479_v63  ;;  %v513_v54 = vld [vmem:[%s4990_s8 + $0x620] sm:$0xff] }
  0x7b   : > { %916 = vmatmul.mubr.f32.vlgmr.msra.gmra.mrb[0].mxu0 %v253_v15  ;;  %v3813_v14 = vpack.c.bf16 %v492_v5, %v488_v4  ;;  %v256_v62 = vld [vmem:[%s6191_s0 + $0x18] sm:$0xff]  ;;  %v3571_v63 = vpack.c.bf16 %v513_v54, %v509_v53  ;;  %v517_v2 = vld [vmem:[%s4990_s8 + $0x640] sm:$0xff]  ;;  %v519_v4 = vld [vmem:[%s4990_s8 + $0x650] sm:$0xff] }
  0x7c   : > { %3540 = vmatpush1.bf16.msra.mxu0 %v3539_v16  ;;  %1368 = vmatmul.mubr.f32.vlgmr.msra.gmra.mrb[0].mxu1 %v253_v15  ;;  %v491_v15 = vld [vmem:[%s4990_s8 + $0x570] sm:$0xff]  ;;  %v494_v16 = vld [vmem:[%s4990_s8 + $0x588] sm:$0xff]  ;;  %v521_v3 = vld [vmem:[%s4990_s8 + $0x660] sm:$0xff] }
  0x7d   : > { %3796 = vmatpush1.bf16.msra.mxu1 %v3795_v17  ;;  %3542 = vmatprep.subr.bf16.mxu0 %v3541_v18  ;;  %v498_v17 = vld [vmem:[%s4990_s8 + $0x5a8] sm:$0xff]  ;;  %v496_v18 = vld [vmem:[%s4990_s8 + $0x598] sm:$0xff]  ;;  %v3815_v23 = vpack.c.bf16 %v491_v15, %v487_v13  ;;  %v3575_v11 = vpack.c.bf16 %v521_v3, %v517_v2  ;;  %v529_v15 = vld [vmem:[%s4990_s8 + $0x6a0] sm:$0xff] }
  0x7e   : > { %3798 = vmatprep.subr.bf16.mxu1 %v3797_v22  ;;  %921 = vmatprep.mubr.f32.mxu0 %v262_v28  ;;  %v293_v22 = vld [vmem:[%s6191_s0 + $0x140] sm:$0xff]  ;;  %v3561_v24 = vpack.c.bf16 %v498_v17, %v494_v16  ;;  %v527_v16 = vld [vmem:[%s4990_s8 + $0x690] sm:$0xff]  ;;  %v566_v3 = vld [vmem:[%s4990_s8 + $0x7c8] sm:$0xff] }
  0x7f   : > { %1373 = vmatprep.mubr.f32.mxu1 %v262_v28  ;;  %922 = vmatmul.mubr.f32.gmra.mrb[2].mxu0 %v261_v35  ;;  %v3817_v28 = vpack.c.bf16 %v500_v19, %v496_v18  ;;  %v531_v18 = vld [vmem:[%s4990_s8 + $0x6b0] sm:$0xff]  ;;  %v534_v19 = vld [vmem:[%s4990_s8 + $0x6c8] sm:$0xff]  ;;  %v545_v39 = vld [vmem:[%s4990_s8 + $0x720] sm:$0xff] }
  0x80   : > { %3544 = vmatpush1.bf16.msra.mxu0 %v3543_v29  ;;  %1374 = vmatmul.mubr.f32.gmra.mrb[2].mxu1 %v261_v35  ;;  %v499_v29 = vld [vmem:[%s4990_s8 + $0x5b0] sm:$0xff]  ;;  %v3563_v35 = vpack.c.bf16 %v497_v26, %v493_v25  ;;  %v533_v26 = vld [vmem:[%s4990_s8 + $0x6c0] sm:$0xff] }
  0x81   : > { %3800 = vmatpush1.bf16.msra.mxu1 %v3799_v31  ;;  %3546 = vmatprep.subr.bf16.mxu0 %v3545_v32  ;;  %v506_v31 = vld [vmem:[%s4990_s8 + $0x5e8] sm:$0xff]  ;;  %v504_v32 = vld [vmem:[%s4990_s8 + $0x5d8] sm:$0xff]  ;;  %v3819_v37 = vpack.c.bf16 %v499_v29, %v495_v27  ;;  %v537_v27 = vld [vmem:[%s4990_s8 + $0x6e0] sm:$0xff] }
  0x82   : > { %3802 = vmatprep.subr.bf16.mxu1 %v3801_v36  ;;  %927 = vmatprep.mubr.f32.mxu0 %v270_v42  ;;  %v301_v36 = vld [vmem:[%s6191_s0 + $0x180] sm:$0xff]  ;;  %v3565_v38 = vpack.c.bf16 %v506_v31, %v502_v30  ;;  %v539_v30 = vld [vmem:[%s4990_s8 + $0x6f0] sm:$0xff]  ;;  %v542_v31 = vld [vmem:[%s4990_s8 + $0x708] sm:$0xff] }
  0x83   : > { %1379 = vmatprep.mubr.f32.mxu1 %v270_v42  ;;  %928 = vmatmul.mubr.f32.gmra.mrb[4].mxu0 %v269_v44  ;;  %v3821_v42 = vpack.c.bf16 %v508_v33, %v504_v32  ;;  %v546_v32 = vld [vmem:[%s4990_s8 + $0x728] sm:$0xff]  ;;  %v544_v33 = vld [vmem:[%s4990_s8 + $0x718] sm:$0xff]  ;;  %v555_v54 = vld [vmem:[%s4990_s8 + $0x770] sm:$0xff] }
  0x84   : > { %3548 = vmatpush1.bf16.msra.mxu0 %v3547_v43  ;;  %1380 = vmatmul.mubr.f32.gmra.mrb[4].mxu1 %v269_v44  ;;  %v507_v43 = vld [vmem:[%s4990_s8 + $0x5f0] sm:$0xff]  ;;  %v510_v44 = vld [vmem:[%s4990_s8 + $0x608] sm:$0xff] }
  0x85   : > { %3804 = vmatpush1.bf16.msra.mxu1 %v3803_v45  ;;  %3550 = vmatprep.subr.bf16.mxu0 %v3549_v46  ;;  %v514_v45 = vld [vmem:[%s4990_s8 + $0x628] sm:$0xff]  ;;  %v512_v46 = vld [vmem:[%s4990_s8 + $0x618] sm:$0xff]  ;;  %v3823_v51 = vpack.c.bf16 %v507_v43, %v503_v41  ;;  %v563_v2 = vld [vmem:[%s4990_s8 + $0x7b0] sm:$0xff] }
  0x86   : > { %3806 = vmatprep.subr.bf16.mxu1 %v3805_v50  ;;  %933 = vmatprep.mubr.f32.mxu0 %v278_v56  ;;  %v309_v50 = vld [vmem:[%s6191_s0 + $0x1c0] sm:$0xff]  ;;  %v3569_v52 = vpack.c.bf16 %v514_v45, %v510_v44  ;;  %v550_v43 = vld [vmem:[%s4990_s8 + $0x748] sm:$0xff]  ;;  %v552_v45 = vld [vmem:[%s4990_s8 + $0x758] sm:$0xff] }
  0x87   : > { %1385 = vmatprep.mubr.f32.mxu1 %v278_v56  ;;  %934 = vmatmul.mubr.f32.gmra.mrb[6].mxu0 %v277_v58  ;;  %v3825_v56 = vpack.c.bf16 %v516_v47, %v512_v46  ;;  %v554_v44 = vld [vmem:[%s4990_s8 + $0x768] sm:$0xff]  ;;  %v556_v46 = vld [vmem:[%s4990_s8 + $0x778] sm:$0xff] }
  0x88   : > { %3552 = vmatpush1.bf16.msra.mxu0 %v3551_v57  ;;  %1386 = vmatmul.mubr.f32.gmra.mrb[6].mxu1 %v277_v58  ;;  %v515_v57 = vld [vmem:[%s4990_s8 + $0x630] sm:$0xff]  ;;  %v518_v58 = vld [vmem:[%s4990_s8 + $0x648] sm:$0xff]  ;;  %v3845_v53 = vpack.c.bf16 %v556_v46, %v552_v45 }
  0x89   : > { %3808 = vmatpush1.bf16.msra.mxu1 %v3807_v59  ;;  %3554 = vmatprep.subr.bf16.mxu0 %v3553_v60  ;;  %v522_v59 = vld [vmem:[%s4990_s8 + $0x668] sm:$0xff]  ;;  %v520_v60 = vld [vmem:[%s4990_s8 + $0x658] sm:$0xff]  ;;  %v263_v46 = vld [vmem:[%s6191_s0 + $0x50] sm:$0xff] }
  0x8a   : > { %3810 = vmatprep.subr.bf16.mxu1 %v3809_v0  ;;  %939 = vmatprep.mubr.f32.mxu0 %v286_v6  ;;  %v3827_v0 = vpack.c.bf16 %v515_v57, %v511_v55  ;;  %v3573_v1 = vpack.c.bf16 %v522_v59, %v518_v58  ;;  %v3829_v5 = vpack.c.bf16 %v524_v61, %v520_v60  ;;  %v558_v55 = vld [vmem:[%s4990_s8 + $0x788] sm:$0xff]  ;;  %v560_v57 = vld [vmem:[%s4990_s8 + $0x798] sm:$0xff] }
  0x8b   : > { %1391 = vmatprep.mubr.f32.mxu1 %v286_v6  ;;  %940 = vmatmul.mubr.f32.gmra.mrb[8].mxu0 %v285_v8  ;;  %v523_v6 = vld [vmem:[%s4990_s8 + $0x670] sm:$0xff]  ;;  %v564_v58 = vld [vmem:[%s4990_s8 + $0x7b8] sm:$0xff] }
  0x8c   : > { %3556 = vmatpush1.bf16.msra.mxu0 %v3555_v7  ;;  %1392 = vmatmul.mubr.f32.gmra.mrb[8].mxu1 %v285_v8  ;;  %v526_v7 = vld [vmem:[%s4990_s8 + $0x688] sm:$0xff]  ;;  %v3831_v12 = vpack.c.bf16 %v523_v6, %v519_v4  ;;  %v572_v6 = vld [vmem:[%s4990_s8 + $0x7f8] sm:$0xff] }
  0x8d   : > { %3812 = vmatpush1.bf16.msra.mxu1 %v3811_v9  ;;  %3558 = vmatprep.subr.bf16.mxu0 %v3557_v10  ;;  %v530_v8 = vld [vmem:[%s4990_s8 + $0x6a8] sm:$0xff]  ;;  %v528_v9 = vld [vmem:[%s4990_s8 + $0x698] sm:$0xff] }
  0x8e   : > { %3814 = vmatprep.subr.bf16.mxu1 %v3813_v14  ;;  %945 = vmatprep.mubr.f32.mxu0 %v294_v20  ;;  %v532_v10 = vld [vmem:[%s4990_s8 + $0x6b8] sm:$0xff]  ;;  %v3577_v13 = vpack.c.bf16 %v530_v8, %v526_v7  ;;  %v525_v14 = vld [vmem:[%s4990_s8 + $0x680] sm:$0xff]  ;;  %v570_v4 = vld [vmem:[%s4990_s8 + $0x7e8] sm:$0xff] }
  0x8f   : > { %1397 = vmatprep.mubr.f32.mxu1 %v294_v20  ;;  %946 = vmatmul.mubr.f32.gmra.mrb[10].mxu0 %v293_v22  ;;  %v3833_v17 = vpack.c.bf16 %v532_v10, %v528_v9  ;;  %v538_v20 = vld [vmem:[%s4990_s8 + $0x6e8] sm:$0xff]  ;;  %v3597_v9 = vpack.c.bf16 %v570_v4, %v566_v3  ;;  %v565_v10 = vld [vmem:[%s4990_s8 + $0x7c0] sm:$0xff]  ;;  %v603_v3 = vld [vmem:[%s4990_s8 + $0x8f0] sm:$0xff] }
  0x90   : > { %3560 = vmatpush1.bf16.msra.mxu0 %v3559_v21  ;;  %1398 = vmatmul.mubr.f32.gmra.mrb[10].mxu1 %v293_v22  ;;  %v536_v21 = vld [vmem:[%s4990_s8 + $0x6d8] sm:$0xff]  ;;  %v3581_v25 = vpack.c.bf16 %v538_v20, %v534_v19  ;;  %v606_v4 = vld [vmem:[%s4990_s8 + $0x908] sm:$0xff] }
  0x91   : > { %3816 = vmatpush1.bf16.msra.mxu1 %v3815_v23  ;;  %3562 = vmatprep.subr.bf16.mxu0 %v3561_v24  ;;  %v540_v22 = vld [vmem:[%s4990_s8 + $0x6f8] sm:$0xff]  ;;  %v3579_v23 = vpack.c.bf16 %v529_v15, %v525_v14  ;;  %v3835_v24 = vpack.c.bf16 %v531_v18, %v527_v16  ;;  %v571_v14 = vld [vmem:[%s4990_s8 + $0x7f0] sm:$0xff]  ;;  %v574_v15 = vld [vmem:[%s4990_s8 + $0x808] sm:$0xff] }
  0x92   : > { %3818 = vmatprep.subr.bf16.mxu1 %v3817_v28  ;;  %951 = vmatprep.mubr.f32.mxu0 %v302_v34  ;;  %v535_v28 = vld [vmem:[%s4990_s8 + $0x6d0] sm:$0xff]  ;;  %v3837_v29 = vpack.c.bf16 %v540_v22, %v536_v21  ;;  %v578_v16 = vld [vmem:[%s4990_s8 + $0x828] sm:$0xff]  ;;  %v580_v18 = vld [vmem:[%s4990_s8 + $0x838] sm:$0xff] }
  0x93   : > { %1403 = vmatprep.mubr.f32.mxu1 %v302_v34  ;;  %952 = vmatmul.mubr.f32.gmra.mrb[12].mxu0 %v301_v36  ;;  %v548_v34 = vld [vmem:[%s4990_s8 + $0x738] sm:$0xff]  ;;  %v3601_v21 = vpack.c.bf16 %v578_v16, %v574_v15  ;;  %v573_v22 = vld [vmem:[%s4990_s8 + $0x800] sm:$0xff]  ;;  %v607_v15 = vld [vmem:[%s4990_s8 + $0x910] sm:$0xff] }
  0x94   : > { %3564 = vmatpush1.bf16.msra.mxu0 %v3563_v35  ;;  %1404 = vmatmul.mubr.f32.gmra.mrb[12].mxu1 %v301_v36  ;;  %v3583_v35 = vpack.c.bf16 %v537_v27, %v533_v26  ;;  %v3839_v36 = vpack.c.bf16 %v539_v30, %v535_v28  ;;  %v3841_v41 = vpack.c.bf16 %v548_v34, %v544_v33  ;;  %v579_v26 = vld [vmem:[%s4990_s8 + $0x830] sm:$0xff]  ;;  %v582_v27 = vld [vmem:[%s4990_s8 + $0x848] sm:$0xff]  ;;  %v588_v30 = vld [vmem:[%s4990_s8 + $0x878] sm:$0xff] }
  0x95   : > { %3820 = vmatpush1.bf16.msra.mxu1 %v3819_v37  ;;  %3566 = vmatprep.subr.bf16.mxu0 %v3565_v38  ;;  %v3585_v37 = vpack.c.bf16 %v546_v32, %v542_v31  ;;  %v541_v38 = vld [vmem:[%s4990_s8 + $0x700] sm:$0xff]  ;;  %v586_v28 = vld [vmem:[%s4990_s8 + $0x868] sm:$0xff]  ;;  %v255_v31 = vld [vmem:[%s6191_s0 + $0x10] sm:$0xff] }
  0x96   : > { %3822 = vmatprep.subr.bf16.mxu1 %v3821_v42  ;;  %957 = vmatprep.mubr.f32.mxu0 %v310_v48  ;;  %v547_v42 = vld [vmem:[%s4990_s8 + $0x730] sm:$0xff]  ;;  %v3587_v47 = vpack.c.bf16 %v545_v39, %v541_v38  ;;  %v3605_v34 = vpack.c.bf16 %v586_v28, %v582_v27  ;;  %v613_v27 = vld [vmem:[%s4990_s8 + $0x940] sm:$0xff] }
  0x97   : > { %1409 = vmatprep.mubr.f32.mxu1 %v310_v48  ;;  %958 = vmatmul.mubr.f32.gmra.mrb[14].mxu0 %v309_v50  ;;  %v3843_v48 = vpack.c.bf16 %v547_v42, %v543_v40  ;;  %v587_v39 = vld [vmem:[%s4990_s8 + $0x870] sm:$0xff]  ;;  %v590_v40 = vld [vmem:[%s4990_s8 + $0x888] sm:$0xff]  ;;  %v592_v42 = vld [vmem:[%s4990_s8 + $0x898] sm:$0xff] }
  0x98   : > { %3568 = vmatpush1.bf16.msra.mxu0 %v3567_v49  ;;  %1410 = vmatmul.mubr.f32.gmra.mrb[14].mxu1 %v309_v50  ;;  %v3589_v49 = vpack.c.bf16 %v554_v44, %v550_v43  ;;  %v549_v50 = vld [vmem:[%s4990_s8 + $0x740] sm:$0xff]  ;;  %v596_v43 = vld [vmem:[%s4990_s8 + $0x8b8] sm:$0xff] }
  0x99   : > { %3824 = vmatpush1.bf16.msra.mxu1 %v3823_v51  ;;  %3570 = vmatprep.subr.bf16.mxu0 %v3569_v52  ;;  %v553_v51 = vld [vmem:[%s4990_s8 + $0x760] sm:$0xff]  ;;  %v551_v52 = vld [vmem:[%s4990_s8 + $0x750] sm:$0xff]  ;;  %v264_v44 = vld [vmem:[%s6191_s0 + $0x58] sm:$0xff] }
  0x9a   : > { %3826 = vmatprep.subr.bf16.mxu1 %v3825_v56  ;;  %1028 = vmatprep.mubr.f32.mxu0 %v256_v62  ;;  %v562_v56 = vld [vmem:[%s4990_s8 + $0x7a8] sm:$0xff]  ;;  %v3591_v59 = vpack.c.bf16 %v553_v51, %v549_v50  ;;  %v3847_v60 = vpack.c.bf16 %v555_v54, %v551_v52  ;;  %v593_v50 = vld [vmem:[%s4990_s8 + $0x8a0] sm:$0xff]  ;;  %v591_v51 = vld [vmem:[%s4990_s8 + $0x890] sm:$0xff]  ;;  %v3865_v52 = vpack.c.bf16 %v596_v43, %v592_v42 }
  0x9b   : > { %1480 = vmatprep.mubr.f32.mxu1 %v256_v62  ;;  %v3593_v61 = vpack.c.bf16 %v562_v56, %v558_v55  ;;  %v557_v62 = vld [vmem:[%s4990_s8 + $0x780] sm:$0xff]  ;;  %v598_v54 = vld [vmem:[%s4990_s8 + $0x8c8] sm:$0xff]  ;;  %v600_v56 = vld [vmem:[%s4990_s8 + $0x8d8] sm:$0xff] }
  0x9c   : > { %3572 = vmatpush1.bf16.msra.mxu0 %v3571_v63  ;;  %v561_v63 = vld [vmem:[%s4990_s8 + $0x7a0] sm:$0xff]  ;;  %v602_v55 = vld [vmem:[%s4990_s8 + $0x8e8] sm:$0xff]  ;;  %v623_v43 = vld [vmem:[%s4990_s8 + $0x990] sm:$0xff] }
  0x9d   : > { %3828 = vmatpush1.bf16.msra.mxu1 %v3827_v0  ;;  %3574 = vmatprep.subr.bf16.mxu0 %v3573_v1  ;;  %v559_v0 = vld [vmem:[%s4990_s8 + $0x790] sm:$0xff]  ;;  %v3849_v1 = vpack.c.bf16 %v564_v58, %v560_v57  ;;  %v3595_v7 = vpack.c.bf16 %v561_v63, %v557_v62  ;;  %v604_v57 = vld [vmem:[%s4990_s8 + $0x8f8] sm:$0xff]  ;;  %v3613_v62 = vpack.c.bf16 %v602_v55, %v598_v54  ;;  %v597_v63 = vld [vmem:[%s4990_s8 + $0x8c0] sm:$0xff] }
  0x9e   : > { %3830 = vmatprep.subr.bf16.mxu1 %v3829_v5  ;;  %v568_v5 = vld [vmem:[%s4990_s8 + $0x7d8] sm:$0xff]  ;;  %v3851_v8 = vpack.c.bf16 %v563_v2, %v559_v0  ;;  %v601_v0 = vld [vmem:[%s4990_s8 + $0x8e0] sm:$0xff]  ;;  %v3869_v2 = vpack.c.bf16 %v604_v57, %v600_v56  ;;  %v631_v57 = vld [vmem:[%s4990_s8 + $0x9d0] sm:$0xff] }
  0x9f   : > { %v272_v58 = vld [vmem:[%s6191_s0 + $0x98] sm:$0xff]  ;;  %v617_v28 = vld [vmem:[%s4990_s8 + $0x960] sm:$0xff] }
  0xa0   : > { %3576 = vmatpush1.bf16.msra.mxu0 %v3575_v11  ;;  %v569_v11 = vld [vmem:[%s4990_s8 + $0x7e0] sm:$0xff] }
  0xa1   : > { %3832 = vmatpush1.bf16.msra.mxu1 %v3831_v12  ;;  %3578 = vmatprep.subr.bf16.mxu0 %v3577_v13  ;;  %v567_v12 = vld [vmem:[%s4990_s8 + $0x7d0] sm:$0xff]  ;;  %v3853_v13 = vpack.c.bf16 %v572_v6, %v568_v5  ;;  %v3599_v19 = vpack.c.bf16 %v569_v11, %v565_v10  ;;  %v610_v5 = vld [vmem:[%s4990_s8 + $0x928] sm:$0xff]  ;;  %v608_v6 = vld [vmem:[%s4990_s8 + $0x918] sm:$0xff] }
  0xa2   : > { %3834 = vmatprep.subr.bf16.mxu1 %v3833_v17  ;;  %v576_v17 = vld [vmem:[%s4990_s8 + $0x818] sm:$0xff]  ;;  %v3855_v20 = vpack.c.bf16 %v571_v14, %v567_v12  ;;  %v279_v10 = vld [vmem:[%s6191_s0 + $0xd0] sm:$0xff]  ;;  %v3617_v12 = vpack.c.bf16 %v610_v5, %v606_v4  ;;  %v609_v14 = vld [vmem:[%s4990_s8 + $0x920] sm:$0xff] }
  0xa3   : > { %v625_v42 = vld [vmem:[%s4990_s8 + $0x9a0] sm:$0xff] }
  0xa4   : > { %3580 = vmatpush1.bf16.msra.mxu0 %v3579_v23  ;;  %v577_v23 = vld [vmem:[%s4990_s8 + $0x820] sm:$0xff] }
  0xa5   : > { %3836 = vmatpush1.bf16.msra.mxu1 %v3835_v24  ;;  %3582 = vmatprep.subr.bf16.mxu0 %v3581_v25  ;;  %v575_v24 = vld [vmem:[%s4990_s8 + $0x810] sm:$0xff]  ;;  %v3857_v25 = vpack.c.bf16 %v580_v18, %v576_v17  ;;  %v3603_v32 = vpack.c.bf16 %v577_v23, %v573_v22  ;;  %v614_v18 = vld [vmem:[%s4990_s8 + $0x948] sm:$0xff]  ;;  %v288_v22 = vld [vmem:[%s6191_s0 + $0x118] sm:$0xff] }
  0xa6   : > { %3838 = vmatprep.subr.bf16.mxu1 %v3837_v29  ;;  %v584_v29 = vld [vmem:[%s4990_s8 + $0x858] sm:$0xff]  ;;  %v3859_v33 = vpack.c.bf16 %v579_v26, %v575_v24  ;;  %v611_v17 = vld [vmem:[%s4990_s8 + $0x930] sm:$0xff]  ;;  %v629_v55 = vld [vmem:[%s4990_s8 + $0x9c0] sm:$0xff] }
  0xa7   : > { %v3861_v38 = vpack.c.bf16 %v588_v30, %v584_v29  ;;  %v287_v24 = vld [vmem:[%s6191_s0 + $0x110] sm:$0xff]  ;;  %v633_v56 = vld [vmem:[%s4990_s8 + $0x9e0] sm:$0xff] }
  0xa8   : > { %3584 = vmatpush1.bf16.msra.mxu0 %v3583_v35  ;;  %v581_v35 = vld [vmem:[%s4990_s8 + $0x840] sm:$0xff]  ;;  %v615_v29 = vld [vmem:[%s4990_s8 + $0x950] sm:$0xff] }
  0xa9   : > { %3840 = vmatpush1.bf16.msra.mxu1 %v3839_v36  ;;  %3586 = vmatprep.subr.bf16.mxu0 %v3585_v37  ;;  %v585_v36 = vld [vmem:[%s4990_s8 + $0x860] sm:$0xff]  ;;  %v583_v37 = vld [vmem:[%s4990_s8 + $0x850] sm:$0xff] }
  0xaa   : > { %3842 = vmatprep.subr.bf16.mxu1 %v3841_v41  ;;  %v594_v41 = vld [vmem:[%s4990_s8 + $0x8a8] sm:$0xff]  ;;  %v3607_v45 = vpack.c.bf16 %v585_v36, %v581_v35  ;;  %v628_v35 = vld [vmem:[%s4990_s8 + $0x9b8] sm:$0xff]  ;;  %v637_v5 = vld [vmem:[%s4990_s8 + $0xa00] sm:$0xff] }
  0xab   : > { %v296_v36 = vld [vmem:[%s6191_s0 + $0x158] sm:$0xff] }
  0xac   : > { %3588 = vmatpush1.bf16.msra.mxu0 %v3587_v47  ;;  %v3863_v47 = vpack.c.bf16 %v587_v39, %v583_v37  ;;  %v3623_v37 = vpack.c.bf16 %v617_v28, %v613_v27 }
  0xad   : > { %3844 = vmatpush1.bf16.msra.mxu1 %v3843_v48  ;;  %3590 = vmatprep.subr.bf16.mxu0 %v3589_v49  ;;  %v3609_v48 = vpack.c.bf16 %v594_v41, %v590_v40  ;;  %v589_v49 = vld [vmem:[%s4990_s8 + $0x880] sm:$0xff] }
  0xae   : > { %3846 = vmatprep.subr.bf16.mxu1 %v3845_v53  ;;  %v595_v53 = vld [vmem:[%s4990_s8 + $0x8b0] sm:$0xff]  ;;  %v621_v41 = vld [vmem:[%s4990_s8 + $0x980] sm:$0xff] }
  0xb0   : > { %3592 = vmatpush1.bf16.msra.mxu0 %v3591_v59  ;;  %v3611_v59 = vpack.c.bf16 %v593_v50, %v589_v49  ;;  %v636_v49 = vld [vmem:[%s4990_s8 + $0x9f8] sm:$0xff] }
  0xb1   : > { %3848 = vmatpush1.bf16.msra.mxu1 %v3847_v60  ;;  %3594 = vmatprep.subr.bf16.mxu0 %v3593_v61  ;;  %v271_v60 = vld [vmem:[%s6191_s0 + $0x90] sm:$0xff]  ;;  %v3867_v61 = vpack.c.bf16 %v595_v53, %v591_v51  ;;  %v304_v50 = vld [vmem:[%s6191_s0 + $0x198] sm:$0xff]  ;;  %v3627_v51 = vpack.c.bf16 %v625_v42, %v621_v41  ;;  %v661_v42 = vld [vmem:[%s4990_s8 + $0xac0] sm:$0xff] }
  0xb2   : > { %3850 = vmatprep.subr.bf16.mxu1 %v3849_v1  ;;  %v599_v1 = vld [vmem:[%s4990_s8 + $0x8d0] sm:$0xff] }
  0xb3   : > { %v3871_v11 = vpack.c.bf16 %v603_v3, %v599_v1  ;;  %v3631_v1 = vpack.c.bf16 %v633_v56, %v629_v55  ;;  %v673_v55 = vld [vmem:[%s4990_s8 + $0xb20] sm:$0xff]  ;;  %v671_v56 = vld [vmem:[%s4990_s8 + $0xb10] sm:$0xff] }
  0xb4   : > { %3596 = vmatpush1.bf16.msra.mxu0 %v3595_v7  ;;  %v612_v7 = vld [vmem:[%s4990_s8 + $0x938] sm:$0xff] }
  0xb5   : > { %3852 = vmatpush1.bf16.msra.mxu1 %v3851_v8  ;;  %3598 = vmatprep.subr.bf16.mxu0 %v3597_v9  ;;  %v280_v8 = vld [vmem:[%s6191_s0 + $0xd8] sm:$0xff]  ;;  %v3615_v9 = vpack.c.bf16 %v601_v0, %v597_v63  ;;  %v3873_v16 = vpack.c.bf16 %v612_v7, %v608_v6  ;;  %v641_v6 = vld [vmem:[%s4990_s8 + $0xa20] sm:$0xff]  ;;  %v639_v7 = vld [vmem:[%s4990_s8 + $0xa10] sm:$0xff] }
  0xb6   : > { %3854 = vmatprep.subr.bf16.mxu1 %v3853_v13  ;;  %v605_v13 = vld [vmem:[%s4990_s8 + $0x900] sm:$0xff]  ;;  %v644_v63 = vld [vmem:[%s4990_s8 + $0xa38] sm:$0xff] }
  0xb7   : > { %v3619_v23 = vpack.c.bf16 %v609_v14, %v605_v13  ;;  %v312_v0 = vld [vmem:[%s6191_s0 + $0x1d8] sm:$0xff]  ;;  %v258_v14 = vld [vmem:[%s6191_s0 + $0x28] sm:$0xff] }
  0xb8   : > { %3600 = vmatpush1.bf16.msra.mxu0 %v3599_v19  ;;  %v618_v19 = vld [vmem:[%s4990_s8 + $0x968] sm:$0xff]  ;;  %v652_v13 = vld [vmem:[%s4990_s8 + $0xa78] sm:$0xff] }
  0xb9   : > { %3856 = vmatpush1.bf16.msra.mxu1 %v3855_v20  ;;  %3602 = vmatprep.subr.bf16.mxu0 %v3601_v21  ;;  %v616_v20 = vld [vmem:[%s4990_s8 + $0x958] sm:$0xff]  ;;  %v3621_v26 = vpack.c.bf16 %v618_v19, %v614_v18  ;;  %v645_v18 = vld [vmem:[%s4990_s8 + $0xa40] sm:$0xff] }
  0xba   : > { %3858 = vmatprep.subr.bf16.mxu1 %v3857_v25  ;;  %v620_v21 = vld [vmem:[%s4990_s8 + $0x978] sm:$0xff]  ;;  %v3875_v25 = vpack.c.bf16 %v611_v17, %v607_v15  ;;  %v3635_v15 = vpack.c.bf16 %v641_v6, %v637_v5  ;;  %v649_v19 = vld [vmem:[%s4990_s8 + $0xa60] sm:$0xff]  ;;  %v683_v6 = vld [vmem:[%s4990_s8 + $0xb70] sm:$0xff] }
  0xbb   : > { %1029 = vmatmul.mubr.f32.vlgmr.msra.gmra.mrb[0].mxu0 %v255_v31  ;;  %v3877_v30 = vpack.c.bf16 %v620_v21, %v616_v20  ;;  %v647_v20 = vld [vmem:[%s4990_s8 + $0xa50] sm:$0xff]  ;;  %v3639_v27 = vpack.c.bf16 %v649_v19, %v645_v18  ;;  %v694_v19 = vld [vmem:[%s4990_s8 + $0xbc8] sm:$0xff] }
  0xbc   : > { %3604 = vmatpush1.bf16.msra.mxu0 %v3603_v32  ;;  %1481 = vmatmul.mubr.f32.vlgmr.msra.gmra.mrb[0].mxu1 %v255_v31  ;;  %v619_v31 = vld [vmem:[%s4990_s8 + $0x970] sm:$0xff]  ;;  %v622_v32 = vld [vmem:[%s4990_s8 + $0x988] sm:$0xff] }
  0xbd   : > { %3860 = vmatpush1.bf16.msra.mxu1 %v3859_v33  ;;  %3606 = vmatprep.subr.bf16.mxu0 %v3605_v34  ;;  %v626_v33 = vld [vmem:[%s4990_s8 + $0x9a8] sm:$0xff]  ;;  %v624_v34 = vld [vmem:[%s4990_s8 + $0x998] sm:$0xff]  ;;  %v3879_v39 = vpack.c.bf16 %v619_v31, %v615_v29  ;;  %v657_v31 = vld [vmem:[%s4990_s8 + $0xaa0] sm:$0xff] }
  0xbe   : > { %3862 = vmatprep.subr.bf16.mxu1 %v3861_v38  ;;  %1034 = vmatprep.mubr.f32.mxu0 %v264_v44  ;;  %v295_v38 = vld [vmem:[%s6191_s0 + $0x150] sm:$0xff]  ;;  %v3625_v40 = vpack.c.bf16 %v626_v33, %v622_v32 }
  0xbf   : > { %1486 = vmatprep.mubr.f32.mxu1 %v264_v44  ;;  %1035 = vmatmul.mubr.f32.gmra.mrb[2].mxu0 %v263_v46  ;;  %v3881_v44 = vpack.c.bf16 %v628_v35, %v624_v34  ;;  %v655_v32 = vld [vmem:[%s4990_s8 + $0xa90] sm:$0xff]  ;;  %v662_v35 = vld [vmem:[%s4990_s8 + $0xac8] sm:$0xff] }
  0xc0   : > { %3608 = vmatpush1.bf16.msra.mxu0 %v3607_v45  ;;  %1487 = vmatmul.mubr.f32.gmra.mrb[2].mxu1 %v263_v46  ;;  %v627_v45 = vld [vmem:[%s4990_s8 + $0x9b0] sm:$0xff]  ;;  %v630_v46 = vld [vmem:[%s4990_s8 + $0x9c8] sm:$0xff] }
  0xc1   : > { %3864 = vmatpush1.bf16.msra.mxu1 %v3863_v47  ;;  %3610 = vmatprep.subr.bf16.mxu0 %v3609_v48  ;;  %v634_v47 = vld [vmem:[%s4990_s8 + $0x9e8] sm:$0xff]  ;;  %v632_v48 = vld [vmem:[%s4990_s8 + $0x9d8] sm:$0xff]  ;;  %v3883_v53 = vpack.c.bf16 %v627_v45, %v623_v43  ;;  %v659_v34 = vld [vmem:[%s4990_s8 + $0xab0] sm:$0xff] }
  0xc2   : > { %3866 = vmatprep.subr.bf16.mxu1 %v3865_v52  ;;  %1040 = vmatprep.mubr.f32.mxu0 %v272_v58  ;;  %v303_v52 = vld [vmem:[%s6191_s0 + $0x190] sm:$0xff]  ;;  %v3629_v54 = vpack.c.bf16 %v634_v47, %v630_v46  ;;  %v665_v43 = vld [vmem:[%s4990_s8 + $0xae0] sm:$0xff]  ;;  %v670_v47 = vld [vmem:[%s4990_s8 + $0xb08] sm:$0xff] }
  0xc3   : > { %1492 = vmatprep.mubr.f32.mxu1 %v272_v58  ;;  %1041 = vmatmul.mubr.f32.gmra.mrb[4].mxu0 %v271_v60  ;;  %v3885_v58 = vpack.c.bf16 %v636_v49, %v632_v48  ;;  %v667_v46 = vld [vmem:[%s4990_s8 + $0xaf0] sm:$0xff]  ;;  %v674_v48 = vld [vmem:[%s4990_s8 + $0xb28] sm:$0xff]  ;;  %v672_v49 = vld [vmem:[%s4990_s8 + $0xb18] sm:$0xff] }
  0xc4   : > { %3612 = vmatpush1.bf16.msra.mxu0 %v3611_v59  ;;  %1493 = vmatmul.mubr.f32.gmra.mrb[4].mxu1 %v271_v60  ;;  %v635_v59 = vld [vmem:[%s4990_s8 + $0x9f0] sm:$0xff]  ;;  %v638_v60 = vld [vmem:[%s4990_s8 + $0xa08] sm:$0xff] }
  0xc5   : > { %3868 = vmatpush1.bf16.msra.mxu1 %v3867_v61  ;;  %3614 = vmatprep.subr.bf16.mxu0 %v3613_v62  ;;  %v642_v61 = vld [vmem:[%s4990_s8 + $0xa28] sm:$0xff]  ;;  %v640_v62 = vld [vmem:[%s4990_s8 + $0xa18] sm:$0xff]  ;;  %v3887_v3 = vpack.c.bf16 %v635_v59, %v631_v57  ;;  %v691_v18 = vld [vmem:[%s4990_s8 + $0xbb0] sm:$0xff] }
  0xc6   : > { %3870 = vmatprep.subr.bf16.mxu1 %v3869_v2  ;;  %1046 = vmatprep.mubr.f32.mxu0 %v280_v8  ;;  %v311_v2 = vld [vmem:[%s6191_s0 + $0x1d0] sm:$0xff]  ;;  %v3633_v4 = vpack.c.bf16 %v642_v61, %v638_v60  ;;  %v678_v59 = vld [vmem:[%s4990_s8 + $0xb48] sm:$0xff]  ;;  %v680_v61 = vld [vmem:[%s4990_s8 + $0xb58] sm:$0xff] }
  0xc7   : > { %1498 = vmatprep.mubr.f32.mxu1 %v280_v8  ;;  %1047 = vmatmul.mubr.f32.gmra.mrb[6].mxu0 %v279_v10  ;;  %v3889_v8 = vpack.c.bf16 %v644_v63, %v640_v62  ;;  %v682_v60 = vld [vmem:[%s4990_s8 + $0xb68] sm:$0xff]  ;;  %v684_v62 = vld [vmem:[%s4990_s8 + $0xb78] sm:$0xff] }
  0xc8   : > { %3616 = vmatpush1.bf16.msra.mxu0 %v3615_v9  ;;  %1499 = vmatmul.mubr.f32.gmra.mrb[6].mxu1 %v279_v10  ;;  %v643_v9 = vld [vmem:[%s4990_s8 + $0xa30] sm:$0xff]  ;;  %v646_v10 = vld [vmem:[%s4990_s8 + $0xa48] sm:$0xff]  ;;  %v3909_v5 = vpack.c.bf16 %v684_v62, %v680_v61  ;;  %v265_v62 = vld [vmem:[%s6191_s0 + $0x60] sm:$0xff] }
  0xc9   : > { %3872 = vmatpush1.bf16.msra.mxu1 %v3871_v11  ;;  %3618 = vmatprep.subr.bf16.mxu0 %v3617_v12  ;;  %v650_v11 = vld [vmem:[%s4990_s8 + $0xa68] sm:$0xff]  ;;  %v648_v12 = vld [vmem:[%s4990_s8 + $0xa58] sm:$0xff] }
  0xca   : > { %3874 = vmatprep.subr.bf16.mxu1 %v3873_v16  ;;  %1052 = vmatprep.mubr.f32.mxu0 %v288_v22  ;;  %v3891_v16 = vpack.c.bf16 %v643_v9, %v639_v7  ;;  %v3637_v17 = vpack.c.bf16 %v650_v11, %v646_v10  ;;  %v3893_v21 = vpack.c.bf16 %v652_v13, %v648_v12  ;;  %v686_v7 = vld [vmem:[%s4990_s8 + $0xb88] sm:$0xff]  ;;  %v688_v9 = vld [vmem:[%s4990_s8 + $0xb98] sm:$0xff] }
  0xcb   : > { %1504 = vmatprep.mubr.f32.mxu1 %v288_v22  ;;  %1053 = vmatmul.mubr.f32.gmra.mrb[8].mxu0 %v287_v24  ;;  %v651_v22 = vld [vmem:[%s4990_s8 + $0xa70] sm:$0xff]  ;;  %v692_v10 = vld [vmem:[%s4990_s8 + $0xbb8] sm:$0xff] }
  0xcc   : > { %3620 = vmatpush1.bf16.msra.mxu0 %v3619_v23  ;;  %1505 = vmatmul.mubr.f32.gmra.mrb[8].mxu1 %v287_v24  ;;  %v654_v23 = vld [vmem:[%s4990_s8 + $0xa88] sm:$0xff]  ;;  %v3895_v28 = vpack.c.bf16 %v651_v22, %v647_v20  ;;  %v700_v22 = vld [vmem:[%s4990_s8 + $0xbf8] sm:$0xff] }
  0xcd   : > { %3876 = vmatpush1.bf16.msra.mxu1 %v3875_v25  ;;  %3622 = vmatprep.subr.bf16.mxu0 %v3621_v26  ;;  %v658_v24 = vld [vmem:[%s4990_s8 + $0xaa8] sm:$0xff]  ;;  %v656_v25 = vld [vmem:[%s4990_s8 + $0xa98] sm:$0xff] }
  0xce   : > { %3878 = vmatprep.subr.bf16.mxu1 %v3877_v30  ;;  %1058 = vmatprep.mubr.f32.mxu0 %v296_v36  ;;  %v660_v26 = vld [vmem:[%s4990_s8 + $0xab8] sm:$0xff]  ;;  %v3641_v29 = vpack.c.bf16 %v658_v24, %v654_v23  ;;  %v653_v30 = vld [vmem:[%s4990_s8 + $0xa80] sm:$0xff]  ;;  %v698_v20 = vld [vmem:[%s4990_s8 + $0xbe8] sm:$0xff] }
  0xcf   : > { %1510 = vmatprep.mubr.f32.mxu1 %v296_v36  ;;  %1059 = vmatmul.mubr.f32.gmra.mrb[10].mxu0 %v295_v38  ;;  %v3897_v33 = vpack.c.bf16 %v660_v26, %v656_v25  ;;  %v666_v36 = vld [vmem:[%s4990_s8 + $0xae8] sm:$0xff]  ;;  %v3661_v25 = vpack.c.bf16 %v698_v20, %v694_v19  ;;  %v693_v26 = vld [vmem:[%s4990_s8 + $0xbc0] sm:$0xff]  ;;  %v731_v19 = vld [vmem:[%s4990_s8 + $0xcf0] sm:$0xff] }
  0xd0   : > { %3624 = vmatpush1.bf16.msra.mxu0 %v3623_v37  ;;  %1511 = vmatmul.mubr.f32.gmra.mrb[10].mxu1 %v295_v38  ;;  %v664_v37 = vld [vmem:[%s4990_s8 + $0xad8] sm:$0xff]  ;;  %v3645_v41 = vpack.c.bf16 %v666_v36, %v662_v35  ;;  %v734_v20 = vld [vmem:[%s4990_s8 + $0xd08] sm:$0xff] }
  0xd1   : > { %3880 = vmatpush1.bf16.msra.mxu1 %v3879_v39  ;;  %3626 = vmatprep.subr.bf16.mxu0 %v3625_v40  ;;  %v668_v38 = vld [vmem:[%s4990_s8 + $0xaf8] sm:$0xff]  ;;  %v3643_v39 = vpack.c.bf16 %v657_v31, %v653_v30  ;;  %v3899_v40 = vpack.c.bf16 %v659_v34, %v655_v32  ;;  %v699_v30 = vld [vmem:[%s4990_s8 + $0xbf0] sm:$0xff]  ;;  %v702_v31 = vld [vmem:[%s4990_s8 + $0xc08] sm:$0xff] }
  0xd2   : > { %3882 = vmatprep.subr.bf16.mxu1 %v3881_v44  ;;  %1064 = vmatprep.mubr.f32.mxu0 %v304_v50  ;;  %v663_v44 = vld [vmem:[%s4990_s8 + $0xad0] sm:$0xff]  ;;  %v3901_v45 = vpack.c.bf16 %v668_v38, %v664_v37  ;;  %v706_v32 = vld [vmem:[%s4990_s8 + $0xc28] sm:$0xff]  ;;  %v708_v34 = vld [vmem:[%s4990_s8 + $0xc38] sm:$0xff] }
  0xd3   : > { %1516 = vmatprep.mubr.f32.mxu1 %v304_v50  ;;  %1065 = vmatmul.mubr.f32.gmra.mrb[12].mxu0 %v303_v52  ;;  %v676_v50 = vld [vmem:[%s4990_s8 + $0xb38] sm:$0xff]  ;;  %v3665_v37 = vpack.c.bf16 %v706_v32, %v702_v31  ;;  %v701_v38 = vld [vmem:[%s4990_s8 + $0xc00] sm:$0xff]  ;;  %v735_v31 = vld [vmem:[%s4990_s8 + $0xd10] sm:$0xff] }
  0xd4   : > { %3628 = vmatpush1.bf16.msra.mxu0 %v3627_v51  ;;  %1517 = vmatmul.mubr.f32.gmra.mrb[12].mxu1 %v303_v52  ;;  %v3647_v51 = vpack.c.bf16 %v665_v43, %v661_v42  ;;  %v3903_v52 = vpack.c.bf16 %v667_v46, %v663_v44  ;;  %v3905_v57 = vpack.c.bf16 %v676_v50, %v672_v49  ;;  %v707_v42 = vld [vmem:[%s4990_s8 + $0xc30] sm:$0xff]  ;;  %v710_v43 = vld [vmem:[%s4990_s8 + $0xc48] sm:$0xff]  ;;  %v716_v46 = vld [vmem:[%s4990_s8 + $0xc78] sm:$0xff] }
  0xd5   : > { %3884 = vmatpush1.bf16.msra.mxu1 %v3883_v53  ;;  %3630 = vmatprep.subr.bf16.mxu0 %v3629_v54  ;;  %v3649_v53 = vpack.c.bf16 %v674_v48, %v670_v47  ;;  %v669_v54 = vld [vmem:[%s4990_s8 + $0xb00] sm:$0xff]  ;;  %v714_v44 = vld [vmem:[%s4990_s8 + $0xc68] sm:$0xff] }
  0xd6   : > { %3886 = vmatprep.subr.bf16.mxu1 %v3885_v58  ;;  %1070 = vmatprep.mubr.f32.mxu0 %v312_v0  ;;  %v675_v58 = vld [vmem:[%s4990_s8 + $0xb30] sm:$0xff]  ;;  %v3651_v63 = vpack.c.bf16 %v673_v55, %v669_v54  ;;  %v257_v47 = vld [vmem:[%s6191_s0 + $0x20] sm:$0xff]  ;;  %v3669_v50 = vpack.c.bf16 %v714_v44, %v710_v43 }
  0xd7   : > { %1522 = vmatprep.mubr.f32.mxu1 %v312_v0  ;;  %1071 = vmatmul.mubr.f32.gmra.mrb[14].mxu0 %v311_v2  ;;  %v3907_v0 = vpack.c.bf16 %v675_v58, %v671_v56  ;;  %v715_v55 = vld [vmem:[%s4990_s8 + $0xc70] sm:$0xff]  ;;  %v718_v56 = vld [vmem:[%s4990_s8 + $0xc88] sm:$0xff]  ;;  %v720_v58 = vld [vmem:[%s4990_s8 + $0xc98] sm:$0xff] }
  0xd8   : > { %3632 = vmatpush1.bf16.msra.mxu0 %v3631_v1  ;;  %1523 = vmatmul.mubr.f32.gmra.mrb[14].mxu1 %v311_v2  ;;  %v3653_v1 = vpack.c.bf16 %v682_v60, %v678_v59  ;;  %v677_v2 = vld [vmem:[%s4990_s8 + $0xb40] sm:$0xff]  ;;  %v724_v59 = vld [vmem:[%s4990_s8 + $0xcb8] sm:$0xff]  ;;  %v266_v60 = vld [vmem:[%s6191_s0 + $0x68] sm:$0xff] }
  0xd9   : > { %3888 = vmatpush1.bf16.msra.mxu1 %v3887_v3  ;;  %3634 = vmatprep.subr.bf16.mxu0 %v3633_v4  ;;  %v681_v3 = vld [vmem:[%s4990_s8 + $0xb60] sm:$0xff]  ;;  %v679_v4 = vld [vmem:[%s4990_s8 + $0xb50] sm:$0xff] }
  0xda   : > { %3890 = vmatprep.subr.bf16.mxu1 %v3889_v8  ;;  %1141 = vmatprep.mubr.f32.mxu0 %v258_v14  ;;  %v690_v8 = vld [vmem:[%s4990_s8 + $0xba8] sm:$0xff]  ;;  %v3655_v11 = vpack.c.bf16 %v681_v3, %v677_v2  ;;  %v3911_v12 = vpack.c.bf16 %v683_v6, %v679_v4  ;;  %v721_v2 = vld [vmem:[%s4990_s8 + $0xca0] sm:$0xff]  ;;  %v719_v3 = vld [vmem:[%s4990_s8 + $0xc90] sm:$0xff]  ;;  %v3929_v4 = vpack.c.bf16 %v724_v59, %v720_v58 }
  0xdb   : > { %1593 = vmatprep.mubr.f32.mxu1 %v258_v14  ;;  %v3657_v13 = vpack.c.bf16 %v690_v8, %v686_v7  ;;  %v685_v14 = vld [vmem:[%s4990_s8 + $0xb80] sm:$0xff]  ;;  %v726_v6 = vld [vmem:[%s4990_s8 + $0xcc8] sm:$0xff]  ;;  %v728_v8 = vld [vmem:[%s4990_s8 + $0xcd8] sm:$0xff] }
  0xdc   : > { %3636 = vmatpush1.bf16.msra.mxu0 %v3635_v15  ;;  %v689_v15 = vld [vmem:[%s4990_s8 + $0xba0] sm:$0xff]  ;;  %v730_v7 = vld [vmem:[%s4990_s8 + $0xce8] sm:$0xff]  ;;  %v751_v59 = vld [vmem:[%s4990_s8 + $0xd90] sm:$0xff] }
  0xdd   : > { %3892 = vmatpush1.bf16.msra.mxu1 %v3891_v16  ;;  %3638 = vmatprep.subr.bf16.mxu0 %v3637_v17  ;;  %v687_v16 = vld [vmem:[%s4990_s8 + $0xb90] sm:$0xff]  ;;  %v3913_v17 = vpack.c.bf16 %v692_v10, %v688_v9  ;;  %v3659_v23 = vpack.c.bf16 %v689_v15, %v685_v14  ;;  %v732_v9 = vld [vmem:[%s4990_s8 + $0xcf8] sm:$0xff]  ;;  %v274_v10 = vld [vmem:[%s6191_s0 + $0xa8] sm:$0xff]  ;;  %v3677_v14 = vpack.c.bf16 %v730_v7, %v726_v6 }
  0xde   : > { %3894 = vmatprep.subr.bf16.mxu1 %v3893_v21  ;;  %v696_v21 = vld [vmem:[%s4990_s8 + $0xbd8] sm:$0xff]  ;;  %v3915_v24 = vpack.c.bf16 %v691_v18, %v687_v16  ;;  %v725_v15 = vld [vmem:[%s4990_s8 + $0xcc0] sm:$0xff]  ;;  %v3933_v18 = vpack.c.bf16 %v732_v9, %v728_v8  ;;  %v759_v9 = vld [vmem:[%s4990_s8 + $0xdd0] sm:$0xff] }
  0xdf   : > { %v729_v16 = vld [vmem:[%s4990_s8 + $0xce0] sm:$0xff] }
  0xe0   : > { %3640 = vmatpush1.bf16.msra.mxu0 %v3639_v27  ;;  %v697_v27 = vld [vmem:[%s4990_s8 + $0xbe0] sm:$0xff] }
  0xe1   : > { %3896 = vmatpush1.bf16.msra.mxu1 %v3895_v28  ;;  %3642 = vmatprep.subr.bf16.mxu0 %v3641_v29  ;;  %v695_v28 = vld [vmem:[%s4990_s8 + $0xbd0] sm:$0xff]  ;;  %v3917_v29 = vpack.c.bf16 %v700_v22, %v696_v21  ;;  %v3663_v35 = vpack.c.bf16 %v697_v27, %v693_v26  ;;  %v738_v21 = vld [vmem:[%s4990_s8 + $0xd28] sm:$0xff]  ;;  %v736_v22 = vld [vmem:[%s4990_s8 + $0xd18] sm:$0xff] }
  0xe2   : > { %3898 = vmatprep.subr.bf16.mxu1 %v3897_v33  ;;  %v704_v33 = vld [vmem:[%s4990_s8 + $0xc18] sm:$0xff]  ;;  %v3919_v36 = vpack.c.bf16 %v699_v30, %v695_v28  ;;  %v281_v26 = vld [vmem:[%s6191_s0 + $0xe0] sm:$0xff]  ;;  %v3681_v28 = vpack.c.bf16 %v738_v21, %v734_v20 }
  0xe3   : > { %v737_v30 = vld [vmem:[%s4990_s8 + $0xd20] sm:$0xff] }
  0xe4   : > { %3644 = vmatpush1.bf16.msra.mxu0 %v3643_v39  ;;  %v705_v39 = vld [vmem:[%s4990_s8 + $0xc20] sm:$0xff] }
  0xe5   : > { %3900 = vmatpush1.bf16.msra.mxu1 %v3899_v40  ;;  %3646 = vmatprep.subr.bf16.mxu0 %v3645_v41  ;;  %v703_v40 = vld [vmem:[%s4990_s8 + $0xc10] sm:$0xff]  ;;  %v3921_v41 = vpack.c.bf16 %v708_v34, %v704_v33  ;;  %v3667_v48 = vpack.c.bf16 %v705_v39, %v701_v38  ;;  %v742_v34 = vld [vmem:[%s4990_s8 + $0xd48] sm:$0xff]  ;;  %v741_v43 = vld [vmem:[%s4990_s8 + $0xd40] sm:$0xff] }
  0xe6   : > { %3902 = vmatprep.subr.bf16.mxu1 %v3901_v45  ;;  %v712_v45 = vld [vmem:[%s4990_s8 + $0xc58] sm:$0xff]  ;;  %v3923_v49 = vpack.c.bf16 %v707_v42, %v703_v40  ;;  %v739_v33 = vld [vmem:[%s4990_s8 + $0xd30] sm:$0xff]  ;;  %v290_v38 = vld [vmem:[%s6191_s0 + $0x128] sm:$0xff] }
  0xe7   : > { %v3925_v54 = vpack.c.bf16 %v716_v46, %v712_v45  ;;  %v289_v40 = vld [vmem:[%s6191_s0 + $0x120] sm:$0xff]  ;;  %v743_v45 = vld [vmem:[%s4990_s8 + $0xd50] sm:$0xff] }
  0xe8   : > { %3648 = vmatpush1.bf16.msra.mxu0 %v3647_v51  ;;  %v709_v51 = vld [vmem:[%s4990_s8 + $0xc40] sm:$0xff] }
  0xe9   : > { %3904 = vmatpush1.bf16.msra.mxu1 %v3903_v52  ;;  %3650 = vmatprep.subr.bf16.mxu0 %v3649_v53  ;;  %v713_v52 = vld [vmem:[%s4990_s8 + $0xc60] sm:$0xff]  ;;  %v711_v53 = vld [vmem:[%s4990_s8 + $0xc50] sm:$0xff] }
  0xea   : > { %3906 = vmatprep.subr.bf16.mxu1 %v3905_v57  ;;  %v722_v57 = vld [vmem:[%s4990_s8 + $0xca8] sm:$0xff]  ;;  %v3671_v61 = vpack.c.bf16 %v713_v52, %v709_v51  ;;  %v745_v44 = vld [vmem:[%s4990_s8 + $0xd60] sm:$0xff]  ;;  %v756_v51 = vld [vmem:[%s4990_s8 + $0xdb8] sm:$0xff] }
  0xeb   : > { %v298_v52 = vld [vmem:[%s6191_s0 + $0x168] sm:$0xff]  ;;  %v753_v58 = vld [vmem:[%s4990_s8 + $0xda0] sm:$0xff] }
  0xec   : > { %3652 = vmatpush1.bf16.msra.mxu0 %v3651_v63  ;;  %v3927_v63 = vpack.c.bf16 %v715_v55, %v711_v53  ;;  %v3687_v53 = vpack.c.bf16 %v745_v44, %v741_v43  ;;  %v757_v7 = vld [vmem:[%s4990_s8 + $0xdc0] sm:$0xff] }
  0xed   : > { %3908 = vmatpush1.bf16.msra.mxu1 %v3907_v0  ;;  %3654 = vmatprep.subr.bf16.mxu0 %v3653_v1  ;;  %v3673_v0 = vpack.c.bf16 %v722_v57, %v718_v56  ;;  %v717_v1 = vld [vmem:[%s4990_s8 + $0xc80] sm:$0xff] }
  0xee   : > { %3910 = vmatprep.subr.bf16.mxu1 %v3909_v5  ;;  %v723_v5 = vld [vmem:[%s4990_s8 + $0xcb0] sm:$0xff]  ;;  %v749_v57 = vld [vmem:[%s4990_s8 + $0xd80] sm:$0xff] }
  0xef   : > { %v761_v8 = vld [vmem:[%s4990_s8 + $0xde0] sm:$0xff] }
  0xf0   : > { %3656 = vmatpush1.bf16.msra.mxu0 %v3655_v11  ;;  %v3675_v11 = vpack.c.bf16 %v721_v2, %v717_v1  ;;  %v764_v1 = vld [vmem:[%s4990_s8 + $0xdf8] sm:$0xff]  ;;  %v306_v2 = vld [vmem:[%s6191_s0 + $0x1a8] sm:$0xff]  ;;  %v765_v21 = vld [vmem:[%s4990_s8 + $0xe00] sm:$0xff] }
  0xf1   : > { %3912 = vmatpush1.bf16.msra.mxu1 %v3911_v12  ;;  %3658 = vmatprep.subr.bf16.mxu0 %v3657_v13  ;;  %v273_v12 = vld [vmem:[%s6191_s0 + $0xa0] sm:$0xff]  ;;  %v3931_v13 = vpack.c.bf16 %v723_v5, %v719_v3  ;;  %v3691_v3 = vpack.c.bf16 %v753_v58, %v749_v57 }
  0xf2   : > { %3914 = vmatprep.subr.bf16.mxu1 %v3913_v17  ;;  %v727_v17 = vld [vmem:[%s4990_s8 + $0xcd0] sm:$0xff]  ;;  %v789_v58 = vld [vmem:[%s4990_s8 + $0xec0] sm:$0xff] }
  0xf3   : > { %v3935_v27 = vpack.c.bf16 %v731_v19, %v727_v17  ;;  %v3695_v17 = vpack.c.bf16 %v761_v8, %v757_v7  ;;  %v801_v7 = vld [vmem:[%s4990_s8 + $0xf20] sm:$0xff]  ;;  %v799_v8 = vld [vmem:[%s4990_s8 + $0xf10] sm:$0xff] }
  0xf4   : > { %3660 = vmatpush1.bf16.msra.mxu0 %v3659_v23  ;;  %v740_v23 = vld [vmem:[%s4990_s8 + $0xd38] sm:$0xff] }
  0xf5   : > { %3916 = vmatpush1.bf16.msra.mxu1 %v3915_v24  ;;  %3662 = vmatprep.subr.bf16.mxu0 %v3661_v25  ;;  %v282_v24 = vld [vmem:[%s6191_s0 + $0xe8] sm:$0xff]  ;;  %v3679_v25 = vpack.c.bf16 %v729_v16, %v725_v15  ;;  %v3937_v32 = vpack.c.bf16 %v740_v23, %v736_v22  ;;  %v772_v15 = vld [vmem:[%s4990_s8 + $0xe38] sm:$0xff]  ;;  %v769_v22 = vld [vmem:[%s4990_s8 + $0xe20] sm:$0xff] }
  0xf6   : > { %3918 = vmatprep.subr.bf16.mxu1 %v3917_v29  ;;  %v733_v29 = vld [vmem:[%s4990_s8 + $0xd00] sm:$0xff]  ;;  %v314_v16 = vld [vmem:[%s6191_s0 + $0x1e8] sm:$0xff]  ;;  %v767_v23 = vld [vmem:[%s4990_s8 + $0xe10] sm:$0xff] }
  0xf7   : > { %v3683_v39 = vpack.c.bf16 %v737_v30, %v733_v29  ;;  %v780_v29 = vld [vmem:[%s4990_s8 + $0xe78] sm:$0xff] }
  0xf8   : > { %3664 = vmatpush1.bf16.msra.mxu0 %v3663_v35  ;;  %v746_v35 = vld [vmem:[%s4990_s8 + $0xd68] sm:$0xff]  ;;  %v260_v30 = vld [vmem:[%s6191_s0 + $0x38] sm:$0xff] }
  0xf9   : > { %3920 = vmatpush1.bf16.msra.mxu1 %v3919_v36  ;;  %3666 = vmatprep.subr.bf16.mxu0 %v3665_v37  ;;  %v744_v36 = vld [vmem:[%s4990_s8 + $0xd58] sm:$0xff]  ;;  %v3685_v42 = vpack.c.bf16 %v746_v35, %v742_v34  ;;  %v773_v34 = vld [vmem:[%s4990_s8 + $0xe40] sm:$0xff] }
  0xfa   : > { %3922 = vmatprep.subr.bf16.mxu1 %v3921_v41  ;;  %v748_v37 = vld [vmem:[%s4990_s8 + $0xd78] sm:$0xff]  ;;  %v3939_v41 = vpack.c.bf16 %v739_v33, %v735_v31  ;;  %v3699_v31 = vpack.c.bf16 %v769_v22, %v765_v21  ;;  %v777_v35 = vld [vmem:[%s4990_s8 + $0xe60] sm:$0xff]  ;;  %v811_v22 = vld [vmem:[%s4990_s8 + $0xf70] sm:$0xff] }
  0xfb   : > { %1142 = vmatmul.mubr.f32.vlgmr.msra.gmra.mrb[0].mxu0 %v257_v47  ;;  %v3941_v46 = vpack.c.bf16 %v748_v37, %v744_v36  ;;  %v775_v36 = vld [vmem:[%s4990_s8 + $0xe50] sm:$0xff]  ;;  %v3703_v43 = vpack.c.bf16 %v777_v35, %v773_v34  ;;  %v822_v35 = vld [vmem:[%s4990_s8 + $0xfc8] sm:$0xff] }
  0xfc   : > { %3668 = vmatpush1.bf16.msra.mxu0 %v3667_v48  ;;  %1594 = vmatmul.mubr.f32.vlgmr.msra.gmra.mrb[0].mxu1 %v257_v47  ;;  %v747_v47 = vld [vmem:[%s4990_s8 + $0xd70] sm:$0xff]  ;;  %v750_v48 = vld [vmem:[%s4990_s8 + $0xd88] sm:$0xff] }
  0xfd   : > { %3924 = vmatpush1.bf16.msra.mxu1 %v3923_v49  ;;  %3670 = vmatprep.subr.bf16.mxu0 %v3669_v50  ;;  %v754_v49 = vld [vmem:[%s4990_s8 + $0xda8] sm:$0xff]  ;;  %v752_v50 = vld [vmem:[%s4990_s8 + $0xd98] sm:$0xff]  ;;  %v3943_v55 = vpack.c.bf16 %v747_v47, %v743_v45  ;;  %v785_v47 = vld [vmem:[%s4990_s8 + $0xea0] sm:$0xff] }
  0xfe   : > { %3926 = vmatprep.subr.bf16.mxu1 %v3925_v54  ;;  %1147 = vmatprep.mubr.f32.mxu0 %v266_v60  ;;  %v297_v54 = vld [vmem:[%s6191_s0 + $0x160] sm:$0xff]  ;;  %v3689_v56 = vpack.c.bf16 %v754_v49, %v750_v48  ;;  %v783_v48 = vld [vmem:[%s4990_s8 + $0xe90] sm:$0xff] }
  0xff   : > { %1599 = vmatprep.mubr.f32.mxu1 %v266_v60  ;;  %1148 = vmatmul.mubr.f32.gmra.mrb[2].mxu0 %v265_v62  ;;  %v3945_v60 = vpack.c.bf16 %v756_v51, %v752_v50  ;;  %v787_v50 = vld [vmem:[%s4990_s8 + $0xeb0] sm:$0xff]  ;;  %v790_v51 = vld [vmem:[%s4990_s8 + $0xec8] sm:$0xff] }
 0x100   : > { %3672 = vmatpush1.bf16.msra.mxu0 %v3671_v61  ;;  %1600 = vmatmul.mubr.f32.gmra.mrb[2].mxu1 %v265_v62  ;;  %v755_v61 = vld [vmem:[%s4990_s8 + $0xdb0] sm:$0xff]  ;;  %v758_v62 = vld [vmem:[%s4990_s8 + $0xdc8] sm:$0xff] }
 0x101   : > { %3928 = vmatpush1.bf16.msra.mxu1 %v3927_v63  ;;  %3674 = vmatprep.subr.bf16.mxu0 %v3673_v0  ;;  %v762_v63 = vld [vmem:[%s4990_s8 + $0xde8] sm:$0xff]  ;;  %v760_v0 = vld [vmem:[%s4990_s8 + $0xdd8] sm:$0xff]  ;;  %v3947_v5 = vpack.c.bf16 %v755_v61, %v751_v59  ;;  %v793_v59 = vld [vmem:[%s4990_s8 + $0xee0] sm:$0xff] }
 0x102   : > { %3930 = vmatprep.subr.bf16.mxu1 %v3929_v4  ;;  %1153 = vmatprep.mubr.f32.mxu0 %v274_v10  ;;  %v305_v4 = vld [vmem:[%s6191_s0 + $0x1a0] sm:$0xff]  ;;  %v3693_v6 = vpack.c.bf16 %v762_v63, %v758_v62  ;;  %v795_v62 = vld [vmem:[%s4990_s8 + $0xef0] sm:$0xff]  ;;  %v798_v63 = vld [vmem:[%s4990_s8 + $0xf08] sm:$0xff] }
 0x103   : > { %1605 = vmatprep.mubr.f32.mxu1 %v274_v10  ;;  %1154 = vmatmul.mubr.f32.gmra.mrb[4].mxu0 %v273_v12  ;;  %v3949_v10 = vpack.c.bf16 %v764_v1, %v760_v0  ;;  %v802_v0 = vld [vmem:[%s4990_s8 + $0xf28] sm:$0xff]  ;;  %v800_v1 = vld [vmem:[%s4990_s8 + $0xf18] sm:$0xff]  ;;  %v819_v34 = vld [vmem:[%s4990_s8 + $0xfb0] sm:$0xff] }
 0x104   : > { %3676 = vmatpush1.bf16.msra.mxu0 %v3675_v11  ;;  %1606 = vmatmul.mubr.f32.gmra.mrb[4].mxu1 %v273_v12  ;;  %v763_v11 = vld [vmem:[%s4990_s8 + $0xdf0] sm:$0xff]  ;;  %v766_v12 = vld [vmem:[%s4990_s8 + $0xe08] sm:$0xff] }
 0x105   : > { %3932 = vmatpush1.bf16.msra.mxu1 %v3931_v13  ;;  %3678 = vmatprep.subr.bf16.mxu0 %v3677_v14  ;;  %v770_v13 = vld [vmem:[%s4990_s8 + $0xe28] sm:$0xff]  ;;  %v768_v14 = vld [vmem:[%s4990_s8 + $0xe18] sm:$0xff]  ;;  %v3951_v19 = vpack.c.bf16 %v763_v11, %v759_v9 }
 0x106   : > { %3934 = vmatprep.subr.bf16.mxu1 %v3933_v18  ;;  %1159 = vmatprep.mubr.f32.mxu0 %v282_v24  ;;  %v313_v18 = vld [vmem:[%s6191_s0 + $0x1e0] sm:$0xff]  ;;  %v3697_v20 = vpack.c.bf16 %v770_v13, %v766_v12  ;;  %v806_v11 = vld [vmem:[%s4990_s8 + $0xf48] sm:$0xff]  ;;  %v808_v13 = vld [vmem:[%s4990_s8 + $0xf58] sm:$0xff] }
 0x107   : > { %1611 = vmatprep.mubr.f32.mxu1 %v282_v24  ;;  %1160 = vmatmul.mubr.f32.gmra.mrb[6].mxu0 %v281_v26  ;;  %v3953_v24 = vpack.c.bf16 %v772_v15, %v768_v14  ;;  %v810_v12 = vld [vmem:[%s4990_s8 + $0xf68] sm:$0xff]  ;;  %v812_v14 = vld [vmem:[%s4990_s8 + $0xf78] sm:$0xff] }
 0x108   : > { %3680 = vmatpush1.bf16.msra.mxu0 %v3679_v25  ;;  %1612 = vmatmul.mubr.f32.gmra.mrb[6].mxu1 %v281_v26  ;;  %v771_v25 = vld [vmem:[%s4990_s8 + $0xe30] sm:$0xff]  ;;  %v774_v26 = vld [vmem:[%s4990_s8 + $0xe48] sm:$0xff]  ;;  %v3973_v21 = vpack.c.bf16 %v812_v14, %v808_v13  ;;  %v1818_v13 = vld [vmem:[%s4976_s9 + $0xb8] sm:$0xff] }
 0x109   : > { %3936 = vmatpush1.bf16.msra.mxu1 %v3935_v27  ;;  %3682 = vmatprep.subr.bf16.mxu0 %v3681_v28  ;;  %v778_v27 = vld [vmem:[%s4990_s8 + $0xe68] sm:$0xff]  ;;  %v776_v28 = vld [vmem:[%s4990_s8 + $0xe58] sm:$0xff] }
 0x10a   : > { %3938 = vmatprep.subr.bf16.mxu1 %v3937_v32  ;;  %1165 = vmatprep.mubr.f32.mxu0 %v290_v38  ;;  %v3955_v32 = vpack.c.bf16 %v771_v25, %v767_v23  ;;  %v3701_v33 = vpack.c.bf16 %v778_v27, %v774_v26  ;;  %v3957_v37 = vpack.c.bf16 %v780_v29, %v776_v28  ;;  %v814_v23 = vld [vmem:[%s4990_s8 + $0xf88] sm:$0xff]  ;;  %v816_v25 = vld [vmem:[%s4990_s8 + $0xf98] sm:$0xff] }
 0x10b   : > { %1617 = vmatprep.mubr.f32.mxu1 %v290_v38  ;;  %1166 = vmatmul.mubr.f32.gmra.mrb[8].mxu0 %v289_v40  ;;  %v779_v38 = vld [vmem:[%s4990_s8 + $0xe70] sm:$0xff]  ;;  %v820_v26 = vld [vmem:[%s4990_s8 + $0xfb8] sm:$0xff] }
 0x10c   : > { %3684 = vmatpush1.bf16.msra.mxu0 %v3683_v39  ;;  %1618 = vmatmul.mubr.f32.gmra.mrb[8].mxu1 %v289_v40  ;;  %v782_v39 = vld [vmem:[%s4990_s8 + $0xe88] sm:$0xff]  ;;  %v3959_v44 = vpack.c.bf16 %v779_v38, %v775_v36  ;;  %v828_v38 = vld [vmem:[%s4990_s8 + $0xff8] sm:$0xff] }
 0x10d   : > { %3940 = vmatpush1.bf16.msra.mxu1 %v3939_v41  ;;  %3686 = vmatprep.subr.bf16.mxu0 %v3685_v42  ;;  %v786_v40 = vld [vmem:[%s4990_s8 + $0xea8] sm:$0xff]  ;;  %v784_v41 = vld [vmem:[%s4990_s8 + $0xe98] sm:$0xff] }
 0x10e   : > { %3942 = vmatprep.subr.bf16.mxu1 %v3941_v46  ;;  %1171 = vmatprep.mubr.f32.mxu0 %v298_v52  ;;  %v788_v42 = vld [vmem:[%s4990_s8 + $0xeb8] sm:$0xff]  ;;  %v3705_v45 = vpack.c.bf16 %v786_v40, %v782_v39  ;;  %v781_v46 = vld [vmem:[%s4990_s8 + $0xe80] sm:$0xff]  ;;  %v826_v36 = vld [vmem:[%s4990_s8 + $0xfe8] sm:$0xff] }
 0x10f   : > { %1623 = vmatprep.mubr.f32.mxu1 %v298_v52  ;;  %1172 = vmatmul.mubr.f32.gmra.mrb[10].mxu0 %v297_v54  ;;  %v3961_v49 = vpack.c.bf16 %v788_v42, %v784_v41  ;;  %v794_v52 = vld [vmem:[%s4990_s8 + $0xee8] sm:$0xff]  ;;  %v3725_v41 = vpack.c.bf16 %v826_v36, %v822_v35  ;;  %v821_v42 = vld [vmem:[%s4990_s8 + $0xfc0] sm:$0xff]  ;;  %v276_v14 = vld [vmem:[%s6191_s0 + $0xb8] sm:$0xff] }
 0x110   : > { %3688 = vmatpush1.bf16.msra.mxu0 %v3687_v53  ;;  %1624 = vmatmul.mubr.f32.gmra.mrb[10].mxu1 %v297_v54  ;;  %v792_v53 = vld [vmem:[%s4990_s8 + $0xed8] sm:$0xff]  ;;  %v3709_v57 = vpack.c.bf16 %v794_v52, %v790_v51  ;;  %v1825_v36 = vld [vmem:[%s4976_s9 + $0xf0] sm:$0xff] }
 0x111   : > { %3944 = vmatpush1.bf16.msra.mxu1 %v3943_v55  ;;  %3690 = vmatprep.subr.bf16.mxu0 %v3689_v56  ;;  %v796_v54 = vld [vmem:[%s4990_s8 + $0xef8] sm:$0xff]  ;;  %v3707_v55 = vpack.c.bf16 %v785_v47, %v781_v46  ;;  %v3963_v56 = vpack.c.bf16 %v787_v50, %v783_v48  ;;  %v827_v46 = vld [vmem:[%s4990_s8 + $0xff0] sm:$0xff]  ;;  %v1796_v47 = vld [vmem:[%s4976_s9 + $0x8] sm:$0xff] }
 0x112   : > { %3946 = vmatprep.subr.bf16.mxu1 %v3945_v60  ;;  %1177 = vmatprep.mubr.f32.mxu0 %v306_v2  ;;  %v791_v60 = vld [vmem:[%s4990_s8 + $0xed0] sm:$0xff]  ;;  %v3965_v61 = vpack.c.bf16 %v796_v54, %v792_v53  ;;  %v1800_v48 = vld [vmem:[%s4976_s9 + $0x28] sm:$0xff]  ;;  %v1802_v50 = vld [vmem:[%s4976_s9 + $0x38] sm:$0xff] }
 0x113   : > { %1629 = vmatprep.mubr.f32.mxu1 %v306_v2  ;;  %1178 = vmatmul.mubr.f32.gmra.mrb[12].mxu0 %v305_v4  ;;  %v804_v2 = vld [vmem:[%s4990_s8 + $0xf38] sm:$0xff]  ;;  %v5655_v53 = vpack.c.bf16 %v1800_v48, %v1796_v47  ;;  %v1795_v54 = vld [vmem:[%s4976_s9] sm:$0xff]  ;;  %v1829_v48 = vld [vmem:[%s4976_s9 + $0x110] sm:$0xff] }
 0x114   : > { %3692 = vmatpush1.bf16.msra.mxu0 %v3691_v3  ;;  %1630 = vmatmul.mubr.f32.gmra.mrb[12].mxu1 %v305_v4  ;;  %v3711_v3 = vpack.c.bf16 %v793_v59, %v789_v58  ;;  %v3967_v4 = vpack.c.bf16 %v795_v62, %v791_v60  ;;  %v3969_v9 = vpack.c.bf16 %v804_v2, %v800_v1  ;;  %v1801_v58 = vld [vmem:[%s4976_s9 + $0x30] sm:$0xff]  ;;  %v1804_v59 = vld [vmem:[%s4976_s9 + $0x48] sm:$0xff]  ;;  %v1806_v62 = vld [vmem:[%s4976_s9 + $0x58] sm:$0xff] }
 0x115   : > { %3948 = vmatpush1.bf16.msra.mxu1 %v3947_v5  ;;  %3694 = vmatprep.subr.bf16.mxu0 %v3693_v6  ;;  %v3713_v5 = vpack.c.bf16 %v802_v0, %v798_v63  ;;  %v797_v6 = vld [vmem:[%s4990_s8 + $0xf00] sm:$0xff]  ;;  %v1808_v60 = vld [vmem:[%s4976_s9 + $0x68] sm:$0xff]  ;;  %v1810_v63 = vld [vmem:[%s4976_s9 + $0x78] sm:$0xff] }
 0x116   : > { %3950 = vmatprep.subr.bf16.mxu1 %v3949_v10  ;;  %1183 = vmatprep.mubr.f32.mxu0 %v314_v16  ;;  %v803_v10 = vld [vmem:[%s4990_s8 + $0xf30] sm:$0xff]  ;;  %v3715_v15 = vpack.c.bf16 %v801_v7, %v797_v6  ;;  %v268_v0 = vld [vmem:[%s6191_s0 + $0x78] sm:$0xff]  ;;  %v5684_v7 = vpack.c.bf16 %v1810_v63, %v1806_v62  ;;  %v1831_v47 = vld [vmem:[%s4976_s9 + $0x120] sm:$0xff] }
 0x117   : > { %1635 = vmatprep.mubr.f32.mxu1 %v314_v16  ;;  %1184 = vmatmul.mubr.f32.gmra.mrb[14].mxu0 %v313_v18  ;;  %v3971_v16 = vpack.c.bf16 %v803_v10, %v799_v8  ;;  %v1805_v6 = vld [vmem:[%s4976_s9 + $0x50] sm:$0xff]  ;;  %v1816_v10 = vld [vmem:[%s4976_s9 + $0xa8] sm:$0xff]  ;;  %v1835_v62 = vld [vmem:[%s4976_s9 + $0x140] sm:$0xff] }
 0x118   : > { %3696 = vmatpush1.bf16.msra.mxu0 %v3695_v17  ;;  %1636 = vmatmul.mubr.f32.gmra.mrb[14].mxu1 %v313_v18  ;;  %v3717_v17 = vpack.c.bf16 %v810_v12, %v806_v11  ;;  %v805_v18 = vld [vmem:[%s4990_s8 + $0xf40] sm:$0xff]  ;;  %v1809_v8 = vld [vmem:[%s4976_s9 + $0x70] sm:$0xff]  ;;  %v1814_v12 = vld [vmem:[%s4976_s9 + $0x98] sm:$0xff] }
 0x119   : > { %3952 = vmatpush1.bf16.msra.mxu1 %v3951_v19  ;;  %3698 = vmatprep.subr.bf16.mxu0 %v3697_v20  ;;  %v809_v19 = vld [vmem:[%s4990_s8 + $0xf60] sm:$0xff]  ;;  %v807_v20 = vld [vmem:[%s4990_s8 + $0xf50] sm:$0xff] }
 0x11a   : > { %3954 = vmatprep.subr.bf16.mxu1 %v3953_v24  ;;  %1254 = vmatprep.mubr.f32.mxu0 %v260_v30  ;;  %v818_v24 = vld [vmem:[%s4990_s8 + $0xfa8] sm:$0xff]  ;;  %v3719_v27 = vpack.c.bf16 %v809_v19, %v805_v18  ;;  %v3975_v28 = vpack.c.bf16 %v811_v22, %v807_v20  ;;  %v267_v11 = vld [vmem:[%s6191_s0 + $0x70] sm:$0xff]  ;;  %v1811_v18 = vld [vmem:[%s4976_s9 + $0x80] sm:$0xff] }
 0x11b   : > { %1706 = vmatprep.mubr.f32.mxu1 %v260_v30  ;;  %v3721_v29 = vpack.c.bf16 %v818_v24, %v814_v23  ;;  %v813_v30 = vld [vmem:[%s4990_s8 + $0xf80] sm:$0xff]  ;;  %v1813_v20 = vld [vmem:[%s4976_s9 + $0x90] sm:$0xff]  ;;  %v1820_v23 = vld [vmem:[%s4976_s9 + $0xc8] sm:$0xff] }
 0x11c   : > { %3700 = vmatpush1.bf16.msra.mxu0 %v3699_v31  ;;  %v817_v31 = vld [vmem:[%s4990_s8 + $0xfa0] sm:$0xff]  ;;  %v1817_v22 = vld [vmem:[%s4976_s9 + $0xb0] sm:$0xff]  ;;  %v1824_v24 = vld [vmem:[%s4976_s9 + $0xe8] sm:$0xff] }
 0x11d   : > { %3956 = vmatpush1.bf16.msra.mxu1 %v3955_v32  ;;  %3702 = vmatprep.subr.bf16.mxu0 %v3701_v33  ;;  %v815_v32 = vld [vmem:[%s4990_s8 + $0xf90] sm:$0xff]  ;;  %v3977_v33 = vpack.c.bf16 %v820_v26, %v816_v25  ;;  %v3723_v39 = vpack.c.bf16 %v817_v31, %v813_v30  ;;  %v1815_v19 = vld [vmem:[%s4976_s9 + $0xa0] sm:$0xff]  ;;  %v1822_v26 = vld [vmem:[%s4976_s9 + $0xd8] sm:$0xff]  ;;  %v5728_v30 = vpack.c.bf16 %v1817_v22, %v1813_v20 }
 0x11e   : > { %3958 = vmatprep.subr.bf16.mxu1 %v3957_v37  ;;  %v824_v37 = vld [vmem:[%s4990_s8 + $0xfd8] sm:$0xff]  ;;  %v3979_v40 = vpack.c.bf16 %v819_v34, %v815_v32  ;;  %v275_v25 = vld [vmem:[%s6191_s0 + $0xb0] sm:$0xff]  ;;  %v5730_v31 = vpack.c.bf16 %v1824_v24, %v1820_v23  ;;  %v1819_v32 = vld [vmem:[%s4976_s9 + $0xc0] sm:$0xff] }
 0x11f   : > { %v1821_v34 = vld [vmem:[%s4976_s9 + $0xd0] sm:$0xff]  ;;  %v1839_v63 = vld [vmem:[%s4976_s9 + $0x160] sm:$0xff] }
 0x120   : > { %3704 = vmatpush1.bf16.msra.mxu0 %v3703_v43  ;;  %v825_v43 = vld [vmem:[%s4990_s8 + $0xfe0] sm:$0xff]  ;;  %v1845_v22 = vld [vmem:[%s4976_s9 + $0x190] sm:$0xff] }
 0x121   : > { %3960 = vmatpush1.bf16.msra.mxu1 %v3959_v44  ;;  %3706 = vmatprep.subr.bf16.mxu0 %v3705_v45  ;;  %v823_v44 = vld [vmem:[%s4990_s8 + $0xfd0] sm:$0xff]  ;;  %v3981_v45 = vpack.c.bf16 %v828_v38, %v824_v37  ;;  %v3727_v51 = vpack.c.bf16 %v825_v43, %v821_v42  ;;  %v1828_v37 = vld [vmem:[%s4976_s9 + $0x108] sm:$0xff]  ;;  %v292_v42 = vld [vmem:[%s6191_s0 + $0x138] sm:$0xff]  ;;  %s3338_s8 = scalar_lea.vmem [#allocation2], %s3422_s21 }
 0x122   : > { %3962 = vmatprep.subr.bf16.mxu1 %v3961_v49  ;;  %v1798_v49 = vld [vmem:[%s4976_s9 + $0x18] sm:$0xff]  ;;  %v3983_v52 = vpack.c.bf16 %v827_v46, %v823_v44  ;;  %v1832_v38 = vld [vmem:[%s4976_s9 + $0x128] sm:$0xff]  ;;  %v5754_v44 = vpack.c.bf16 %v1825_v36, %v1821_v34  ;;  %v1827_v46 = vld [vmem:[%s4976_s9 + $0x100] sm:$0xff] }
 0x123   : > { %v1847_v20 = vld [vmem:[%s4976_s9 + $0x1a0] sm:$0xff]  ;;  %v1849_v24 = vld [vmem:[%s4976_s9 + $0x1b0] sm:$0xff] }
 0x124   : > { %3708 = vmatpush1.bf16.msra.mxu0 %v3707_v55  ;;  %v1799_v55 = vld [vmem:[%s4976_s9 + $0x20] sm:$0xff]  ;;  %v5832_v36 = vpack.c.bf16 %v1849_v24, %v1845_v22 }
 0x125   : > { %3964 = vmatpush1.bf16.msra.mxu1 %v3963_v56  ;;  %3710 = vmatprep.subr.bf16.mxu0 %v3709_v57  ;;  %v5659_v56 = vpack.c.bf16 %v1802_v50, %v1798_v49  ;;  %v1797_v57 = vld [vmem:[%s4976_s9 + $0x10] sm:$0xff]  ;;  %v5674_v1 = vpack.c.bf16 %v1799_v55, %v1795_v54  ;;  %v1838_v55 = vld [vmem:[%s4976_s9 + $0x158] sm:$0xff] }
 0x126   : > { %3966 = vmatprep.subr.bf16.mxu1 %v3965_v61  ;;  %v259_v61 = vld [vmem:[%s6191_s0 + $0x30] sm:$0xff]  ;;  %v5677_v2 = vpack.c.bf16 %v1801_v58, %v1797_v57  ;;  %v1842_v57 = vld [vmem:[%s4976_s9 + $0x178] sm:$0xff] }
 0x127   : > { %v1833_v50 = vld [vmem:[%s4976_s9 + $0x130] sm:$0xff]  ;;  %v300_v58 = vld [vmem:[%s6191_s0 + $0x178] sm:$0xff] }
 0x128   : > { %3712 = vmatpush1.bf16.msra.mxu0 %v3711_v3  ;;  %v5679_v3 = vpack.c.bf16 %v1808_v60, %v1804_v59  ;;  %v291_v54 = vld [vmem:[%s6191_s0 + $0x130] sm:$0xff]  ;;  %v5776_v59 = vpack.c.bf16 %v1831_v47, %v1827_v46  ;;  %v5780_v60 = vpack.c.bf16 %v1833_v50, %v1829_v48  ;;  %v4864_v50 = vmov 0.0  }
 0x129   : > { %3968 = vmatpush1.bf16.msra.mxu1 %v3967_v4  ;;  %3714 = vmatprep.subr.bf16.mxu0 %v3713_v5  ;;  %v1803_v4 = vld [vmem:[%s4976_s9 + $0x40] sm:$0xff]  ;;  %v315_v46 = vld [vmem:[%s6191_s0 + $0x1f0] sm:$0xff] }
 0x12a   : > { %3970 = vmatprep.subr.bf16.mxu1 %v3969_v9  ;;  %v1807_v5 = vld [vmem:[%s4976_s9 + $0x60] sm:$0xff]  ;;  %v1812_v9 = vld [vmem:[%s4976_s9 + $0x88] sm:$0xff] }
 0x12c   : > { %3716 = vmatpush1.bf16.msra.mxu0 %v3715_v15  ;;  %v5698_v15 = vpack.c.bf16 %v1807_v5, %v1803_v4  ;;  %v5788_v4 = vpack.c.bf16 %v1842_v57, %v1838_v55  ;;  %v1841_v5 = vld [vmem:[%s4976_s9 + $0x170] sm:$0xff] }
 0x12d   : > { %3972 = vmatpush1.bf16.msra.mxu1 %v3971_v16  ;;  %3718 = vmatprep.subr.bf16.mxu0 %v3717_v17  ;;  %v5702_v16 = vpack.c.bf16 %v1809_v8, %v1805_v6  ;;  %v5704_v17 = vpack.c.bf16 %v1816_v10, %v1812_v9  ;;  %v1844_v6 = vld [vmem:[%s4976_s9 + $0x188] sm:$0xff]  ;;  %v299_v9 = vld [vmem:[%s6191_s0 + $0x170] sm:$0xff]  ;;  %v1846_v10 = vld [vmem:[%s4976_s9 + $0x198] sm:$0xff] }
 0x12e   : > { %3974 = vmatprep.subr.bf16.mxu1 %v3973_v21  ;;  %v5710_v21 = vpack.c.bf16 %v1818_v13, %v1814_v12  ;;  %v1848_v8 = vld [vmem:[%s4976_s9 + $0x1a8] sm:$0xff]  ;;  %v308_v12 = vld [vmem:[%s6191_s0 + $0x1b8] sm:$0xff]  ;;  %v5802_v13 = vpack.c.bf16 %v1839_v63, %v1835_v62 }
 0x130   : > { %3720 = vmatpush1.bf16.msra.mxu0 %v3719_v27  ;;  %v1826_v27 = vld [vmem:[%s4976_s9 + $0xf8] sm:$0xff] }
 0x131   : > { %3976 = vmatpush1.bf16.msra.mxu1 %v3975_v28  ;;  %3722 = vmatprep.subr.bf16.mxu0 %v3721_v29  ;;  %v284_v28 = vld [vmem:[%s6191_s0 + $0xf8] sm:$0xff]  ;;  %v5724_v29 = vpack.c.bf16 %v1815_v19, %v1811_v18  ;;  %v5736_v35 = vpack.c.bf16 %v1826_v27, %v1822_v26  ;;  %v5808_v18 = vpack.c.bf16 %v1848_v8, %v1844_v6  ;;  %v1843_v19 = vld [vmem:[%s4976_s9 + $0x180] sm:$0xff]  ;;  %v1856_v26 = vld [vmem:[%s4976_s9 + $0x1e8] sm:$0xff] }
 0x132   : > { %3978 = vmatprep.subr.bf16.mxu1 %v3977_v33  ;;  %v1823_v33 = vld [vmem:[%s4976_s9 + $0xe0] sm:$0xff]  ;;  %v307_v27 = vld [vmem:[%s6191_s0 + $0x1b0] sm:$0xff]  ;;  %v5828_v34 = vpack.c.bf16 %v1847_v20, %v1843_v19 }
 0x133   : > { %v5750_v43 = vpack.c.bf16 %v1823_v33, %v1819_v32  ;;  %v1858_v32 = vld [vmem:[%s4976_s9 + $0x1f8] sm:$0xff] }
 0x134   : > { %3724 = vmatpush1.bf16.msra.mxu0 %v3723_v39  ;;  %v283_v39 = vld [vmem:[%s6191_s0 + $0xf0] sm:$0xff]  ;;  %v316_v33 = vld [vmem:[%s6191_s0 + $0x1f8] sm:$0xff] }
 0x135   : > { %3980 = vmatpush1.bf16.msra.mxu1 %v3979_v40  ;;  %3726 = vmatprep.subr.bf16.mxu0 %v3725_v41  ;;  %v1830_v40 = vld [vmem:[%s4976_s9 + $0x118] sm:$0xff] }
 0x136   : > { %3982 = vmatprep.subr.bf16.mxu1 %v3981_v45  ;;  %v1834_v41 = vld [vmem:[%s4976_s9 + $0x138] sm:$0xff]  ;;  %v5756_v45 = vpack.c.bf16 %v1832_v38, %v1828_v37  ;;  %v1851_v38 = vld [vmem:[%s4976_s9 + $0x1c0] sm:$0xff] }
 0x137   : > { %v5762_v49 = vpack.c.bf16 %v1834_v41, %v1830_v40  ;;  %v1853_v41 = vld [vmem:[%s4976_s9 + $0x1d0] sm:$0xff] }
 0x138   : > { %3728 = vmatpush1.bf16.msra.mxu0 %v3727_v51  ;;  %v1836_v51 = vld [vmem:[%s4976_s9 + $0x148] sm:$0xff] }
 0x139   : > { %3984 = vmatpush1.bf16.msra.mxu1 %v3983_v52  ;;  %3986 = vmatprep.subr.bf16.mxu0 %v5655_v53  ;;  %v1840_v52 = vld [vmem:[%s4976_s9 + $0x168] sm:$0xff] }
 0x13a   : > { %4018 = vmatprep.subr.bf16.mxu1 %v5659_v56 }
 0x13b   : > { %1255 = vmatmul.mubr.f32.vlgmr.msra.gmra.mrb[0].mxu0 %v259_v61 }
 0x13c   : > { %1707 = vmatmul.mubr.f32.vlgmr.msra.gmra.mrb[0].mxu1 %v259_v61  ;;  %1260 = vmatprep.mubr.f32.mxu0 %v268_v0  ;;  %v5782_v61 = vpack.c.bf16 %v1840_v52, %v1836_v51  ;;  %v831_v51 = vlaneseq }
 0x13d   : > { %1712 = vmatprep.mubr.f32.mxu1 %v268_v0  ;;  %3988 = vmatpush1.bf16.msra.mxu0 %v5674_v1  ;;  %v1837_v0 = vld [vmem:[%s4976_s9 + $0x150] sm:$0xff] }
 0x13e   : > { %4020 = vmatpush1.bf16.msra.mxu1 %v5677_v2  ;;  %3990 = vmatprep.subr.bf16.mxu0 %v5679_v3  ;;  %v832_v52 = vshrl.u32 %v831_v51, 7 }
 0x13f   : > { %1261 = vmatmul.mubr.f32.gmra.mrb[2].mxu0 %v267_v11  ;;  %4022 = vmatprep.subr.bf16.mxu1 %v5684_v7 }
 0x140   : > { %1713 = vmatmul.mubr.f32.gmra.mrb[2].mxu1 %v267_v11  ;;  %1266 = vmatprep.mubr.f32.mxu0 %v276_v14  ;;  %v1850_v11 = vld [vmem:[%s4976_s9 + $0x1b8] sm:$0xff]  ;;  %v841_v57 = vsub.s32 2, %v832_v52  ;;  %v845_v62 = vsub.s32 3, %v832_v52 }
 0x141   : > { %1718 = vmatprep.mubr.f32.mxu1 %v276_v14  ;;  %3992 = vmatpush1.bf16.msra.mxu0 %v5698_v15  ;;  %v5806_v14 = vpack.c.bf16 %v1841_v5, %v1837_v0  ;;  %v5814_v23 = vpack.c.bf16 %v1850_v11, %v1846_v10 }
 0x142   : > { %4024 = vmatpush1.bf16.msra.mxu1 %v5702_v16  ;;  %3994 = vmatprep.subr.bf16.mxu0 %v5704_v17 }
 0x143   : > { %1267 = vmatmul.mubr.f32.gmra.mrb[4].mxu0 %v275_v25  ;;  %4026 = vmatprep.subr.bf16.mxu1 %v5710_v21 }
 0x144   : > { %1719 = vmatmul.mubr.f32.gmra.mrb[4].mxu1 %v275_v25  ;;  %1272 = vmatprep.mubr.f32.mxu0 %v284_v28  ;;  %v1852_v25 = vld [vmem:[%s4976_s9 + $0x1c8] sm:$0xff] }
 0x145   : > { %1724 = vmatprep.mubr.f32.mxu1 %v284_v28  ;;  %3996 = vmatpush1.bf16.msra.mxu0 %v5724_v29  ;;  %v1854_v28 = vld [vmem:[%s4976_s9 + $0x1d8] sm:$0xff]  ;;  %v5834_v37 = vpack.c.bf16 %v1856_v26, %v1852_v25 }
 0x146   : > { %4028 = vmatpush1.bf16.msra.mxu1 %v5728_v30  ;;  %3998 = vmatprep.subr.bf16.mxu0 %v5730_v31  ;;  %v5839_v40 = vpack.c.bf16 %v1858_v32, %v1854_v28 }
 0x147   : > { %1273 = vmatmul.mubr.f32.gmra.mrb[6].mxu0 %v283_v39  ;;  %4030 = vmatprep.subr.bf16.mxu1 %v5736_v35 }
 0x148   : > { %1725 = vmatmul.mubr.f32.gmra.mrb[6].mxu1 %v283_v39  ;;  %1278 = vmatprep.mubr.f32.mxu0 %v292_v42  ;;  %v1855_v39 = vld [vmem:[%s4976_s9 + $0x1e0] sm:$0xff] }
 0x149   : > { %1730 = vmatprep.mubr.f32.mxu1 %v292_v42  ;;  %4000 = vmatpush1.bf16.msra.mxu0 %v5750_v43  ;;  %v1857_v42 = vld [vmem:[%s4976_s9 + $0x1f0] sm:$0xff]  ;;  %v5847_v47 = vpack.c.bf16 %v1855_v39, %v1851_v38  ;;  %s3407_s9 = sshll.u32 %s4984_s30, 2 }
 0x14a   : > { %4032 = vmatpush1.bf16.msra.mxu1 %v5754_v44  ;;  %4002 = vmatprep.subr.bf16.mxu0 %v5756_v45  ;;  %v5851_v48 = vpack.c.bf16 %v1857_v42, %v1853_v41  ;;  %s248_s11 = scalar_lea.vmem %s6194_s3, %s3407_s9  ;;  %s3355_s9 = scalar_lea.vmem [#allocation2], %s3459_s7 }
 0x14b   : > { %1279 = vmatmul.mubr.f32.gmra.mrb[8].mxu0 %v291_v54  ;;  %4034 = vmatprep.subr.bf16.mxu1 %v5762_v49  ;;  %v829_v55 = vld [vmem:[%s248_s11] sm:$0xf]  ;;  %s252_s11 = scalar_lea.vmem %s6195_s4, %s3408_s19 }
 0x14c   : > { %1731 = vmatmul.mubr.f32.gmra.mrb[8].mxu1 %v291_v54  ;;  %1284 = vmatprep.mubr.f32.mxu0 %v300_v58  ;;  %v833_v54 = vsub.s32 0, %v832_v52  ;;  %v5902_v0 = vrot.slane %v829_v55, %v841_v57  ;;  %v5906_v6 = vrot.slane %v829_v55, %v845_v62 }
 0x14d   : > { %1736 = vmatprep.mubr.f32.mxu1 %v300_v58  ;;  %4004 = vmatpush1.bf16.msra.mxu0 %v5776_v59  ;;  %v837_v58 = vsub.s32 1, %v832_v52 }
 0x14e   : > { %4036 = vmatpush1.bf16.msra.mxu1 %v5780_v60  ;;  %4006 = vmatprep.subr.bf16.mxu0 %v5782_v61  ;;  %v5900_v63 = vrot.slane %v829_v55, %v833_v54 }
 0x14f   : > { %1285 = vmatmul.mubr.f32.gmra.mrb[10].mxu0 %v299_v9  ;;  %4038 = vmatprep.subr.bf16.mxu1 %v5788_v4  ;;  %v5904_v5 = vrot.slane %v829_v55, %v837_v58 }
 0x150   : > { %1737 = vmatmul.mubr.f32.gmra.mrb[10].mxu1 %v299_v9  ;;  %1290 = vmatprep.mubr.f32.mxu0 %v308_v12 }
 0x151   : > { %1742 = vmatprep.mubr.f32.mxu1 %v308_v12  ;;  %4008 = vmatpush1.bf16.msra.mxu0 %v5802_v13 }
 0x152   : > { %4040 = vmatpush1.bf16.msra.mxu1 %v5806_v14  ;;  %4010 = vmatprep.subr.bf16.mxu0 %v5808_v18 }
 0x153   : > { %1291 = vmatmul.mubr.f32.gmra.mrb[12].mxu0 %v307_v27  ;;  %4042 = vmatprep.subr.bf16.mxu1 %v5814_v23 }
 0x154   : > { %1743 = vmatmul.mubr.f32.gmra.mrb[12].mxu1 %v307_v27  ;;  %1296 = vmatprep.mubr.f32.mxu0 %v316_v33 }
 0x155   : > { %1748 = vmatprep.mubr.f32.mxu1 %v316_v33  ;;  %4012 = vmatpush1.bf16.msra.mxu0 %v5828_v34 }
 0x156   : > { %4044 = vmatpush1.bf16.msra.mxu1 %v5832_v36  ;;  %4014 = vmatprep.subr.bf16.mxu0 %v5834_v37 }
 0x157   : > { %1297 = vmatmul.mubr.f32.gmra.mrb[14].mxu0 %v315_v46  ;;  %4046 = vmatprep.subr.bf16.mxu1 %v5839_v40 }
 0x158   : > { %1749 = vmatmul.mubr.f32.gmra.mrb[14].mxu1 %v315_v46  ;;  %1923 = vmatprep.mubr.f32.mxu0 %v4864_v50 }
 0x159   : > { %4016 = vmatpush1.bf16.msra.mxu0 %v5847_v47  ;;  %1994 = vmatprep.mubr.f32.mxu1 %v4864_v50 }
 0x15a   : > { %4048 = vmatpush1.bf16.msra.mxu1 %v5851_v48  ;;  %4050 = vmatprep.subr.bf16.mxu0 %v5655_v53 }
 0x15b   : > { %4082 = vmatprep.subr.bf16.mxu1 %v5659_v56 }
 0x15c   : > { %1924 = vmatmul.mubr.f32.vlgmr.msra.gmra.mrb[16].mxu0 %v4864_v50 }
 0x15d   : > { %1995 = vmatmul.mubr.f32.vlgmr.msra.gmra.mrb[16].mxu1 %v4864_v50  ;;  %4052 = vmatpush1.bf16.msra.mxu0 %v5674_v1 }
 0x15e   : > { %4084 = vmatpush1.bf16.msra.mxu1 %v5677_v2  ;;  %4054 = vmatprep.subr.bf16.mxu0 %v5679_v3 }
 0x15f   : > { %4086 = vmatprep.subr.bf16.mxu1 %v5684_v7  ;;  %2102 = vmatprep.mubr.f32.mxu0 %v4864_v50 }
 0x160   : > { %2173 = vmatprep.mubr.f32.mxu1 %v4864_v50 }
 0x161   : > { %4056 = vmatpush1.bf16.msra.mxu0 %v5698_v15 }
 0x162   : > { %4088 = vmatpush1.bf16.msra.mxu1 %v5702_v16  ;;  %4058 = vmatprep.subr.bf16.mxu0 %v5704_v17 }
 0x163   : > { %4090 = vmatprep.subr.bf16.mxu1 %v5710_v21 }
 0x165   : > { %4060 = vmatpush1.bf16.msra.mxu0 %v5724_v29 }
 0x166   : > { %4092 = vmatpush1.bf16.msra.mxu1 %v5728_v30  ;;  %4062 = vmatprep.subr.bf16.mxu0 %v5730_v31 }
 0x167   : > { %4094 = vmatprep.subr.bf16.mxu1 %v5736_v35 }
 0x169   : > { %4064 = vmatpush1.bf16.msra.mxu0 %v5750_v43 }
 0x16a   : > { %4096 = vmatpush1.bf16.msra.mxu1 %v5754_v44  ;;  %4066 = vmatprep.subr.bf16.mxu0 %v5756_v45 }
 0x16b   : > { %4098 = vmatprep.subr.bf16.mxu1 %v5762_v49 }
 0x16d   : > { %4068 = vmatpush1.bf16.msra.mxu0 %v5776_v59 }
 0x16e   : > { %4100 = vmatpush1.bf16.msra.mxu1 %v5780_v60  ;;  %4070 = vmatprep.subr.bf16.mxu0 %v5782_v61 }
 0x16f   : > { %4102 = vmatprep.subr.bf16.mxu1 %v5788_v4 }
 0x171   : > { %4072 = vmatpush1.bf16.msra.mxu0 %v5802_v13 }
 0x172   : > { %4104 = vmatpush1.bf16.msra.mxu1 %v5806_v14  ;;  %4074 = vmatprep.subr.bf16.mxu0 %v5808_v18 }
 0x173   : > { %4106 = vmatprep.subr.bf16.mxu1 %v5814_v23 }
 0x175   : > { %4076 = vmatpush1.bf16.msra.mxu0 %v5828_v34 }
 0x176   : > { %4108 = vmatpush1.bf16.msra.mxu1 %v5832_v36  ;;  %4078 = vmatprep.subr.bf16.mxu0 %v5834_v37 }
 0x177   : > { %4110 = vmatprep.subr.bf16.mxu1 %v5839_v40 }
 0x179   : > { %4080 = vmatpush1.bf16.msra.mxu0 %v5847_v47 }
 0x17a   : > { %4112 = vmatpush1.bf16.msra.mxu1 %v5851_v48  ;;  %4114 = vmatprep.subr.bf16.mxu0 %v5655_v53 }
 0x17b   : > { %4146 = vmatprep.subr.bf16.mxu1 %v5659_v56 }
 0x20e   : > { %v1256_v8 = vpop.f32.mrb[0].mxu0 }
 0x20f   : > { %v4497_v9 = vadd.f32 %v1256_v8, %v5900_v63  ;;  %v1708_v10 = vpop.f32.mrb[0].mxu1  ;;  %v1258_v11 = vpop.f32.mrb[1].mxu0 }
 0x210   : > { %v4513_v12 = vadd.f32 %v1708_v10, %v5902_v0  ;;  %v4498_v19 = vadd.f32 %v1258_v11, %v5904_v5  ;;  %v1710_v20 = vpop.f32.mrb[1].mxu1 }
 0x211   : > { %1755 = vst [vmem:[#allocation2] sm:$0xff] %v4497_v9  ;;  %v4514_v22 = vadd.f32 %v1710_v20, %v5906_v6 }
 0x212   : > { %1757 = vst [vmem:[#allocation2 + $0x10] sm:$0xff] %v4513_v12  ;;  %1756 = vst [vmem:[#allocation2 + $0x8] sm:$0xff] %v4498_v19  ;;  %v1262_v24 = vpop.f32.mrb[2].mxu0 }
 0x213   : > { %1758 = vst [vmem:[#allocation2 + $0x18] sm:$0xff] %v4514_v22  ;;  %v4499_v25 = vadd.f32 %v1262_v24, %v5900_v63  ;;  %v1714_v26 = vpop.f32.mrb[2].mxu1  ;;  %v1264_v27 = vpop.f32.mrb[3].mxu0 }
 0x214   : > { %v4515_v28 = vadd.f32 %v1714_v26, %v5902_v0  ;;  %v4500_v32 = vadd.f32 %v1264_v27, %v5904_v5  ;;  %v1716_v33 = vpop.f32.mrb[3].mxu1 }
 0x215   : > { %1759 = vst [vmem:[#allocation2 + $0x20] sm:$0xff] %v4499_v25  ;;  %v4516_v38 = vadd.f32 %v1716_v33, %v5906_v6 }
 0x216   : > { %1761 = vst [vmem:[#allocation2 + $0x30] sm:$0xff] %v4515_v28  ;;  %1760 = vst [vmem:[#allocation2 + $0x28] sm:$0xff] %v4500_v32  ;;  %v1268_v39 = vpop.f32.mrb[4].mxu0 }
 0x217   : > { %1762 = vst [vmem:[#allocation2 + $0x38] sm:$0xff] %v4516_v38  ;;  %v4501_v41 = vadd.f32 %v1268_v39, %v5900_v63  ;;  %v1720_v42 = vpop.f32.mrb[4].mxu1  ;;  %v1270_v46 = vpop.f32.mrb[5].mxu0 }
 0x218   : > { %v4517_v51 = vadd.f32 %v1720_v42, %v5902_v0  ;;  %v4502_v52 = vadd.f32 %v1270_v46, %v5904_v5  ;;  %v1722_v54 = vpop.f32.mrb[5].mxu1 }
 0x219   : > { %1763 = vst [vmem:[#allocation2 + $0x40] sm:$0xff] %v4501_v41  ;;  %v4518_v55 = vadd.f32 %v1722_v54, %v5906_v6 }
 0x21a   : > { %1765 = vst [vmem:[#allocation2 + $0x50] sm:$0xff] %v4517_v51  ;;  %1764 = vst [vmem:[#allocation2 + $0x48] sm:$0xff] %v4502_v52  ;;  %v1274_v57 = vpop.f32.mrb[6].mxu0 }
 0x21b   : > { %1766 = vst [vmem:[#allocation2 + $0x58] sm:$0xff] %v4518_v55  ;;  %v4503_v58 = vadd.f32 %v1274_v57, %v5900_v63  ;;  %v1726_v62 = vpop.f32.mrb[6].mxu1  ;;  %v1276_v8 = vpop.f32.mrb[7].mxu0 }
 0x21c   : > { %v4519_v9 = vadd.f32 %v1726_v62, %v5902_v0  ;;  %v4504_v10 = vadd.f32 %v1276_v8, %v5904_v5  ;;  %v1728_v11 = vpop.f32.mrb[7].mxu1 }
 0x21d   : > { %1767 = vst [vmem:[#allocation2 + $0x60] sm:$0xff] %v4503_v58  ;;  %v4520_v12 = vadd.f32 %v1728_v11, %v5906_v6 }
 0x21e   : > { %1769 = vst [vmem:[#allocation2 + $0x70] sm:$0xff] %v4519_v9  ;;  %1768 = vst [vmem:[#allocation2 + $0x68] sm:$0xff] %v4504_v10  ;;  %v1280_v19 = vpop.f32.mrb[8].mxu0 }
 0x21f   : > { %1770 = vst [vmem:[#allocation2 + $0x78] sm:$0xff] %v4520_v12  ;;  %v4505_v20 = vadd.f32 %v1280_v19, %v5900_v63  ;;  %v1732_v22 = vpop.f32.mrb[8].mxu1  ;;  %v1282_v24 = vpop.f32.mrb[9].mxu0 }
 0x220   : > { %v4521_v25 = vadd.f32 %v1732_v22, %v5902_v0  ;;  %v4506_v26 = vadd.f32 %v1282_v24, %v5904_v5  ;;  %v1734_v27 = vpop.f32.mrb[9].mxu1 }
 0x221   : > { %1771 = vst [vmem:[#allocation2 + $0x80] sm:$0xff] %v4505_v20  ;;  %v4522_v28 = vadd.f32 %v1734_v27, %v5906_v6 }
 0x222   : > { %1773 = vst [vmem:[#allocation2 + $0x90] sm:$0xff] %v4521_v25  ;;  %1772 = vst [vmem:[#allocation2 + $0x88] sm:$0xff] %v4506_v26  ;;  %v1286_v32 = vpop.f32.mrb[10].mxu0 }
 0x223   : > { %1774 = vst [vmem:[#allocation2 + $0x98] sm:$0xff] %v4522_v28  ;;  %v4507_v33 = vadd.f32 %v1286_v32, %v5900_v63  ;;  %v1738_v38 = vpop.f32.mrb[10].mxu1  ;;  %v1288_v39 = vpop.f32.mrb[11].mxu0 }
 0x224   : > { %v4523_v41 = vadd.f32 %v1738_v38, %v5902_v0  ;;  %v4508_v42 = vadd.f32 %v1288_v39, %v5904_v5  ;;  %v1740_v46 = vpop.f32.mrb[11].mxu1 }
 0x225   : > { %1775 = vst [vmem:[#allocation2 + $0xa0] sm:$0xff] %v4507_v33  ;;  %v4524_v51 = vadd.f32 %v1740_v46, %v5906_v6 }
 0x226   : > { %1777 = vst [vmem:[#allocation2 + $0xb0] sm:$0xff] %v4523_v41  ;;  %1776 = vst [vmem:[#allocation2 + $0xa8] sm:$0xff] %v4508_v42  ;;  %v1292_v52 = vpop.f32.mrb[12].mxu0 }
 0x227   : > { %1778 = vst [vmem:[#allocation2 + $0xb8] sm:$0xff] %v4524_v51  ;;  %v4509_v54 = vadd.f32 %v1292_v52, %v5900_v63  ;;  %v1744_v55 = vpop.f32.mrb[12].mxu1  ;;  %v1294_v57 = vpop.f32.mrb[13].mxu0 }
 0x228   : > { %v4525_v58 = vadd.f32 %v1744_v55, %v5902_v0  ;;  %v4510_v62 = vadd.f32 %v1294_v57, %v5904_v5  ;;  %v1746_v8 = vpop.f32.mrb[13].mxu1 }
 0x229   : > { %1779 = vst [vmem:[#allocation2 + $0xc0] sm:$0xff] %v4509_v54  ;;  %v4526_v9 = vadd.f32 %v1746_v8, %v5906_v6 }
 0x22a   : > { %1781 = vst [vmem:[#allocation2 + $0xd0] sm:$0xff] %v4525_v58  ;;  %1780 = vst [vmem:[#allocation2 + $0xc8] sm:$0xff] %v4510_v62  ;;  %v1298_v10 = vpop.f32.mrb[14].mxu0 }
 0x22b   : > { %1782 = vst [vmem:[#allocation2 + $0xd8] sm:$0xff] %v4526_v9  ;;  %v4511_v11 = vadd.f32 %v1298_v10, %v5900_v63  ;;  %v1750_v12 = vpop.f32.mrb[14].mxu1  ;;  %v1300_v19 = vpop.f32.mrb[15].mxu0 }
 0x22c   : > { %v4527_v20 = vadd.f32 %v1750_v12, %v5902_v0  ;;  %v4512_v22 = vadd.f32 %v1300_v19, %v5904_v5  ;;  %v1752_v24 = vpop.f32.mrb[15].mxu1 }
 0x22d   : > { %1783 = vst [vmem:[#allocation2 + $0xe0] sm:$0xff] %v4511_v11  ;;  %v4528_v25 = vadd.f32 %v1752_v24, %v5906_v6 }
 0x22e   : > { %1785 = vst [vmem:[#allocation2 + $0xf0] sm:$0xff] %v4527_v20  ;;  %1784 = vst [vmem:[#allocation2 + $0xe8] sm:$0xff] %v4512_v22 }
 0x22f   : > { %1786 = vst [vmem:[#allocation2 + $0xf8] sm:$0xff] %v4528_v25  ;;  %v1925_v26 = vpop.f32.mrb[16].mxu0 }
 0x230   : > { %v1927_v27 = vpop.f32.mrb[17].mxu0  ;;  %v1996_v28 = vpop.f32.mrb[16].mxu1 }
 0x231   : > { %v1998_v32 = vpop.f32.mrb[17].mxu1 }
 0x236   : > { %v1791_v63 = vld [vmem:[%s1790_s13] sm:$0xff]  ;;  %v1792_v33 = vld [vmem:[%s1790_s13 + $0x8] sm:$0xff]  ;;  %v1794_v5 = vld [vmem:[%s1790_s13 + $0x18] sm:$0xff] }
 0x237   : > { %v2001_v38 = vadd.f32 %v1925_v26, %v1791_v63  ;;  %v2002_v39 = vadd.f32 %v1927_v27, %v1792_v33  ;;  %v2004_v42 = vadd.f32 %v1998_v32, %v1794_v5  ;;  %v1793_v6 = vld [vmem:[%s1790_s13 + $0x10] sm:$0xff]  ;;  %v3415_v25 = vld [vmem:[%s3334_s15 + $0x20] sm:$0xff]  ;;  %v3416_v32 = vld [vmem:[%s3334_s15 + $0x28] sm:$0xff] }
 0x238   : > { %v2003_v51 = vadd.f32 %v1996_v28, %v1793_v6 }
 0x239   : > { %v3411_v0 = vmul.f32 -1.442695, %v2001_v38  ;;  %v3412_v41 = vmul.f32 -1.442695, %v2002_v39  ;;  %v3413_v46 = vmul.f32 -1.442695, %v2004_v42 }
 0x23a   : > { %v3417_v42 = vld [vmem:[%s3334_s15 + $0x30] sm:$0xff] }
 0x23b   : > { %4667 = vpow2.f32 %v3411_v0 }
 0x23c   : > { %4669 = vpow2.f32 %v3412_v41  ;;  %v3418_v41 = vld [vmem:[%s3334_s15 + $0x38] sm:$0xff] }
 0x23d   : > { %4671 = vpow2.f32 %v3413_v46 }
 0x23e   : > { %4673 = vtanh.f32 %v2003_v51 }
 0x245   : > { %v4668_v52 = vpop.eup %4667 }
 0x246   : > { %v4670_v54 = vpop.eup %4669  ;;  %v2008_v55 = vadd.f32 1.0, %v4668_v52 }
 0x247   : > { %v2014_v57 = vadd.f32 1.0, %v4670_v54  ;;  %v4672_v58 = vpop.eup %4671 }
 0x248   : > { %4675 = vrcp.f32 %v2008_v55  ;;  %v4674_v62 = vpop.eup %4673  ;;  %v2021_v11 = vadd.f32 1.0, %v4672_v58 }
 0x249   : > { %4677 = vrcp.f32 %v2014_v57 }
 0x24a   : > { %4679 = vrcp.f32 %v2021_v11 }
 0x252   : > { %v4676_v8 = vpop.eup %4675 }
 0x253   : > { %v4678_v9 = vpop.eup %4677  ;;  %v2025_v10 = vmul.f32 %v4676_v8, %v4674_v62 }
 0x254   : > { %v2024_v12 = vmul.f32 0.0, %v4678_v9  ;;  %v4680_v20 = vpop.eup %4679 }
 0x256   : > { %v5941_v19 = vadd.f32 %v2025_v10, %v2024_v12 }
 0x258   : > { %4681 = vtanh.f32 %v5941_v19 }
 0x262   : > { %v4682_v22 = vpop.eup %4681 }
 0x263   : > { %v2028_v24 = vmul.f32 %v4682_v22, %v4680_v20 }
 0x265   : > { %2103 = vmatmul.mubr.f32.vlgmr.msra.gmra.mrb[18].mxu0 %v2028_v24  ;;  %2174 = vmatmul.mubr.f32.vlgmr.msra.gmra.mrb[18].mxu1 %v2028_v24 }
 0x266   : > { %4116 = vmatpush1.bf16.msra.mxu0 %v5674_v1  ;;  %4148 = vmatpush1.bf16.msra.mxu1 %v5677_v2 }
 0x267   : > { %4118 = vmatprep.subr.bf16.mxu0 %v5679_v3  ;;  %4150 = vmatprep.subr.bf16.mxu1 %v5684_v7 }
 0x268   : > { %2281 = vmatprep.mubr.f32.mxu0 %v4864_v50  ;;  %2352 = vmatprep.mubr.f32.mxu1 %v4864_v50 }
 0x26a   : > { %4120 = vmatpush1.bf16.msra.mxu0 %v5698_v15  ;;  %4152 = vmatpush1.bf16.msra.mxu1 %v5702_v16 }
 0x26b   : > { %4122 = vmatprep.subr.bf16.mxu0 %v5704_v17  ;;  %4154 = vmatprep.subr.bf16.mxu1 %v5710_v21 }
 0x26e   : > { %4124 = vmatpush1.bf16.msra.mxu0 %v5724_v29  ;;  %4156 = vmatpush1.bf16.msra.mxu1 %v5728_v30 }
 0x26f   : > { %4126 = vmatprep.subr.bf16.mxu0 %v5730_v31  ;;  %4158 = vmatprep.subr.bf16.mxu1 %v5736_v35 }
 0x272   : > { %4128 = vmatpush1.bf16.msra.mxu0 %v5750_v43  ;;  %4160 = vmatpush1.bf16.msra.mxu1 %v5754_v44 }
 0x273   : > { %4130 = vmatprep.subr.bf16.mxu0 %v5756_v45  ;;  %4162 = vmatprep.subr.bf16.mxu1 %v5762_v49 }
 0x276   : > { %4132 = vmatpush1.bf16.msra.mxu0 %v5776_v59  ;;  %4164 = vmatpush1.bf16.msra.mxu1 %v5780_v60 }
 0x277   : > { %4134 = vmatprep.subr.bf16.mxu0 %v5782_v61  ;;  %4166 = vmatprep.subr.bf16.mxu1 %v5788_v4 }
 0x27a   : > { %4136 = vmatpush1.bf16.msra.mxu0 %v5802_v13  ;;  %4168 = vmatpush1.bf16.msra.mxu1 %v5806_v14 }
 0x27b   : > { %4138 = vmatprep.subr.bf16.mxu0 %v5808_v18  ;;  %4170 = vmatprep.subr.bf16.mxu1 %v5814_v23 }
 0x27e   : > { %4140 = vmatpush1.bf16.msra.mxu0 %v5828_v34  ;;  %4172 = vmatpush1.bf16.msra.mxu1 %v5832_v36 }
 0x27f   : > { %4142 = vmatprep.subr.bf16.mxu0 %v5834_v37  ;;  %4174 = vmatprep.subr.bf16.mxu1 %v5839_v40 }
 0x282   : > { %4144 = vmatpush1.bf16.msra.mxu0 %v5847_v47  ;;  %4176 = vmatpush1.bf16.msra.mxu1 %v5851_v48 }
 0x283   : > { %4178 = vmatprep.subr.bf16.mxu0 %v5655_v53  ;;  %4210 = vmatprep.subr.bf16.mxu1 %v5659_v56 }
 0x338   : > { %v2104_v26 = vpop.f32.mrb[18].mxu0  ;;  %v2175_v27 = vpop.f32.mrb[18].mxu1 }
 0x339   : > { %v2180_v28 = vadd.f32 %v3415_v25, %v2104_v26  ;;  %v2106_v63 = vpop.f32.mrb[19].mxu0  ;;  %v2177_v33 = vpop.f32.mrb[19].mxu1  ;;  %v2182_v46 = vadd.f32 %v3417_v42, %v2175_v27 }
 0x33a   : > { %v2181_v38 = vadd.f32 %v3416_v32, %v2106_v63  ;;  %v2183_v5 = vadd.f32 %v3418_v41, %v2177_v33 }
 0x33b   : > { %v3419_v39 = vmul.f32 -1.442695, %v2180_v28  ;;  %v3424_v28 = vld [vmem:[%s3338_s8 + $0x48] sm:$0xff] }
 0x33c   : > { %v3420_v0 = vmul.f32 -1.442695, %v2181_v38  ;;  %v3421_v6 = vmul.f32 -1.442695, %v2183_v5  ;;  %v3425_v5 = vld [vmem:[%s3338_s8 + $0x50] sm:$0xff] }
 0x33d   : > { %4683 = vpow2.f32 %v3419_v39 }
 0x33e   : > { %4685 = vpow2.f32 %v3420_v0  ;;  %v3426_v0 = vld [vmem:[%s3338_s8 + $0x58] sm:$0xff] }
 0x33f   : > { %4687 = vpow2.f32 %v3421_v6 }
 0x340   : > { %4689 = vtanh.f32 %v2182_v46 }
 0x347   : > { %v4684_v51 = vpop.eup %4683 }
 0x348   : > { %v4686_v52 = vpop.eup %4685  ;;  %v2187_v54 = vadd.f32 1.0, %v4684_v51 }
 0x349   : > { %v2193_v55 = vadd.f32 1.0, %v4686_v52  ;;  %v4688_v57 = vpop.eup %4687 }
 0x34a   : > { %4691 = vrcp.f32 %v2187_v54  ;;  %v4690_v58 = vpop.eup %4689  ;;  %v2200_v10 = vadd.f32 1.0, %v4688_v57 }
 0x34b   : > { %4693 = vrcp.f32 %v2193_v55 }
 0x34c   : > { %4695 = vrcp.f32 %v2200_v10 }
 0x354   : > { %v4692_v62 = vpop.eup %4691 }
 0x355   : > { %v4694_v8 = vpop.eup %4693  ;;  %v2204_v9 = vmul.f32 %v4692_v62, %v4690_v58 }
 0x356   : > { %v2203_v11 = vmul.f32 %v4694_v8, %v5941_v19  ;;  %v4696_v20 = vpop.eup %4695  ;;  %v3423_v19 = vld [vmem:[%s3338_s8 + $0x40] sm:$0xff] }
 0x358   : > { %v5980_v12 = vadd.f32 %v2204_v9, %v2203_v11 }
 0x35a   : > { %4697 = vtanh.f32 %v5980_v12 }
 0x364   : > { %v4698_v22 = vpop.eup %4697 }
 0x365   : > { %v2207_v24 = vmul.f32 %v4698_v22, %v4696_v20 }
 0x367   : > { %2282 = vmatmul.mubr.f32.vlgmr.msra.gmra.mrb[20].mxu0 %v2207_v24  ;;  %2353 = vmatmul.mubr.f32.vlgmr.msra.gmra.mrb[20].mxu1 %v2207_v24 }
 0x368   : > { %4180 = vmatpush1.bf16.msra.mxu0 %v5674_v1  ;;  %4212 = vmatpush1.bf16.msra.mxu1 %v5677_v2 }
 0x369   : > { %4182 = vmatprep.subr.bf16.mxu0 %v5679_v3  ;;  %4214 = vmatprep.subr.bf16.mxu1 %v5684_v7 }
 0x36a   : > { %2459 = vmatprep.mubr.f32.mxu0 %v4864_v50  ;;  %2530 = vmatprep.mubr.f32.mxu1 %v4864_v50 }
 0x36c   : > { %4184 = vmatpush1.bf16.msra.mxu0 %v5698_v15  ;;  %4216 = vmatpush1.bf16.msra.mxu1 %v5702_v16 }
 0x36d   : > { %4186 = vmatprep.subr.bf16.mxu0 %v5704_v17  ;;  %4218 = vmatprep.subr.bf16.mxu1 %v5710_v21 }
 0x370   : > { %4188 = vmatpush1.bf16.msra.mxu0 %v5724_v29  ;;  %4220 = vmatpush1.bf16.msra.mxu1 %v5728_v30 }
 0x371   : > { %4190 = vmatprep.subr.bf16.mxu0 %v5730_v31  ;;  %4222 = vmatprep.subr.bf16.mxu1 %v5736_v35 }
 0x374   : > { %4192 = vmatpush1.bf16.msra.mxu0 %v5750_v43  ;;  %4224 = vmatpush1.bf16.msra.mxu1 %v5754_v44 }
 0x375   : > { %4194 = vmatprep.subr.bf16.mxu0 %v5756_v45  ;;  %4226 = vmatprep.subr.bf16.mxu1 %v5762_v49 }
 0x378   : > { %4196 = vmatpush1.bf16.msra.mxu0 %v5776_v59  ;;  %4228 = vmatpush1.bf16.msra.mxu1 %v5780_v60 }
 0x379   : > { %4198 = vmatprep.subr.bf16.mxu0 %v5782_v61  ;;  %4230 = vmatprep.subr.bf16.mxu1 %v5788_v4 }
 0x37c   : > { %4200 = vmatpush1.bf16.msra.mxu0 %v5802_v13  ;;  %4232 = vmatpush1.bf16.msra.mxu1 %v5806_v14 }
 0x37d   : > { %4202 = vmatprep.subr.bf16.mxu0 %v5808_v18  ;;  %4234 = vmatprep.subr.bf16.mxu1 %v5814_v23 }
 0x380   : > { %4204 = vmatpush1.bf16.msra.mxu0 %v5828_v34  ;;  %4236 = vmatpush1.bf16.msra.mxu1 %v5832_v36 }
 0x381   : > { %4206 = vmatprep.subr.bf16.mxu0 %v5834_v37  ;;  %4238 = vmatprep.subr.bf16.mxu1 %v5839_v40 }
 0x384   : > { %4208 = vmatpush1.bf16.msra.mxu0 %v5847_v47  ;;  %4240 = vmatpush1.bf16.msra.mxu1 %v5851_v48 }
 0x385   : > { %4242 = vmatprep.subr.bf16.mxu0 %v5655_v53  ;;  %4274 = vmatprep.subr.bf16.mxu1 %v5659_v56 }
 0x43a   : > { %v2283_v25 = vpop.f32.mrb[20].mxu0  ;;  %v2354_v26 = vpop.f32.mrb[20].mxu1 }
 0x43b   : > { %v2359_v27 = vadd.f32 %v3423_v19, %v2283_v25  ;;  %v2285_v32 = vpop.f32.mrb[21].mxu0  ;;  %v2356_v63 = vpop.f32.mrb[21].mxu1  ;;  %v2361_v6 = vadd.f32 %v3425_v5, %v2354_v26 }
 0x43c   : > { %v2360_v33 = vadd.f32 %v3424_v28, %v2285_v32  ;;  %v2362_v41 = vadd.f32 %v3426_v0, %v2356_v63 }
 0x43d   : > { %v3427_v38 = vmul.f32 -1.442695, %v2359_v27  ;;  %v3432_v27 = vld [vmem:[%s3341_s25 + $0x68] sm:$0xff] }
 0x43e   : > { %v3428_v39 = vmul.f32 -1.442695, %v2360_v33  ;;  %v3429_v42 = vmul.f32 -1.442695, %v2362_v41  ;;  %v3433_v41 = vld [vmem:[%s3341_s25 + $0x70] sm:$0xff] }
 0x43f   : > { %4699 = vpow2.f32 %v3427_v38 }
 0x440   : > { %4701 = vpow2.f32 %v3428_v39  ;;  %v3434_v39 = vld [vmem:[%s3341_s25 + $0x78] sm:$0xff] }
 0x441   : > { %4703 = vpow2.f32 %v3429_v42 }
 0x442   : > { %4705 = vtanh.f32 %v2361_v6 }
 0x449   : > { %v4700_v46 = vpop.eup %4699 }
 0x44a   : > { %v4702_v51 = vpop.eup %4701  ;;  %v2366_v52 = vadd.f32 1.0, %v4700_v46 }
 0x44b   : > { %v2372_v54 = vadd.f32 1.0, %v4702_v51  ;;  %v4704_v55 = vpop.eup %4703 }
 0x44c   : > { %4707 = vrcp.f32 %v2366_v52  ;;  %v4706_v57 = vpop.eup %4705  ;;  %v2379_v9 = vadd.f32 1.0, %v4704_v55 }
 0x44d   : > { %4709 = vrcp.f32 %v2372_v54 }
 0x44e   : > { %4711 = vrcp.f32 %v2379_v9 }
 0x456   : > { %v4708_v58 = vpop.eup %4707 }
 0x457   : > { %v4710_v62 = vpop.eup %4709  ;;  %v2383_v8 = vmul.f32 %v4708_v58, %v4706_v57 }
 0x458   : > { %v2382_v10 = vmul.f32 %v4710_v62, %v5980_v12  ;;  %v4712_v20 = vpop.eup %4711  ;;  %v3431_v12 = vld [vmem:[%s3341_s25 + $0x60] sm:$0xff] }
 0x45a   : > { %v6019_v11 = vadd.f32 %v2383_v8, %v2382_v10 }
 0x45c   : > { %4713 = vtanh.f32 %v6019_v11 }
 0x466   : > { %v4714_v22 = vpop.eup %4713 }
 0x467   : > { %v2386_v24 = vmul.f32 %v4714_v22, %v4712_v20 }
 0x469   : > { %2460 = vmatmul.mubr.f32.vlgmr.msra.gmra.mrb[22].mxu0 %v2386_v24  ;;  %2531 = vmatmul.mubr.f32.vlgmr.msra.gmra.mrb[22].mxu1 %v2386_v24 }
 0x46a   : > { %4244 = vmatpush1.bf16.msra.mxu0 %v5674_v1  ;;  %4276 = vmatpush1.bf16.msra.mxu1 %v5677_v2 }
 0x46b   : > { %4246 = vmatprep.subr.bf16.mxu0 %v5679_v3  ;;  %4278 = vmatprep.subr.bf16.mxu1 %v5684_v7 }
 0x46c   : > { %2637 = vmatprep.mubr.f32.mxu0 %v4864_v50  ;;  %2708 = vmatprep.mubr.f32.mxu1 %v4864_v50 }
 0x46e   : > { %4248 = vmatpush1.bf16.msra.mxu0 %v5698_v15  ;;  %4280 = vmatpush1.bf16.msra.mxu1 %v5702_v16 }
 0x46f   : > { %4250 = vmatprep.subr.bf16.mxu0 %v5704_v17  ;;  %4282 = vmatprep.subr.bf16.mxu1 %v5710_v21 }
 0x472   : > { %4252 = vmatpush1.bf16.msra.mxu0 %v5724_v29  ;;  %4284 = vmatpush1.bf16.msra.mxu1 %v5728_v30 }
 0x473   : > { %4254 = vmatprep.subr.bf16.mxu0 %v5730_v31  ;;  %4286 = vmatprep.subr.bf16.mxu1 %v5736_v35 }
 0x476   : > { %4256 = vmatpush1.bf16.msra.mxu0 %v5750_v43  ;;  %4288 = vmatpush1.bf16.msra.mxu1 %v5754_v44 }
 0x477   : > { %4258 = vmatprep.subr.bf16.mxu0 %v5756_v45  ;;  %4290 = vmatprep.subr.bf16.mxu1 %v5762_v49 }
 0x47a   : > { %4260 = vmatpush1.bf16.msra.mxu0 %v5776_v59  ;;  %4292 = vmatpush1.bf16.msra.mxu1 %v5780_v60 }
 0x47b   : > { %4262 = vmatprep.subr.bf16.mxu0 %v5782_v61  ;;  %4294 = vmatprep.subr.bf16.mxu1 %v5788_v4 }
 0x47e   : > { %4264 = vmatpush1.bf16.msra.mxu0 %v5802_v13  ;;  %4296 = vmatpush1.bf16.msra.mxu1 %v5806_v14 }
 0x47f   : > { %4266 = vmatprep.subr.bf16.mxu0 %v5808_v18  ;;  %4298 = vmatprep.subr.bf16.mxu1 %v5814_v23 }
 0x482   : > { %4268 = vmatpush1.bf16.msra.mxu0 %v5828_v34  ;;  %4300 = vmatpush1.bf16.msra.mxu1 %v5832_v36 }
 0x483   : > { %4270 = vmatprep.subr.bf16.mxu0 %v5834_v37  ;;  %4302 = vmatprep.subr.bf16.mxu1 %v5839_v40 }
 0x486   : > { %4272 = vmatpush1.bf16.msra.mxu0 %v5847_v47  ;;  %4304 = vmatpush1.bf16.msra.mxu1 %v5851_v48 }
 0x487   : > { %4306 = vmatprep.subr.bf16.mxu0 %v5655_v53  ;;  %4338 = vmatprep.subr.bf16.mxu1 %v5659_v56 }
 0x53c   : > { %v2461_v19 = vpop.f32.mrb[22].mxu0  ;;  %v2532_v25 = vpop.f32.mrb[22].mxu1 }
 0x53d   : > { %v2537_v26 = vadd.f32 %v3431_v12, %v2461_v19  ;;  %v2463_v28 = vpop.f32.mrb[23].mxu0  ;;  %v2534_v32 = vpop.f32.mrb[23].mxu1  ;;  %v2539_v42 = vadd.f32 %v3433_v41, %v2532_v25 }
 0x53e   : > { %v2538_v63 = vadd.f32 %v3432_v27, %v2463_v28  ;;  %v2540_v0 = vadd.f32 %v3434_v39, %v2534_v32 }
 0x53f   : > { %v3435_v33 = vmul.f32 -1.442695, %v2537_v26  ;;  %v2570_v26 = vld [vmem:[%s2568_s28 + $0x8] sm:$0xff] }
 0x540   : > { %v3436_v38 = vmul.f32 -1.442695, %v2538_v63  ;;  %v3437_v5 = vmul.f32 -1.442695, %v2540_v0  ;;  %v2571_v0 = vld [vmem:[%s2568_s28 + $0x10] sm:$0xff] }
 0x541   : > { %4715 = vpow2.f32 %v3435_v33 }
 0x542   : > { %4717 = vpow2.f32 %v3436_v38  ;;  %v2572_v38 = vld [vmem:[%s2568_s28 + $0x18] sm:$0xff] }
 0x543   : > { %4719 = vpow2.f32 %v3437_v5 }
 0x544   : > { %4721 = vtanh.f32 %v2539_v42 }
 0x54b   : > { %v4716_v6 = vpop.eup %4715 }
 0x54c   : > { %v4718_v46 = vpop.eup %4717  ;;  %v2544_v51 = vadd.f32 1.0, %v4716_v6 }
 0x54d   : > { %v2550_v52 = vadd.f32 1.0, %v4718_v46  ;;  %v4720_v54 = vpop.eup %4719 }
 0x54e   : > { %4723 = vrcp.f32 %v2544_v51  ;;  %v4722_v55 = vpop.eup %4721  ;;  %v2557_v8 = vadd.f32 1.0, %v4720_v54 }
 0x54f   : > { %4725 = vrcp.f32 %v2550_v52 }
 0x550   : > { %4727 = vrcp.f32 %v2557_v8 }
 0x558   : > { %v4724_v57 = vpop.eup %4723 }
 0x559   : > { %v4726_v58 = vpop.eup %4725  ;;  %v2561_v62 = vmul.f32 %v4724_v57, %v4722_v55 }
 0x55a   : > { %v2560_v9 = vmul.f32 %v4726_v58, %v6019_v11  ;;  %v4728_v20 = vpop.eup %4727  ;;  %v2569_v11 = vld [vmem:[%s2568_s28] sm:$0xff] }
 0x55c   : > { %v6058_v10 = vadd.f32 %v2561_v62, %v2560_v9 }
 0x55e   : > { %4729 = vtanh.f32 %v6058_v10 }
 0x568   : > { %v4730_v22 = vpop.eup %4729 }
 0x569   : > { %v2564_v24 = vmul.f32 %v4730_v22, %v4728_v20 }
 0x56b   : > { %2638 = vmatmul.mubr.f32.vlgmr.msra.gmra.mrb[24].mxu0 %v2564_v24  ;;  %2709 = vmatmul.mubr.f32.vlgmr.msra.gmra.mrb[24].mxu1 %v2564_v24 }
 0x56c   : > { %4308 = vmatpush1.bf16.msra.mxu0 %v5674_v1  ;;  %4340 = vmatpush1.bf16.msra.mxu1 %v5677_v2 }
 0x56d   : > { %4310 = vmatprep.subr.bf16.mxu0 %v5679_v3  ;;  %4342 = vmatprep.subr.bf16.mxu1 %v5684_v7 }
 0x56e   : > { %2816 = vmatprep.mubr.f32.mxu0 %v4864_v50  ;;  %2887 = vmatprep.mubr.f32.mxu1 %v4864_v50 }
 0x570   : > { %4312 = vmatpush1.bf16.msra.mxu0 %v5698_v15  ;;  %4344 = vmatpush1.bf16.msra.mxu1 %v5702_v16 }
 0x571   : > { %4314 = vmatprep.subr.bf16.mxu0 %v5704_v17  ;;  %4346 = vmatprep.subr.bf16.mxu1 %v5710_v21 }
 0x574   : > { %4316 = vmatpush1.bf16.msra.mxu0 %v5724_v29  ;;  %4348 = vmatpush1.bf16.msra.mxu1 %v5728_v30 }
 0x575   : > { %4318 = vmatprep.subr.bf16.mxu0 %v5730_v31  ;;  %4350 = vmatprep.subr.bf16.mxu1 %v5736_v35 }
 0x578   : > { %4320 = vmatpush1.bf16.msra.mxu0 %v5750_v43  ;;  %4352 = vmatpush1.bf16.msra.mxu1 %v5754_v44 }
 0x579   : > { %4322 = vmatprep.subr.bf16.mxu0 %v5756_v45  ;;  %4354 = vmatprep.subr.bf16.mxu1 %v5762_v49 }
 0x57c   : > { %4324 = vmatpush1.bf16.msra.mxu0 %v5776_v59  ;;  %4356 = vmatpush1.bf16.msra.mxu1 %v5780_v60 }
 0x57d   : > { %4326 = vmatprep.subr.bf16.mxu0 %v5782_v61  ;;  %4358 = vmatprep.subr.bf16.mxu1 %v5788_v4 }
 0x580   : > { %4328 = vmatpush1.bf16.msra.mxu0 %v5802_v13  ;;  %4360 = vmatpush1.bf16.msra.mxu1 %v5806_v14 }
 0x581   : > { %4330 = vmatprep.subr.bf16.mxu0 %v5808_v18  ;;  %4362 = vmatprep.subr.bf16.mxu1 %v5814_v23 }
 0x584   : > { %4332 = vmatpush1.bf16.msra.mxu0 %v5828_v34  ;;  %4364 = vmatpush1.bf16.msra.mxu1 %v5832_v36 }
 0x585   : > { %4334 = vmatprep.subr.bf16.mxu0 %v5834_v37  ;;  %4366 = vmatprep.subr.bf16.mxu1 %v5839_v40 }
 0x588   : > { %4336 = vmatpush1.bf16.msra.mxu0 %v5847_v47  ;;  %4368 = vmatpush1.bf16.msra.mxu1 %v5851_v48 }
 0x589   : > { %4370 = vmatprep.subr.bf16.mxu0 %v5655_v53  ;;  %4402 = vmatprep.subr.bf16.mxu1 %v5659_v56 }
 0x63e   : > { %v2639_v12 = vpop.f32.mrb[24].mxu0  ;;  %v2710_v19 = vpop.f32.mrb[24].mxu1 }
 0x63f   : > { %v2715_v25 = vadd.f32 %v2639_v12, %v2569_v11  ;;  %v2641_v27 = vpop.f32.mrb[25].mxu0  ;;  %v2712_v28 = vpop.f32.mrb[25].mxu1  ;;  %v2717_v5 = vadd.f32 %v2710_v19, %v2571_v0 }
 0x640   : > { %v2716_v32 = vadd.f32 %v2641_v27, %v2570_v26  ;;  %v2718_v39 = vadd.f32 %v2712_v28, %v2572_v38 }
 0x641   : > { %v3440_v63 = vmul.f32 -1.442695, %v2715_v25  ;;  %v3445_v25 = vld [vmem:[%s3347_s5 + $0xa8] sm:$0xff] }
 0x642   : > { %v3441_v33 = vmul.f32 -1.442695, %v2716_v32  ;;  %v3442_v41 = vmul.f32 -1.442695, %v2718_v39  ;;  %v3446_v39 = vld [vmem:[%s3347_s5 + $0xb0] sm:$0xff] }
 0x643   : > { %4731 = vpow2.f32 %v3440_v63 }
 0x644   : > { %4733 = vpow2.f32 %v3441_v33  ;;  %v3447_v33 = vld [vmem:[%s3347_s5 + $0xb8] sm:$0xff] }
 0x645   : > { %4735 = vpow2.f32 %v3442_v41 }
 0x646   : > { %4737 = vtanh.f32 %v2717_v5 }
 0x64d   : > { %v4732_v42 = vpop.eup %4731 }
 0x64e   : > { %v4734_v6 = vpop.eup %4733  ;;  %v2722_v46 = vadd.f32 1.0, %v4732_v42 }
 0x64f   : > { %v2728_v51 = vadd.f32 1.0, %v4734_v6  ;;  %v4736_v52 = vpop.eup %4735 }
 0x650   : > { %4739 = vrcp.f32 %v2722_v46  ;;  %v4738_v54 = vpop.eup %4737  ;;  %v2735_v62 = vadd.f32 1.0, %v4736_v52 }
 0x651   : > { %4741 = vrcp.f32 %v2728_v51 }
 0x652   : > { %4743 = vrcp.f32 %v2735_v62 }
 0x65a   : > { %v4740_v55 = vpop.eup %4739 }
 0x65b   : > { %v4742_v57 = vpop.eup %4741  ;;  %v2739_v58 = vmul.f32 %v4740_v55, %v4738_v54 }
 0x65c   : > { %v2738_v8 = vmul.f32 %v4742_v57, %v6058_v10  ;;  %v4744_v20 = vpop.eup %4743  ;;  %v3444_v10 = vld [vmem:[%s3347_s5 + $0xa0] sm:$0xff] }
 0x65e   : > { %v6097_v9 = vadd.f32 %v2739_v58, %v2738_v8 }
 0x660   : > { %4745 = vtanh.f32 %v6097_v9 }
 0x66a   : > { %v4746_v22 = vpop.eup %4745 }
 0x66b   : > { %v2742_v24 = vmul.f32 %v4746_v22, %v4744_v20 }
 0x66d   : > { %2817 = vmatmul.mubr.f32.vlgmr.msra.gmra.mrb[26].mxu0 %v2742_v24  ;;  %2888 = vmatmul.mubr.f32.vlgmr.msra.gmra.mrb[26].mxu1 %v2742_v24 }
 0x66e   : > { %4372 = vmatpush1.bf16.msra.mxu0 %v5674_v1  ;;  %4404 = vmatpush1.bf16.msra.mxu1 %v5677_v2 }
 0x66f   : > { %4374 = vmatprep.subr.bf16.mxu0 %v5679_v3  ;;  %4406 = vmatprep.subr.bf16.mxu1 %v5684_v7 }
 0x670   : > { %2995 = vmatprep.mubr.f32.mxu0 %v4864_v50  ;;  %3066 = vmatprep.mubr.f32.mxu1 %v4864_v50 }
 0x672   : > { %4376 = vmatpush1.bf16.msra.mxu0 %v5698_v15  ;;  %4408 = vmatpush1.bf16.msra.mxu1 %v5702_v16 }
 0x673   : > { %4378 = vmatprep.subr.bf16.mxu0 %v5704_v17  ;;  %4410 = vmatprep.subr.bf16.mxu1 %v5710_v21 }
 0x676   : > { %4380 = vmatpush1.bf16.msra.mxu0 %v5724_v29  ;;  %4412 = vmatpush1.bf16.msra.mxu1 %v5728_v30 }
 0x677   : > { %4382 = vmatprep.subr.bf16.mxu0 %v5730_v31  ;;  %4414 = vmatprep.subr.bf16.mxu1 %v5736_v35 }
 0x67a   : > { %4384 = vmatpush1.bf16.msra.mxu0 %v5750_v43  ;;  %4416 = vmatpush1.bf16.msra.mxu1 %v5754_v44 }
 0x67b   : > { %4386 = vmatprep.subr.bf16.mxu0 %v5756_v45  ;;  %4418 = vmatprep.subr.bf16.mxu1 %v5762_v49 }
 0x67e   : > { %4388 = vmatpush1.bf16.msra.mxu0 %v5776_v59  ;;  %4420 = vmatpush1.bf16.msra.mxu1 %v5780_v60 }
 0x67f   : > { %4390 = vmatprep.subr.bf16.mxu0 %v5782_v61  ;;  %4422 = vmatprep.subr.bf16.mxu1 %v5788_v4 }
 0x682   : > { %4392 = vmatpush1.bf16.msra.mxu0 %v5802_v13  ;;  %4424 = vmatpush1.bf16.msra.mxu1 %v5806_v14 }
 0x683   : > { %4394 = vmatprep.subr.bf16.mxu0 %v5808_v18  ;;  %4426 = vmatprep.subr.bf16.mxu1 %v5814_v23 }
 0x686   : > { %4396 = vmatpush1.bf16.msra.mxu0 %v5828_v34  ;;  %4428 = vmatpush1.bf16.msra.mxu1 %v5832_v36 }
 0x687   : > { %4398 = vmatprep.subr.bf16.mxu0 %v5834_v37  ;;  %4430 = vmatprep.subr.bf16.mxu1 %v5839_v40 }
 0x68a   : > { %4400 = vmatpush1.bf16.msra.mxu0 %v5847_v47  ;;  %4432 = vmatpush1.bf16.msra.mxu1 %v5851_v48 }
 0x68b   : > { %4434 = vmatprep.subr.bf16.mxu0 %v5655_v53  ;;  %4466 = vmatprep.subr.bf16.mxu1 %v5659_v56 }
 0x740   : > { %v2818_v11 = vpop.f32.mrb[26].mxu0  ;;  %v2889_v12 = vpop.f32.mrb[26].mxu1 }
 0x741   : > { %v2894_v19 = vadd.f32 %v3444_v10, %v2818_v11  ;;  %v2820_v26 = vpop.f32.mrb[27].mxu0  ;;  %v2891_v27 = vpop.f32.mrb[27].mxu1  ;;  %v2896_v0 = vadd.f32 %v3446_v39, %v2889_v12  ;;  %v3461_v10 = vld [vmem:[%s3355_s9 + $0xe8] sm:$0xff] }
 0x742   : > { %v2895_v28 = vadd.f32 %v3445_v25, %v2820_v26  ;;  %v2897_v38 = vadd.f32 %v3447_v33, %v2891_v27  ;;  %v3463_v27 = vld [vmem:[%s3355_s9 + $0xf8] sm:$0xff] }
 0x743   : > { %v3448_v32 = vmul.f32 -1.442695, %v2894_v19 }
 0x744   : > { %v3449_v63 = vmul.f32 -1.442695, %v2895_v28  ;;  %v3450_v53 = vmul.f32 -1.442695, %v2897_v38 }
 0x745   : > { %4747 = vpow2.f32 %v3448_v32  ;;  %v3462_v32 = vld [vmem:[%s3355_s9 + $0xf0] sm:$0xff] }
 0x746   : > { %4749 = vpow2.f32 %v3449_v63 }
 0x747   : > { %4751 = vpow2.f32 %v3450_v53 }
 0x748   : > { %4753 = vtanh.f32 %v2896_v0 }
 0x74f   : > { %v4748_v56 = vpop.eup %4747 }
 0x750   : > { %v4750_v41 = vpop.eup %4749  ;;  %v2901_v5 = vadd.f32 1.0, %v4748_v56 }
 0x751   : > { %v2907_v42 = vadd.f32 1.0, %v4750_v41  ;;  %v4752_v6 = vpop.eup %4751 }
 0x752   : > { %4755 = vrcp.f32 %v2901_v5  ;;  %v4754_v46 = vpop.eup %4753  ;;  %v2914_v55 = vadd.f32 1.0, %v4752_v6 }
 0x753   : > { %4757 = vrcp.f32 %v2907_v42 }
 0x754   : > { %4759 = vrcp.f32 %v2914_v55 }
 0x75c   : > { %v4756_v51 = vpop.eup %4755 }
 0x75d   : > { %v4758_v52 = vpop.eup %4757  ;;  %v2918_v54 = vmul.f32 %v4756_v51, %v4754_v46 }
 0x75e   : > { %v2917_v57 = vmul.f32 %v4758_v52, %v6097_v9  ;;  %v4760_v62 = vpop.eup %4759 }
 0x760   : > { %v6136_v58 = vadd.f32 %v2918_v54, %v2917_v57 }
 0x762   : > { %4761 = vtanh.f32 %v6136_v58 }
 0x76c   : > { %v4762_v8 = vpop.eup %4761 }
 0x76d   : > { %v2921_v20 = vmul.f32 %v4762_v8, %v4760_v62 }
 0x76f   : > { %2996 = vmatmul.mubr.f32.vlgmr.msra.gmra.mrb[28].mxu0 %v2921_v20  ;;  %3067 = vmatmul.mubr.f32.vlgmr.msra.gmra.mrb[28].mxu1 %v2921_v20 }
 0x770   : > { %4436 = vmatpush1.bf16.msra.mxu0 %v5674_v1  ;;  %4468 = vmatpush1.bf16.msra.mxu1 %v5677_v2  ;;  %v3452_v1 = vld [vmem:[%s3351_s6 + $0xc0] sm:$0xff] }
 0x771   : > { %4438 = vmatprep.subr.bf16.mxu0 %v5679_v3  ;;  %4470 = vmatprep.subr.bf16.mxu1 %v5684_v7 }
 0x772   : > { %3174 = vmatprep.mubr.f32.mxu0 %v4864_v50  ;;  %3245 = vmatprep.mubr.f32.mxu1 %v4864_v50  ;;  %v3460_v50 = vld [vmem:[%s3355_s9 + $0xe0] sm:$0xff] }
 0x774   : > { %4440 = vmatpush1.bf16.msra.mxu0 %v5698_v15  ;;  %4472 = vmatpush1.bf16.msra.mxu1 %v5702_v16  ;;  %v3453_v15 = vld [vmem:[%s3351_s6 + $0xc8] sm:$0xff] }
 0x775   : > { %4442 = vmatprep.subr.bf16.mxu0 %v5704_v17  ;;  %4474 = vmatprep.subr.bf16.mxu1 %v5710_v21 }
 0x778   : > { %4444 = vmatpush1.bf16.msra.mxu0 %v5724_v29  ;;  %4476 = vmatpush1.bf16.msra.mxu1 %v5728_v30 }
 0x779   : > { %4446 = vmatprep.subr.bf16.mxu0 %v5730_v31  ;;  %4478 = vmatprep.subr.bf16.mxu1 %v5736_v35  ;;  %v3455_v31 = vld [vmem:[%s3351_s6 + $0xd8] sm:$0xff] }
 0x77c   : > { %4448 = vmatpush1.bf16.msra.mxu0 %v5750_v43  ;;  %4480 = vmatpush1.bf16.msra.mxu1 %v5754_v44  ;;  %v3454_v43 = vld [vmem:[%s3351_s6 + $0xd0] sm:$0xff] }
 0x77d   : > { %4450 = vmatprep.subr.bf16.mxu0 %v5756_v45  ;;  %4482 = vmatprep.subr.bf16.mxu1 %v5762_v49 }
 0x780   : > { %4452 = vmatpush1.bf16.msra.mxu0 %v5776_v59  ;;  %4484 = vmatpush1.bf16.msra.mxu1 %v5780_v60 }
 0x781   : > { %4454 = vmatprep.subr.bf16.mxu0 %v5782_v61  ;;  %4486 = vmatprep.subr.bf16.mxu1 %v5788_v4 }
 0x784   : > { %4456 = vmatpush1.bf16.msra.mxu0 %v5802_v13  ;;  %4488 = vmatpush1.bf16.msra.mxu1 %v5806_v14 }
 0x785   : > { %4458 = vmatprep.subr.bf16.mxu0 %v5808_v18  ;;  %4490 = vmatprep.subr.bf16.mxu1 %v5814_v23 }
 0x788   : > { %4460 = vmatpush1.bf16.msra.mxu0 %v5828_v34  ;;  %4492 = vmatpush1.bf16.msra.mxu1 %v5832_v36 }
 0x789   : > { %4462 = vmatprep.subr.bf16.mxu0 %v5834_v37  ;;  %4494 = vmatprep.subr.bf16.mxu1 %v5839_v40 }
 0x78c   : > { %4464 = vmatpush1.bf16.msra.mxu0 %v5847_v47  ;;  %4496 = vmatpush1.bf16.msra.mxu1 %v5851_v48 }
 0x842   : > { %v2997_v2 = vpop.f32.mrb[28].mxu0  ;;  %v3068_v3 = vpop.f32.mrb[28].mxu1 }
 0x843   : > { %v3073_v7 = vadd.f32 %v3452_v1, %v2997_v2  ;;  %v2999_v16 = vpop.f32.mrb[29].mxu0  ;;  %v3070_v17 = vpop.f32.mrb[29].mxu1  ;;  %v3075_v45 = vadd.f32 %v3454_v43, %v3068_v3 }
 0x844   : > { %v3074_v21 = vadd.f32 %v3453_v15, %v2999_v16  ;;  %v3076_v35 = vadd.f32 %v3455_v31, %v3070_v17 }
 0x845   : > { %v3456_v29 = vmul.f32 -1.442695, %v3073_v7 }
 0x846   : > { %v3457_v30 = vmul.f32 -1.442695, %v3074_v21  ;;  %v3458_v44 = vmul.f32 -1.442695, %v3076_v35 }
 0x847   : > { %4763 = vpow2.f32 %v3456_v29 }
 0x848   : > { %4765 = vpow2.f32 %v3457_v30 }
 0x849   : > { %4767 = vpow2.f32 %v3458_v44 }
 0x84a   : > { %4769 = vtanh.f32 %v3075_v45 }
 0x851   : > { %v4764_v49 = vpop.eup %4763 }
 0x852   : > { %v4766_v59 = vpop.eup %4765  ;;  %v3080_v60 = vadd.f32 1.0, %v4764_v49 }
 0x853   : > { %v3086_v61 = vadd.f32 1.0, %v4766_v59  ;;  %v4768_v4 = vpop.eup %4767 }
 0x854   : > { %4771 = vrcp.f32 %v3080_v60  ;;  %v4770_v13 = vpop.eup %4769  ;;  %v3093_v34 = vadd.f32 1.0, %v4768_v4 }
 0x855   : > { %4773 = vrcp.f32 %v3086_v61 }
 0x856   : > { %4775 = vrcp.f32 %v3093_v34 }
 0x85e   : > { %v4772_v14 = vpop.eup %4771 }
 0x85f   : > { %v4774_v18 = vpop.eup %4773  ;;  %v3097_v23 = vmul.f32 %v4772_v14, %v4770_v13 }
 0x860   : > { %v3096_v36 = vmul.f32 %v4774_v18, %v6136_v58  ;;  %v4776_v40 = vpop.eup %4775 }
 0x862   : > { %v3098_v37 = vadd.f32 %v3097_v23, %v3096_v36 }
 0x864   : > { %4777 = vtanh.f32 %v3098_v37 }
 0x86e   : > { %v4778_v47 = vpop.eup %4777 }
 0x86f   : > { %v3100_v48 = vmul.f32 %v4778_v47, %v4776_v40 }
 0x871   : > { %3175 = vmatmul.mubr.f32.vlgmr.msra.gmra.mrb[30].mxu0 %v3100_v48  ;;  %3246 = vmatmul.mubr.f32.vlgmr.msra.gmra.mrb[30].mxu1 %v3100_v48 }
 0x944   : > { %v3176_v9 = vpop.f32.mrb[30].mxu0  ;;  %v3247_v22 = vpop.f32.mrb[30].mxu1 }
 0x945   : > { %v3252_v24 = vadd.f32 %v3460_v50, %v3176_v9  ;;  %v3178_v11 = vpop.f32.mrb[31].mxu0  ;;  %v3249_v12 = vpop.f32.mrb[31].mxu1  ;;  %v3254_v33 = vadd.f32 %v3462_v32, %v3247_v22 }
 0x946   : > { %v3253_v19 = vadd.f32 %v3461_v10, %v3178_v11  ;;  %v3255_v28 = vadd.f32 %v3463_v27, %v3249_v12 }
 0x947   : > { %v3464_v25 = vmul.f32 -1.442695, %v3252_v24 }
 0x948   : > { %v3465_v26 = vmul.f32 -1.442695, %v3253_v19  ;;  %v3466_v63 = vmul.f32 -1.442695, %v3255_v28 }
 0x949   : > { %4779 = vpow2.f32 %v3464_v25 }
 0x94a   : > { %4781 = vpow2.f32 %v3465_v26 }
 0x94b   : > { %4783 = vpow2.f32 %v3466_v63 }
 0x94c   : > { %4785 = vtanh.f32 %v3254_v33 }
 0x953   : > { %v4780_v38 = vpop.eup %4779 }
 0x954   : > { %v4782_v39 = vpop.eup %4781  ;;  %v3259_v53 = vadd.f32 1.0, %v4780_v38 }
 0x955   : > { %v3265_v0 = vadd.f32 1.0, %v4782_v39  ;;  %v4784_v56 = vpop.eup %4783 }
 0x956   : > { %4787 = vrcp.f32 %v3259_v53  ;;  %v4786_v41 = vpop.eup %4785  ;;  %v3272_v46 = vadd.f32 1.0, %v4784_v56 }
 0x957   : > { %4789 = vrcp.f32 %v3265_v0 }
 0x958   : > { %4791 = vrcp.f32 %v3272_v46 }
 0x960   : > { %v4788_v5 = vpop.eup %4787 }
 0x961   : > { %v4790_v42 = vpop.eup %4789  ;;  %v3276_v6 = vmul.f32 %v4788_v5, %v4786_v41 }
 0x962   : > { %v3275_v51 = vmul.f32 %v4790_v42, %v3098_v37  ;;  %v4792_v54 = vpop.eup %4791 }
 0x964   : > { %v3277_v52 = vadd.f32 %v3276_v6, %v3275_v51 }
 0x966   : > { %4793 = vtanh.f32 %v3277_v52 }
 0x970   : > { %v4794_v55 = vpop.eup %4793 }
 0x971   : > { %v3279_v57 = vmul.f32 %v4794_v55, %v4792_v54 }
 0x973   : > { %3280 = vst [vmem:[%s252_s11] sm:$0xff] %v3279_v57 }
 0x974 PF: > { %p14_p7 = scmp.ge.s32.totalorder %s4912_s20, 4   ;;  %s6199_s15 = smov %s4851_s16 }
 0x975   : > { %s6200_s16 = smov %s4855_s17  ;;  %s6201_s17 = smov %s4922_s23 }
 0x976   : > { %s6202_s18 = smov %s4912_s20  ;;  %16 = sbr.rel (!%p14_p7) target bundleno = 3 (0x3), region = 90 }
 0x97d   :  { %3300 = vsyncpa [#allocation4], 1 }
 0x97e   :  { %3302 = vsyncpa [#allocation4 + $0x1], 1 }

</bundles_post_ra>
